<compile_context>
chip_gen: v7x
topology: tpu7x:2x2x1
jax: 0.10.0
libtpu: 0.0.40
codegen_flags: <defaults>
</compile_context>

<pallas_src>
import jax
import jax.numpy as jnp
from jax.experimental import pallas as pl
from jax.experimental.pallas import tpu as pltpu

nc = 1
ngf = 32
nz = 100
K = 4            # kernel size of every ConvTranspose2d
BN_EPS = 1e-5

NZ_PAD = 128     # pad the nz=100 contraction dim to a full 128-lane slab
TILE_M = 512     # row-tile cap (HBM-roofline plateaus ~512; VMEM-safe on v7x)


def _round_up(x, m):
    return (x + m - 1) // m * m


def _row_tiling(m):
    tm = min(_round_up(m, 16), TILE_M)
    mp = _round_up(m, tm)
    return tm, mp


# ----------------------------- Pallas kernels ------------------------------

def matmul_stats_kernel(x_ref, w_ref, y_ref, stats_ref):
    """y_tile = x_tile @ w (bf16 MXU operands, f32 acc); accumulate per-column
    sum / sum-of-squares into the resident (2, C) stats block."""
    @pl.when(pl.program_id(0) == 0)
    def _init():
        stats_ref[...] = jnp.zeros_like(stats_ref)

    y = jnp.dot(x_ref[...], w_ref[...], preferred_element_type=jnp.float32)
    stats_ref[0:1, :] += jnp.sum(y, axis=0, keepdims=True)
    stats_ref[1:2, :] += jnp.sum(y * y, axis=0, keepdims=True)
    y_ref[...] = y.astype(y_ref.dtype)


def bn_relu_kernel(y_ref, scale_ref, bias_ref, o_ref):
    """o = relu(y * scale + bias) with per-column folded BN scale/bias."""
    y = y_ref[...].astype(jnp.float32)
    o_ref[...] = jnp.maximum(y * scale_ref[...] + bias_ref[...], 0.0).astype(o_ref.dtype)


def matmul_tanh_kernel(x_ref, w_ref, o_ref):
    """o = tanh(x @ w)  (final ConvTranspose2d + Tanh)."""
    y = jnp.dot(x_ref[...], w_ref[...], preferred_element_type=jnp.float32)
    o_ref[...] = jnp.tanh(y).astype(o_ref.dtype)


# ----------------------------- pallas_call wrappers -------------------------

def pallas_matmul_stats(x, w):
    m, kc = x.shape
    co = w.shape[1]
    tm, mp = _row_tiling(m)
    if mp != m:
        x = jnp.pad(x, ((0, mp - m), (0, 0)))   # zero rows: no effect on stats
    return pl.pallas_call(
        matmul_stats_kernel,
        out_shape=(jax.ShapeDtypeStruct((mp, co), jnp.bfloat16),
                   jax.ShapeDtypeStruct((2, co), jnp.float32)),
        grid=(mp // tm,),
        in_specs=[pl.BlockSpec((tm, kc), lambda i: (i, 0)),
                  pl.BlockSpec((kc, co), lambda i: (0, 0))],
        out_specs=(pl.BlockSpec((tm, co), lambda i: (i, 0)),
                   pl.BlockSpec((2, co), lambda i: (0, 0))),
        compiler_params=pltpu.CompilerParams(
            dimension_semantics=("arbitrary",)),   # stats block is revisited
    )(x, w)


def pallas_bn_relu(y, scale, bias):
    mp, c = y.shape
    tm, _ = _row_tiling(mp)
    return pl.pallas_call(
        bn_relu_kernel,
        out_shape=jax.ShapeDtypeStruct((mp, c), jnp.bfloat16),
        grid=(mp // tm,),
        in_specs=[pl.BlockSpec((tm, c), lambda i: (i, 0)),
                  pl.BlockSpec((1, c), lambda i: (0, 0)),
                  pl.BlockSpec((1, c), lambda i: (0, 0))],
        out_specs=pl.BlockSpec((tm, c), lambda i: (i, 0)),
        compiler_params=pltpu.CompilerParams(
            dimension_semantics=("parallel",)),
    )(y, scale, bias)


def pallas_matmul_tanh(x, w):
    m, kc = x.shape
    co = w.shape[1]
    tm, mp = _row_tiling(m)
    if mp != m:
        x = jnp.pad(x, ((0, mp - m), (0, 0)))
    return pl.pallas_call(
        matmul_tanh_kernel,
        out_shape=jax.ShapeDtypeStruct((mp, co), jnp.float32),
        grid=(mp // tm,),
        in_specs=[pl.BlockSpec((tm, kc), lambda i: (i, 0)),
                  pl.BlockSpec((kc, co), lambda i: (0, 0))],
        out_specs=pl.BlockSpec((tm, co), lambda i: (i, 0)),
        compiler_params=pltpu.CompilerParams(
            dimension_semantics=("parallel",)),
    )(x, w)


# -------------------- ConvTranspose2d (stride 2) lowering -------------------
#
# out[n, 2i+a, 2j+b, co] = sum_{dy,dx in {-1,0,1}} sum_ci
#       x_pad[n, i+1+dy, j+1+dx, ci] * w[ci, co, kh(a,dy), kw(b,dx)]
# with kh(a,dy): a=0: dy=0->1, dy=-1->3 ; a=1: dy=+1->0, dy=0->2 (else no tap),
# identically for kw(b,dx).  So a single matmul of 3x3 patches against a
# (9*Cin, 4*Cout) weight computes all four output sub-pixels at once.

_TAP = {(0, 0): 1, (0, -1): 3, (1, 1): 0, (1, 0): 2}


def build_subpixel_wmat(w):
    """w: (Cin, Cout, 4, 4) PyTorch ConvTranspose2d layout -> (9*Cin, 4*Cout)."""
    cin, cout = w.shape[0], w.shape[1]
    wfull = jnp.zeros((3, 3, cin, 2, 2, cout), jnp.float32)
    for dyi, dy in enumerate((-1, 0, 1)):
        for dxi, dx in enumerate((-1, 0, 1)):
            for a in (0, 1):
                for b in (0, 1):
                    kh = _TAP.get((a, dy))
                    kw = _TAP.get((b, dx))
                    if kh is None or kw is None:
                        continue
                    wfull = wfull.at[dyi, dxi, :, a, b, :].set(w[:, :, kh, kw])
    return wfull.reshape(9 * cin, 4 * cout)


def patches_3x3(x):
    """x: (N, H, W, C) -> (N*H*W, 9*C) patches, columns ordered (tap, ci)."""
    n, h, w, c = x.shape
    xp = jnp.pad(x, ((0, 0), (1, 1), (1, 1), (0, 0)))
    cols = [xp[:, dy:dy + h, dx:dx + w, :] for dy in range(3) for dx in range(3)]
    return jnp.stack(cols, axis=3).reshape(n * h * w, 9 * c)


def depth_to_space(y, n, h, w, cout):
    """y: (N*H*W, 4*Cout) with columns (a, b, co) -> (N, 2H, 2W, Cout)."""
    y = y.reshape(n, h, w, 2, 2, cout)
    y = jnp.transpose(y, (0, 1, 3, 2, 4, 5))
    return y.reshape(n, 2 * h, 2 * w, cout)


def bn_scale_bias(stats, gamma, beta, groups, count):
    """Fold batch-statistics BN into per-column scale/bias.

    stats: (2, groups*Cout) column layout (g, co); count = true rows per group
    column (padded zero rows contribute nothing)."""
    cout = gamma.shape[0]
    s = stats.reshape(2, groups, cout).sum(axis=1)           # (2, Cout)
    total = float(groups * count)
    mean = s[0] / total
    var = s[1] / total - mean * mean                          # single-pass E[y^2]-E[y]^2
    inv = jax.lax.rsqrt(var + BN_EPS)
    scale_c = gamma * inv
    bias_c = beta - mean * scale_c
    scale = jnp.tile(scale_c, groups).reshape(1, groups * cout)
    bias = jnp.tile(bias_c, groups).reshape(1, groups * cout)
    return scale, bias


# ------------------------------- Generator ---------------------------------

# (Cin, Cout, stride, padding) of the 4 ConvTranspose2d layers (PyTorch spec)
LAYER_CFG = [
    (nz,      ngf * 4, 1, 0),   # 1x1   -> 4x4
    (ngf * 4, ngf * 2, 2, 1),   # 4x4   -> 8x8
    (ngf * 2, ngf,     2, 1),   # 8x8   -> 16x16
    (ngf,     nc,      2, 1),   # 16x16 -> 32x32
]


def init_params(key):
    params = []
    for (cin, cout, _, _) in LAYER_CFG:
        key, wk = jax.random.split(key)
        w = jax.random.normal(wk, (cin, cout, K, K), jnp.float32) * 0.02
        gamma = jnp.ones((cout,), jnp.float32)   # BatchNorm2d default weight
        beta = jnp.zeros((cout,), jnp.float32)   # BatchNorm2d default bias
        params.append({"w": w, "gamma": gamma, "beta": beta})
    return params


def prepare_params(params):
    """Convert PyTorch-layout weights to bf16 matmul form (done once)."""
    mp = {}
    # Layer 1: (nz, 128, 4, 4) -> (nz, 4, 4, 128) -> (nz, 2048), pad nz to 128.
    w1 = jnp.transpose(params[0]["w"], (0, 2, 3, 1)).reshape(nz, K * K * ngf * 4)
    mp["w1"] = jnp.pad(w1, ((0, NZ_PAD - nz), (0, 0))).astype(jnp.bfloat16)
    mp["g1"], mp["b1"] = params[0]["gamma"], params[0]["beta"]
    # Layers 2-4: sub-pixel weight matrices (9*Cin, 4*Cout).
    for li in (2, 3, 4):
        mp[f"w{li}"] = build_subpixel_wmat(params[li - 1]["w"]).astype(jnp.bfloat16)
        if li < 4:
            mp[f"g{li}"], mp[f"b{li}"] = params[li - 1]["gamma"], params[li - 1]["beta"]
    return mp


@jax.jit
def generator_forward(z_nchw, mparams):
    n = z_nchw.shape[0]
    z = z_nchw.reshape(n, nz).astype(jnp.float32)

    # ---- Layer 1: dense matmul (no im2col), columns (kh, kw, co) ----
    zp = jnp.pad(z, ((0, 0), (0, NZ_PAD - nz))).astype(jnp.bfloat16)
    y, stats = pallas_matmul_stats(zp, mparams["w1"])            # (Mp, 2048)
    scale, bias = bn_scale_bias(stats, mparams["g1"], mparams["b1"], K * K, n)
    act = pallas_bn_relu(y, scale, bias)[:n]                     # (N, 2048) bf16
    x = act.reshape(n, K, K, ngf * 4)                            # (N, 4, 4, 128)

    # ---- Layers 2-3: stride-2 convT as sub-pixel matmul + BN + ReLU ----
    for li, cout in ((2, ngf * 2), (3, ngf)):
        _, h, w, _ = x.shape
        m = n * h * w
        p = patches_3x3(x)                                        # (M, 9*Cin) bf16
        y, stats = pallas_matmul_stats(p, mparams[f"w{li}"])      # (Mp, 4*Cout)
        scale, bias = bn_scale_bias(stats, mparams[f"g{li}"], mparams[f"b{li}"], 4, m)
        act = pallas_bn_relu(y, scale, bias)[:m]
        x = depth_to_space(act, n, h, w, cout)                    # (N, 2H, 2W, Cout)

    # ---- Layer 4: stride-2 convT + Tanh (Cout = 1, no BN) ----
    _, h, w, _ = x.shape
    m = n * h * w
    p = patches_3x3(x)                                            # (M, 9*32) bf16
    y = pallas_matmul_tanh(p, mparams["w4"])[:m]                  # (M, 4) f32
    out = depth_to_space(y, n, h, w, nc)                          # (N, 32, 32, 1)
    return jnp.transpose(out, (0, 3, 1, 2))                       # NCHW


if __name__ == "__main__":
    key = jax.random.PRNGKey(0)
    key, zk = jax.random.split(key)
    params = init_params(key)
    mparams = prepare_params(params)

    batch = 2
    z = jax.random.normal(zk, (batch, nz, 1, 1), jnp.float32)

    out = generator_forward(z, mparams)
    out = jax.block_until_ready(out)

    assert out.shape == (batch, nc, 32, 32), out.shape
    assert bool(jnp.all(jnp.isfinite(out)))
    assert bool(jnp.all(jnp.abs(out) <= 1.0 + 1e-6))  # tanh range
    print("KERNEL_OK")
</pallas_src>

<mosaic_0001>
module attributes {stable_mosaic.version = 11 : i64} {
  func.func @matmul_stats_kernel(%arg0: i32, %arg1: memref<16x128xbf16, #tpu.memory_space<vmem>>, %arg2: memref<128x2048xbf16, #tpu.memory_space<vmem>>, %arg3: memref<16x2048xbf16, #tpu.memory_space<vmem>>, %arg4: memref<2x2048xf32, #tpu.memory_space<vmem>>) attributes {dimension_semantics = [#tpu.dimension_semantics<arbitrary>], iteration_bounds = array<i64: 1>, scalar_prefetch = 0 : i64, scratch_operands = 0 : i64, tpu.core_type = #tpu.core_type<tc>, window_params = [{transform_indices = @transform_0, window_bounds = array<i64: 16, 128>}, {pipeline_mode = #tpu.pipeline_mode<synchronous>, transform_indices = @transform_1, window_bounds = array<i64: 128, 2048>}, {transform_indices = @transform_2, window_bounds = array<i64: 16, 2048>}, {pipeline_mode = #tpu.pipeline_mode<synchronous>, transform_indices = @transform_3, window_bounds = array<i64: 2, 2048>}]} {
    %c0_i32 = arith.constant 0 : i32
    %0 = arith.cmpi eq, %arg0, %c0_i32 : i32
    %1 = arith.extui %0 : i1 to i32
    %c0_i32_0 = arith.constant 0 : i32
    %2 = arith.cmpi ne, %1, %c0_i32_0 : i32
    scf.if %2 {
      %cst_15 = arith.constant 0.000000e+00 : f32
      %19 = vector.broadcast %cst_15 : f32 to vector<2x2048xf32>
      %c0_16 = arith.constant 0 : index
      %c0_17 = arith.constant 0 : index
      %20 = vector.load %arg4[%c0_16, %c0_17] : memref<2x2048xf32, #tpu.memory_space<vmem>>, vector<2x2048xf32>
      tpu.vector_store %arg4[%c0_16, %c0_17], %19 {strides = array<i32>} : memref<2x2048xf32, #tpu.memory_space<vmem>>, vector<2x2048xf32>,
    } else {
    }
    %c0 = arith.constant 0 : index
    %c0_1 = arith.constant 0 : index
    %3 = vector.load %arg1[%c0, %c0_1] : memref<16x128xbf16, #tpu.memory_space<vmem>>, vector<16x128xbf16>
    %c0_2 = arith.constant 0 : index
    %c0_3 = arith.constant 0 : index
    %4 = vector.load %arg2[%c0_2, %c0_3] : memref<128x2048xbf16, #tpu.memory_space<vmem>>, vector<128x2048xbf16>
    %cst = arith.constant dense<0.000000e+00> : vector<16x2048xf32>
    %5 = tpu.matmul %3, %4, %cst {dimension_numbers = #tpu.dot_dimension_numbers<[1], [0], [0], [1], [0, 0, 1, 1], [], []>} : vector<16x128xbf16>, vector<128x2048xbf16>, vector<16x2048xf32> -> vector<16x2048xf32>
    %c0_4 = arith.constant 0 : index
    %c0_5 = arith.constant 0 : index
    %6 = vector.load %arg4[%c0_4, %c0_5] : memref<2x2048xf32, #tpu.memory_space<vmem>>, vector<1x2048xf32>
    %cst_6 = arith.constant dense<0.000000e+00> : vector<2048xf32>
    %7 = vector.multi_reduction <add>, %5, %cst_6 [0] : vector<16x2048xf32> to vector<2048xf32>
    %8 = vector.shape_cast %7 : vector<2048xf32> to vector<1x2048xf32>
    %9 = arith.addf %6, %8 : vector<1x2048xf32>
    %c0_7 = arith.constant 0 : index
    %c0_8 = arith.constant 0 : index
    %10 = vector.load %arg4[%c0_7, %c0_8] : memref<2x2048xf32, #tpu.memory_space<vmem>>, vector<1x2048xf32>
    tpu.vector_store %arg4[%c0_7, %c0_8], %9 {strides = array<i32>} : memref<2x2048xf32, #tpu.memory_space<vmem>>, vector<1x2048xf32>,
    %c1 = arith.constant 1 : index
    %c0_9 = arith.constant 0 : index
    %11 = vector.load %arg4[%c1, %c0_9] : memref<2x2048xf32, #tpu.memory_space<vmem>>, vector<1x2048xf32>
    %12 = arith.mulf %5, %5 : vector<16x2048xf32>
    %cst_10 = arith.constant dense<0.000000e+00> : vector<2048xf32>
    %13 = vector.multi_reduction <add>, %12, %cst_10 [0] : vector<16x2048xf32> to vector<2048xf32>
    %14 = vector.shape_cast %13 : vector<2048xf32> to vector<1x2048xf32>
    %15 = arith.addf %11, %14 : vector<1x2048xf32>
    %c1_11 = arith.constant 1 : index
    %c0_12 = arith.constant 0 : index
    %16 = vector.load %arg4[%c1_11, %c0_12] : memref<2x2048xf32, #tpu.memory_space<vmem>>, vector<1x2048xf32>
    tpu.vector_store %arg4[%c1_11, %c0_12], %15 {strides = array<i32>} : memref<2x2048xf32, #tpu.memory_space<vmem>>, vector<1x2048xf32>,
    %17 = arith.truncf %5 : vector<16x2048xf32> to vector<16x2048xbf16>
    %c0_13 = arith.constant 0 : index
    %c0_14 = arith.constant 0 : index
    %18 = vector.load %arg3[%c0_13, %c0_14] : memref<16x2048xbf16, #tpu.memory_space<vmem>>, vector<16x2048xbf16>
    tpu.vector_store %arg3[%c0_13, %c0_14], %17 {strides = array<i32>} : memref<16x2048xbf16, #tpu.memory_space<vmem>>, vector<16x2048xbf16>,
    return
  }
  func.func @transform_0(%arg0: i32) -> (i32, i32) {
    %c0_i32 = arith.constant 0 : i32
    %c0_i32_0 = arith.constant 0 : i32
    return %arg0, %c0_i32 : i32, i32
  }
  func.func @transform_1(%arg0: i32) -> (i32, i32) {
    %c0_i32 = arith.constant 0 : i32
    %c0_i32_0 = arith.constant 0 : i32
    %c0_i32_1 = arith.constant 0 : i32
    return %c0_i32, %c0_i32_0 : i32, i32
  }
  func.func @transform_2(%arg0: i32) -> (i32, i32) {
    %c0_i32 = arith.constant 0 : i32
    %c0_i32_0 = arith.constant 0 : i32
    return %arg0, %c0_i32 : i32, i32
  }
  func.func @transform_3(%arg0: i32) -> (i32, i32) {
    %c0_i32 = arith.constant 0 : i32
    %c0_i32_0 = arith.constant 0 : i32
    %c0_i32_1 = arith.constant 0 : i32
    return %c0_i32, %c0_i32_0 : i32, i32
  }
}

module attributes {stable_mosaic.version = 11 : i64} {
  func.func @bn_relu_kernel(%arg0: i32, %arg1: memref<16x2048xbf16, #tpu.memory_space<vmem>>, %arg2: memref<1x2048xf32, #tpu.memory_space<vmem>>, %arg3: memref<1x2048xf32, #tpu.memory_space<vmem>>, %arg4: memref<16x2048xbf16, #tpu.memory_space<vmem>>) attributes {dimension_semantics = [#tpu.dimension_semantics<parallel>], iteration_bounds = array<i64: 1>, scalar_prefetch = 0 : i64, scratch_operands = 0 : i64, tpu.core_type = #tpu.core_type<tc>, window_params = [{transform_indices = @transform_0, window_bounds = array<i64: 16, 2048>}, {pipeline_mode = #tpu.pipeline_mode<synchronous>, transform_indices = @transform_1, window_bounds = array<i64: 1, 2048>}, {pipeline_mode = #tpu.pipeline_mode<synchronous>, transform_indices = @transform_2, window_bounds = array<i64: 1, 2048>}, {transform_indices = @transform_3, window_bounds = array<i64: 16, 2048>}]} {
    %c0 = arith.constant 0 : index
    %c0_0 = arith.constant 0 : index
    %0 = vector.load %arg1[%c0, %c0_0] : memref<16x2048xbf16, #tpu.memory_space<vmem>>, vector<16x2048xbf16>
    %1 = arith.extf %0 : vector<16x2048xbf16> to vector<16x2048xf32>
    %c0_1 = arith.constant 0 : index
    %c0_2 = arith.constant 0 : index
    %2 = vector.load %arg2[%c0_1, %c0_2] : memref<1x2048xf32, #tpu.memory_space<vmem>>, vector<1x2048xf32>
    %3 = vector.broadcast %2 : vector<1x2048xf32> to vector<16x2048xf32>
    %4 = arith.mulf %1, %3 : vector<16x2048xf32>
    %c0_3 = arith.constant 0 : index
    %c0_4 = arith.constant 0 : index
    %5 = vector.load %arg3[%c0_3, %c0_4] : memref<1x2048xf32, #tpu.memory_space<vmem>>, vector<1x2048xf32>
    %6 = vector.broadcast %5 : vector<1x2048xf32> to vector<16x2048xf32>
    %7 = arith.addf %4, %6 : vector<16x2048xf32>
    %cst = arith.constant 0.000000e+00 : f32
    %8 = vector.broadcast %cst : f32 to vector<16x2048xf32>
    %9 = arith.maximumf %7, %8 : vector<16x2048xf32>
    %10 = arith.truncf %9 : vector<16x2048xf32> to vector<16x2048xbf16>
    %c0_5 = arith.constant 0 : index
    %c0_6 = arith.constant 0 : index
    %11 = vector.load %arg4[%c0_5, %c0_6] : memref<16x2048xbf16, #tpu.memory_space<vmem>>, vector<16x2048xbf16>
    tpu.vector_store %arg4[%c0_5, %c0_6], %10 {strides = array<i32>} : memref<16x2048xbf16, #tpu.memory_space<vmem>>, vector<16x2048xbf16>,
    return
  }
  func.func @transform_0(%arg0: i32) -> (i32, i32) {
    %c0_i32 = arith.constant 0 : i32
    %c0_i32_0 = arith.constant 0 : i32
    return %arg0, %c0_i32 : i32, i32
  }
  func.func @transform_1(%arg0: i32) -> (i32, i32) {
    %c0_i32 = arith.constant 0 : i32
    %c0_i32_0 = arith.constant 0 : i32
    %c0_i32_1 = arith.constant 0 : i32
    return %c0_i32, %c0_i32_0 : i32, i32
  }
  func.func @transform_2(%arg0: i32) -> (i32, i32) {
    %c0_i32 = arith.constant 0 : i32
    %c0_i32_0 = arith.constant 0 : i32
    %c0_i32_1 = arith.constant 0 : i32
    return %c0_i32, %c0_i32_0 : i32, i32
  }
  func.func @transform_3(%arg0: i32) -> (i32, i32) {
    %c0_i32 = arith.constant 0 : i32
    %c0_i32_0 = arith.constant 0 : i32
    return %arg0, %c0_i32 : i32, i32
  }
}

module attributes {stable_mosaic.version = 11 : i64} {
  func.func @matmul_stats_kernel(%arg0: i32, %arg1: memref<32x1152xbf16, #tpu.memory_space<vmem>>, %arg2: memref<1152x256xbf16, #tpu.memory_space<vmem>>, %arg3: memref<32x256xbf16, #tpu.memory_space<vmem>>, %arg4: memref<2x256xf32, #tpu.memory_space<vmem>>) attributes {dimension_semantics = [#tpu.dimension_semantics<arbitrary>], iteration_bounds = array<i64: 1>, scalar_prefetch = 0 : i64, scratch_operands = 0 : i64, tpu.core_type = #tpu.core_type<tc>, window_params = [{transform_indices = @transform_0, window_bounds = array<i64: 32, 1152>}, {pipeline_mode = #tpu.pipeline_mode<synchronous>, transform_indices = @transform_1, window_bounds = array<i64: 1152, 256>}, {transform_indices = @transform_2, window_bounds = array<i64: 32, 256>}, {pipeline_mode = #tpu.pipeline_mode<synchronous>, transform_indices = @transform_3, window_bounds = array<i64: 2, 256>}]} {
    %c0_i32 = arith.constant 0 : i32
    %0 = arith.cmpi eq, %arg0, %c0_i32 : i32
    %1 = arith.extui %0 : i1 to i32
    %c0_i32_0 = arith.constant 0 : i32
    %2 = arith.cmpi ne, %1, %c0_i32_0 : i32
    scf.if %2 {
      %cst_15 = arith.constant 0.000000e+00 : f32
      %19 = vector.broadcast %cst_15 : f32 to vector<2x256xf32>
      %c0_16 = arith.constant 0 : index
      %c0_17 = arith.constant 0 : index
      %20 = vector.load %arg4[%c0_16, %c0_17] : memref<2x256xf32, #tpu.memory_space<vmem>>, vector<2x256xf32>
      tpu.vector_store %arg4[%c0_16, %c0_17], %19 {strides = array<i32>} : memref<2x256xf32, #tpu.memory_space<vmem>>, vector<2x256xf32>,
    } else {
    }
    %c0 = arith.constant 0 : index
    %c0_1 = arith.constant 0 : index
    %3 = vector.load %arg1[%c0, %c0_1] : memref<32x1152xbf16, #tpu.memory_space<vmem>>, vector<32x1152xbf16>
    %c0_2 = arith.constant 0 : index
    %c0_3 = arith.constant 0 : index
    %4 = vector.load %arg2[%c0_2, %c0_3] : memref<1152x256xbf16, #tpu.memory_space<vmem>>, vector<1152x256xbf16>
    %cst = arith.constant dense<0.000000e+00> : vector<32x256xf32>
    %5 = tpu.matmul %3, %4, %cst {dimension_numbers = #tpu.dot_dimension_numbers<[1], [0], [0], [1], [0, 0, 1, 1], [], []>} : vector<32x1152xbf16>, vector<1152x256xbf16>, vector<32x256xf32> -> vector<32x256xf32>
    %c0_4 = arith.constant 0 : index
    %c0_5 = arith.constant 0 : index
    %6 = vector.load %arg4[%c0_4, %c0_5] : memref<2x256xf32, #tpu.memory_space<vmem>>, vector<1x256xf32>
    %cst_6 = arith.constant dense<0.000000e+00> : vector<256xf32>
    %7 = vector.multi_reduction <add>, %5, %cst_6 [0] : vector<32x256xf32> to vector<256xf32>
    %8 = vector.shape_cast %7 : vector<256xf32> to vector<1x256xf32>
    %9 = arith.addf %6, %8 : vector<1x256xf32>
    %c0_7 = arith.constant 0 : index
    %c0_8 = arith.constant 0 : index
    %10 = vector.load %arg4[%c0_7, %c0_8] : memref<2x256xf32, #tpu.memory_space<vmem>>, vector<1x256xf32>
    tpu.vector_store %arg4[%c0_7, %c0_8], %9 {strides = array<i32>} : memref<2x256xf32, #tpu.memory_space<vmem>>, vector<1x256xf32>,
    %c1 = arith.constant 1 : index
    %c0_9 = arith.constant 0 : index
    %11 = vector.load %arg4[%c1, %c0_9] : memref<2x256xf32, #tpu.memory_space<vmem>>, vector<1x256xf32>
    %12 = arith.mulf %5, %5 : vector<32x256xf32>
    %cst_10 = arith.constant dense<0.000000e+00> : vector<256xf32>
    %13 = vector.multi_reduction <add>, %12, %cst_10 [0] : vector<32x256xf32> to vector<256xf32>
    %14 = vector.shape_cast %13 : vector<256xf32> to vector<1x256xf32>
    %15 = arith.addf %11, %14 : vector<1x256xf32>
    %c1_11 = arith.constant 1 : index
    %c0_12 = arith.constant 0 : index
    %16 = vector.load %arg4[%c1_11, %c0_12] : memref<2x256xf32, #tpu.memory_space<vmem>>, vector<1x256xf32>
    tpu.vector_store %arg4[%c1_11, %c0_12], %15 {strides = array<i32>} : memref<2x256xf32, #tpu.memory_space<vmem>>, vector<1x256xf32>,
    %17 = arith.truncf %5 : vector<32x256xf32> to vector<32x256xbf16>
    %c0_13 = arith.constant 0 : index
    %c0_14 = arith.constant 0 : index
    %18 = vector.load %arg3[%c0_13, %c0_14] : memref<32x256xbf16, #tpu.memory_space<vmem>>, vector<32x256xbf16>
    tpu.vector_store %arg3[%c0_13, %c0_14], %17 {strides = array<i32>} : memref<32x256xbf16, #tpu.memory_space<vmem>>, vector<32x256xbf16>,
    return
  }
  func.func @transform_0(%arg0: i32) -> (i32, i32) {
    %c0_i32 = arith.constant 0 : i32
    %c0_i32_0 = arith.constant 0 : i32
    return %arg0, %c0_i32 : i32, i32
  }
  func.func @transform_1(%arg0: i32) -> (i32, i32) {
    %c0_i32 = arith.constant 0 : i32
    %c0_i32_0 = arith.constant 0 : i32
    %c0_i32_1 = arith.constant 0 : i32
    return %c0_i32, %c0_i32_0 : i32, i32
  }
  func.func @transform_2(%arg0: i32) -> (i32, i32) {
    %c0_i32 = arith.constant 0 : i32
    %c0_i32_0 = arith.constant 0 : i32
    return %arg0, %c0_i32 : i32, i32
  }
  func.func @transform_3(%arg0: i32) -> (i32, i32) {
    %c0_i32 = arith.constant 0 : i32
    %c0_i32_0 = arith.constant 0 : i32
    %c0_i32_1 = arith.constant 0 : i32
    return %c0_i32, %c0_i32_0 : i32, i32
  }
}

module attributes {stable_mosaic.version = 11 : i64} {
  func.func @bn_relu_kernel(%arg0: i32, %arg1: memref<32x256xbf16, #tpu.memory_space<vmem>>, %arg2: memref<1x256xf32, #tpu.memory_space<vmem>>, %arg3: memref<1x256xf32, #tpu.memory_space<vmem>>, %arg4: memref<32x256xbf16, #tpu.memory_space<vmem>>) attributes {dimension_semantics = [#tpu.dimension_semantics<parallel>], iteration_bounds = array<i64: 1>, scalar_prefetch = 0 : i64, scratch_operands = 0 : i64, tpu.core_type = #tpu.core_type<tc>, window_params = [{transform_indices = @transform_0, window_bounds = array<i64: 32, 256>}, {pipeline_mode = #tpu.pipeline_mode<synchronous>, transform_indices = @transform_1, window_bounds = array<i64: 1, 256>}, {pipeline_mode = #tpu.pipeline_mode<synchronous>, transform_indices = @transform_2, window_bounds = array<i64: 1, 256>}, {transform_indices = @transform_3, window_bounds = array<i64: 32, 256>}]} {
    %c0 = arith.constant 0 : index
    %c0_0 = arith.constant 0 : index
    %0 = vector.load %arg1[%c0, %c0_0] : memref<32x256xbf16, #tpu.memory_space<vmem>>, vector<32x256xbf16>
    %1 = arith.extf %0 : vector<32x256xbf16> to vector<32x256xf32>
    %c0_1 = arith.constant 0 : index
    %c0_2 = arith.constant 0 : index
    %2 = vector.load %arg2[%c0_1, %c0_2] : memref<1x256xf32, #tpu.memory_space<vmem>>, vector<1x256xf32>
    %3 = vector.broadcast %2 : vector<1x256xf32> to vector<32x256xf32>
    %4 = arith.mulf %1, %3 : vector<32x256xf32>
    %c0_3 = arith.constant 0 : index
    %c0_4 = arith.constant 0 : index
    %5 = vector.load %arg3[%c0_3, %c0_4] : memref<1x256xf32, #tpu.memory_space<vmem>>, vector<1x256xf32>
    %6 = vector.broadcast %5 : vector<1x256xf32> to vector<32x256xf32>
    %7 = arith.addf %4, %6 : vector<32x256xf32>
    %cst = arith.constant 0.000000e+00 : f32
    %8 = vector.broadcast %cst : f32 to vector<32x256xf32>
    %9 = arith.maximumf %7, %8 : vector<32x256xf32>
    %10 = arith.truncf %9 : vector<32x256xf32> to vector<32x256xbf16>
    %c0_5 = arith.constant 0 : index
    %c0_6 = arith.constant 0 : index
    %11 = vector.load %arg4[%c0_5, %c0_6] : memref<32x256xbf16, #tpu.memory_space<vmem>>, vector<32x256xbf16>
    tpu.vector_store %arg4[%c0_5, %c0_6], %10 {strides = array<i32>} : memref<32x256xbf16, #tpu.memory_space<vmem>>, vector<32x256xbf16>,
    return
  }
  func.func @transform_0(%arg0: i32) -> (i32, i32) {
    %c0_i32 = arith.constant 0 : i32
    %c0_i32_0 = arith.constant 0 : i32
    return %arg0, %c0_i32 : i32, i32
  }
  func.func @transform_1(%arg0: i32) -> (i32, i32) {
    %c0_i32 = arith.constant 0 : i32
    %c0_i32_0 = arith.constant 0 : i32
    %c0_i32_1 = arith.constant 0 : i32
    return %c0_i32, %c0_i32_0 : i32, i32
  }
  func.func @transform_2(%arg0: i32) -> (i32, i32) {
    %c0_i32 = arith.constant 0 : i32
    %c0_i32_0 = arith.constant 0 : i32
    %c0_i32_1 = arith.constant 0 : i32
    return %c0_i32, %c0_i32_0 : i32, i32
  }
  func.func @transform_3(%arg0: i32) -> (i32, i32) {
    %c0_i32 = arith.constant 0 : i32
    %c0_i32_0 = arith.constant 0 : i32
    return %arg0, %c0_i32 : i32, i32
  }
}

module attributes {stable_mosaic.version = 11 : i64} {
  func.func @matmul_stats_kernel(%arg0: i32, %arg1: memref<128x576xbf16, #tpu.memory_space<vmem>>, %arg2: memref<576x128xbf16, #tpu.memory_space<vmem>>, %arg3: memref<128x128xbf16, #tpu.memory_space<vmem>>, %arg4: memref<2x128xf32, #tpu.memory_space<vmem>>) attributes {dimension_semantics = [#tpu.dimension_semantics<arbitrary>], iteration_bounds = array<i64: 1>, scalar_prefetch = 0 : i64, scratch_operands = 0 : i64, tpu.core_type = #tpu.core_type<tc>, window_params = [{transform_indices = @transform_0, window_bounds = array<i64: 128, 576>}, {pipeline_mode = #tpu.pipeline_mode<synchronous>, transform_indices = @transform_1, window_bounds = array<i64: 576, 128>}, {transform_indices = @transform_2, window_bounds = array<i64: 128, 128>}, {pipeline_mode = #tpu.pipeline_mode<synchronous>, transform_indices = @transform_3, window_bounds = array<i64: 2, 128>}]} {
    %c0_i32 = arith.constant 0 : i32
    %0 = arith.cmpi eq, %arg0, %c0_i32 : i32
    %1 = arith.extui %0 : i1 to i32
    %c0_i32_0 = arith.constant 0 : i32
    %2 = arith.cmpi ne, %1, %c0_i32_0 : i32
    scf.if %2 {
      %cst_15 = arith.constant 0.000000e+00 : f32
      %19 = vector.broadcast %cst_15 : f32 to vector<2x128xf32>
      %c0_16 = arith.constant 0 : index
      %c0_17 = arith.constant 0 : index
      %20 = vector.load %arg4[%c0_16, %c0_17] : memref<2x128xf32, #tpu.memory_space<vmem>>, vector<2x128xf32>
      tpu.vector_store %arg4[%c0_16, %c0_17], %19 {strides = array<i32>} : memref<2x128xf32, #tpu.memory_space<vmem>>, vector<2x128xf32>,
    } else {
    }
    %c0 = arith.constant 0 : index
    %c0_1 = arith.constant 0 : index
    %3 = vector.load %arg1[%c0, %c0_1] : memref<128x576xbf16, #tpu.memory_space<vmem>>, vector<128x576xbf16>
    %c0_2 = arith.constant 0 : index
    %c0_3 = arith.constant 0 : index
    %4 = vector.load %arg2[%c0_2, %c0_3] : memref<576x128xbf16, #tpu.memory_space<vmem>>, vector<576x128xbf16>
    %cst = arith.constant dense<0.000000e+00> : vector<128x128xf32>
    %5 = tpu.matmul %3, %4, %cst {dimension_numbers = #tpu.dot_dimension_numbers<[1], [0], [0], [1], [0, 0, 1, 1], [], []>} : vector<128x576xbf16>, vector<576x128xbf16>, vector<128x128xf32> -> vector<128x128xf32>
    %c0_4 = arith.constant 0 : index
    %c0_5 = arith.constant 0 : index
    %6 = vector.load %arg4[%c0_4, %c0_5] : memref<2x128xf32, #tpu.memory_space<vmem>>, vector<1x128xf32>
    %cst_6 = arith.constant dense<0.000000e+00> : vector<128xf32>
    %7 = vector.multi_reduction <add>, %5, %cst_6 [0] : vector<128x128xf32> to vector<128xf32>
    %8 = vector.shape_cast %7 : vector<128xf32> to vector<1x128xf32>
    %9 = arith.addf %6, %8 : vector<1x128xf32>
    %c0_7 = arith.constant 0 : index
    %c0_8 = arith.constant 0 : index
    %10 = vector.load %arg4[%c0_7, %c0_8] : memref<2x128xf32, #tpu.memory_space<vmem>>, vector<1x128xf32>
    tpu.vector_store %arg4[%c0_7, %c0_8], %9 {strides = array<i32>} : memref<2x128xf32, #tpu.memory_space<vmem>>, vector<1x128xf32>,
    %c1 = arith.constant 1 : index
    %c0_9 = arith.constant 0 : index
    %11 = vector.load %arg4[%c1, %c0_9] : memref<2x128xf32, #tpu.memory_space<vmem>>, vector<1x128xf32>
    %12 = arith.mulf %5, %5 : vector<128x128xf32>
    %cst_10 = arith.constant dense<0.000000e+00> : vector<128xf32>
    %13 = vector.multi_reduction <add>, %12, %cst_10 [0] : vector<128x128xf32> to vector<128xf32>
    %14 = vector.shape_cast %13 : vector<128xf32> to vector<1x128xf32>
    %15 = arith.addf %11, %14 : vector<1x128xf32>
    %c1_11 = arith.constant 1 : index
    %c0_12 = arith.constant 0 : index
    %16 = vector.load %arg4[%c1_11, %c0_12] : memref<2x128xf32, #tpu.memory_space<vmem>>, vector<1x128xf32>
    tpu.vector_store %arg4[%c1_11, %c0_12], %15 {strides = array<i32>} : memref<2x128xf32, #tpu.memory_space<vmem>>, vector<1x128xf32>,
    %17 = arith.truncf %5 : vector<128x128xf32> to vector<128x128xbf16>
    %c0_13 = arith.constant 0 : index
    %c0_14 = arith.constant 0 : index
    %18 = vector.load %arg3[%c0_13, %c0_14] : memref<128x128xbf16, #tpu.memory_space<vmem>>, vector<128x128xbf16>
    tpu.vector_store %arg3[%c0_13, %c0_14], %17 {strides = array<i32>} : memref<128x128xbf16, #tpu.memory_space<vmem>>, vector<128x128xbf16>,
    return
  }
  func.func @transform_0(%arg0: i32) -> (i32, i32) {
    %c0_i32 = arith.constant 0 : i32
    %c0_i32_0 = arith.constant 0 : i32
    return %arg0, %c0_i32 : i32, i32
  }
  func.func @transform_1(%arg0: i32) -> (i32, i32) {
    %c0_i32 = arith.constant 0 : i32
    %c0_i32_0 = arith.constant 0 : i32
    %c0_i32_1 = arith.constant 0 : i32
    return %c0_i32, %c0_i32_0 : i32, i32
  }
  func.func @transform_2(%arg0: i32) -> (i32, i32) {
    %c0_i32 = arith.constant 0 : i32
    %c0_i32_0 = arith.constant 0 : i32
    return %arg0, %c0_i32 : i32, i32
  }
  func.func @transform_3(%arg0: i32) -> (i32, i32) {
    %c0_i32 = arith.constant 0 : i32
    %c0_i32_0 = arith.constant 0 : i32
    %c0_i32_1 = arith.constant 0 : i32
    return %c0_i32, %c0_i32_0 : i32, i32
  }
}

module attributes {stable_mosaic.version = 11 : i64} {
  func.func @bn_relu_kernel(%arg0: i32, %arg1: memref<128x128xbf16, #tpu.memory_space<vmem>>, %arg2: memref<1x128xf32, #tpu.memory_space<vmem>>, %arg3: memref<1x128xf32, #tpu.memory_space<vmem>>, %arg4: memref<128x128xbf16, #tpu.memory_space<vmem>>) attributes {dimension_semantics = [#tpu.dimension_semantics<parallel>], iteration_bounds = array<i64: 1>, scalar_prefetch = 0 : i64, scratch_operands = 0 : i64, tpu.core_type = #tpu.core_type<tc>, window_params = [{transform_indices = @transform_0, window_bounds = array<i64: 128, 128>}, {pipeline_mode = #tpu.pipeline_mode<synchronous>, transform_indices = @transform_1, window_bounds = array<i64: 1, 128>}, {pipeline_mode = #tpu.pipeline_mode<synchronous>, transform_indices = @transform_2, window_bounds = array<i64: 1, 128>}, {transform_indices = @transform_3, window_bounds = array<i64: 128, 128>}]} {
    %c0 = arith.constant 0 : index
    %c0_0 = arith.constant 0 : index
    %0 = vector.load %arg1[%c0, %c0_0] : memref<128x128xbf16, #tpu.memory_space<vmem>>, vector<128x128xbf16>
    %1 = arith.extf %0 : vector<128x128xbf16> to vector<128x128xf32>
    %c0_1 = arith.constant 0 : index
    %c0_2 = arith.constant 0 : index
    %2 = vector.load %arg2[%c0_1, %c0_2] : memref<1x128xf32, #tpu.memory_space<vmem>>, vector<1x128xf32>
    %3 = vector.broadcast %2 : vector<1x128xf32> to vector<128x128xf32>
    %4 = arith.mulf %1, %3 : vector<128x128xf32>
    %c0_3 = arith.constant 0 : index
    %c0_4 = arith.constant 0 : index
    %5 = vector.load %arg3[%c0_3, %c0_4] : memref<1x128xf32, #tpu.memory_space<vmem>>, vector<1x128xf32>
    %6 = vector.broadcast %5 : vector<1x128xf32> to vector<128x128xf32>
    %7 = arith.addf %4, %6 : vector<128x128xf32>
    %cst = arith.constant 0.000000e+00 : f32
    %8 = vector.broadcast %cst : f32 to vector<128x128xf32>
    %9 = arith.maximumf %7, %8 : vector<128x128xf32>
    %10 = arith.truncf %9 : vector<128x128xf32> to vector<128x128xbf16>
    %c0_5 = arith.constant 0 : index
    %c0_6 = arith.constant 0 : index
    %11 = vector.load %arg4[%c0_5, %c0_6] : memref<128x128xbf16, #tpu.memory_space<vmem>>, vector<128x128xbf16>
    tpu.vector_store %arg4[%c0_5, %c0_6], %10 {strides = array<i32>} : memref<128x128xbf16, #tpu.memory_space<vmem>>, vector<128x128xbf16>,
    return
  }
  func.func @transform_0(%arg0: i32) -> (i32, i32) {
    %c0_i32 = arith.constant 0 : i32
    %c0_i32_0 = arith.constant 0 : i32
    return %arg0, %c0_i32 : i32, i32
  }
  func.func @transform_1(%arg0: i32) -> (i32, i32) {
    %c0_i32 = arith.constant 0 : i32
    %c0_i32_0 = arith.constant 0 : i32
    %c0_i32_1 = arith.constant 0 : i32
    return %c0_i32, %c0_i32_0 : i32, i32
  }
  func.func @transform_2(%arg0: i32) -> (i32, i32) {
    %c0_i32 = arith.constant 0 : i32
    %c0_i32_0 = arith.constant 0 : i32
    %c0_i32_1 = arith.constant 0 : i32
    return %c0_i32, %c0_i32_0 : i32, i32
  }
  func.func @transform_3(%arg0: i32) -> (i32, i32) {
    %c0_i32 = arith.constant 0 : i32
    %c0_i32_0 = arith.constant 0 : i32
    return %arg0, %c0_i32 : i32, i32
  }
}

module attributes {stable_mosaic.version = 11 : i64} {
  func.func @matmul_tanh_kernel(%arg0: i32, %arg1: memref<512x288xbf16, #tpu.memory_space<vmem>>, %arg2: memref<288x4xbf16, #tpu.memory_space<vmem>>, %arg3: memref<512x4xf32, #tpu.memory_space<vmem>>) attributes {dimension_semantics = [#tpu.dimension_semantics<parallel>], iteration_bounds = array<i64: 1>, scalar_prefetch = 0 : i64, scratch_operands = 0 : i64, tpu.core_type = #tpu.core_type<tc>, window_params = [{transform_indices = @transform_0, window_bounds = array<i64: 512, 288>}, {pipeline_mode = #tpu.pipeline_mode<synchronous>, transform_indices = @transform_1, window_bounds = array<i64: 288, 4>}, {transform_indices = @transform_2, window_bounds = array<i64: 512, 4>}]} {
    %c0 = arith.constant 0 : index
    %c0_0 = arith.constant 0 : index
    %0 = vector.load %arg1[%c0, %c0_0] : memref<512x288xbf16, #tpu.memory_space<vmem>>, vector<512x288xbf16>
    %c0_1 = arith.constant 0 : index
    %c0_2 = arith.constant 0 : index
    %1 = vector.load %arg2[%c0_1, %c0_2] : memref<288x4xbf16, #tpu.memory_space<vmem>>, vector<288x4xbf16>
    %cst = arith.constant dense<0.000000e+00> : vector<512x4xf32>
    %2 = tpu.matmul %0, %1, %cst {dimension_numbers = #tpu.dot_dimension_numbers<[1], [0], [0], [1], [0, 0, 1, 1], [], []>} : vector<512x288xbf16>, vector<288x4xbf16>, vector<512x4xf32> -> vector<512x4xf32>
    %3 = math.tanh %2 : vector<512x4xf32>
    %c0_3 = arith.constant 0 : index
    %c0_4 = arith.constant 0 : index
    %4 = vector.load %arg3[%c0_3, %c0_4] : memref<512x4xf32, #tpu.memory_space<vmem>>, vector<512x4xf32>
    tpu.vector_store %arg3[%c0_3, %c0_4], %3 {strides = array<i32>} : memref<512x4xf32, #tpu.memory_space<vmem>>, vector<512x4xf32>,
    return
  }
  func.func @transform_0(%arg0: i32) -> (i32, i32) {
    %c0_i32 = arith.constant 0 : i32
    %c0_i32_0 = arith.constant 0 : i32
    return %arg0, %c0_i32 : i32, i32
  }
  func.func @transform_1(%arg0: i32) -> (i32, i32) {
    %c0_i32 = arith.constant 0 : i32
    %c0_i32_0 = arith.constant 0 : i32
    %c0_i32_1 = arith.constant 0 : i32
    return %c0_i32, %c0_i32_0 : i32, i32
  }
  func.func @transform_2(%arg0: i32) -> (i32, i32) {
    %c0_i32 = arith.constant 0 : i32
    %c0_i32_0 = arith.constant 0 : i32
    return %arg0, %c0_i32 : i32, i32
  }
}

</mosaic_0001>

<bundles_post_ra>
// kernel: tile.33
= control target key start
LH: loop header
LB: loop body
LE: loop exit
PB: predicated region body
PF: predicated region fallthrough
CT: control target
= control target key end

     0   :  { %s28_s0 = inlined_call_operand.vmem [shape: f32[128], index: 0, kind: input, shape index: {}]   ;;  %s29_s1 = inlined_call_operand.vmem [shape: f32[16,128], index: 1, kind: output, shape index: {}]  }
   0x1   :  { %v4_v0 = vld [vmem:[%s28_s0] ss:$0 sm:$0xff] }
   0x2   :  { %5 = vst [vmem:[%s29_s1] sm:$0xff] %v4_v0  ;;  %8 = vst [vmem:[%s29_s1 + $0x8] sm:$0xff] %v4_v0 }

// kernel: generator_forward.8
= control target key start
LH: loop header
LB: loop body
LE: loop exit
PB: predicated region body
PF: predicated region fallthrough
CT: control target
= control target key end

     0   :  { %v66_v0 = vlaneseq  ;;  %s772_s0 = inlined_call_operand.vmem [shape: bf16[16,2048], index: 0, kind: input, shape index: {}]   ;;  %s773_s1 = inlined_call_operand.vmem [shape: f32[1,2048], index: 1, kind: input, shape index: {}]   ;;  %s774_s2 = inlined_call_operand.vmem [shape: f32[1,2048], index: 2, kind: input, shape index: {}]   ;;  %s775_s3 = inlined_call_operand.vmem [shape: bf16[16,2048], index: 3, kind: output, shape index: {}]  }
   0x1   :  { %v14_v1 = vld [vmem:[%s772_s0] sm:$0xff]  ;;  %v15_v5 = vld [vmem:[%s772_s0 + $0x8] sm:$0xff]  ;;  %v16_v6 = vld [vmem:[%s772_s0 + $0x10] sm:$0xff] }
   0x2   :  { %v30_v2 = vunpack.c.l.bf16 %v14_v1  ;;  %v31_v3 = vunpack.c.h.bf16 %v14_v1  ;;  %v67_v4 = vshrl.u32 %v66_v0, 7  ;;  %v17_v7 = vld [vmem:[%s772_s0 + $0x18] sm:$0xff]  ;;  %v62_v8 = vld [vmem:[%s773_s1] sm:$0xff]  ;;  %v32_v10 = vunpack.c.l.bf16 %v15_v5  ;;  %v63_v55 = vld [vmem:[%s773_s1 + $0x8] sm:$0xff] }
   0x3   :  { %v178_v9 = vld [vmem:[%s774_s2] sm:$0xff]  ;;  %v33_v11 = vunpack.c.h.bf16 %v15_v5  ;;  %v34_v12 = vunpack.c.l.bf16 %v16_v6  ;;  %v35_v13 = vunpack.c.h.bf16 %v16_v6  ;;  %v36_v20 = vunpack.c.l.bf16 %v17_v7  ;;  %v179_v60 = vld [vmem:[%s774_s2 + $0x8] sm:$0xff] }
   0x4   :  { %v68_v14 = vsub.s32 0, %v67_v4  ;;  %v512_v15 = vsub.s32 1, %v67_v4  ;;  %v514_v16 = vsub.s32 2, %v67_v4  ;;  %v516_v17 = vsub.s32 3, %v67_v4  ;;  %v18_v54 = vld [vmem:[%s772_s0 + $0x20] sm:$0xff]  ;;  %v19_v1 = vld [vmem:[%s772_s0 + $0x28] sm:$0xff] }
   0x5   :  { %v518_v18 = vsub.s32 4, %v67_v4  ;;  %v520_v19 = vsub.s32 5, %v67_v4  ;;  %v37_v21 = vunpack.c.h.bf16 %v17_v7  ;;  %v566_v44 = vsub.s32 6, %v67_v4 }
   0x6   :  { %v522_v22 = vrot.slane %v62_v8, %v68_v14  ;;  %v525_v23 = vrot.slane %v62_v8, %v512_v15  ;;  %v527_v24 = vrot.slane %v178_v9, %v68_v14  ;;  %v530_v25 = vrot.slane %v178_v9, %v512_v15 }
   0x7   :  { %v533_v26 = vrot.slane %v62_v8, %v514_v16  ;;  %v536_v27 = vrot.slane %v62_v8, %v516_v17  ;;  %v539_v28 = vrot.slane %v178_v9, %v514_v16  ;;  %v542_v29 = vrot.slane %v178_v9, %v516_v17 }
   0x8   :  { %v146_v30 = vmul.f32 %v522_v22, %v30_v2  ;;  %v147_v31 = vmul.f32 %v525_v23, %v31_v3  ;;  %v547_v32 = vrot.slane %v62_v8, %v518_v18  ;;  %v550_v33 = vrot.slane %v62_v8, %v520_v19 }
   0x9   :  { %v148_v34 = vmul.f32 %v533_v26, %v32_v10  ;;  %v149_v35 = vmul.f32 %v536_v27, %v33_v11  ;;  %v555_v36 = vrot.slane %v178_v9, %v518_v18  ;;  %v558_v37 = vrot.slane %v178_v9, %v520_v19 }
   0xa   :  { %v262_v38 = vadd.f32 %v527_v24, %v146_v30  ;;  %v263_v39 = vadd.f32 %v530_v25, %v147_v31  ;;  %v150_v40 = vmul.f32 %v547_v32, %v34_v12  ;;  %v151_v41 = vmul.f32 %v550_v33, %v35_v13 }
   0xb   :  { %v264_v42 = vadd.f32 %v539_v28, %v148_v34  ;;  %v265_v43 = vadd.f32 %v542_v29, %v149_v35  ;;  %v568_v45 = vsub.s32 7, %v67_v4  ;;  %v573_v52 = vrot.slane %v62_v8, %v566_v44 }
   0xc   :  { %v294_v46 = vmax.f32 %v262_v38, 0.0  ;;  %v295_v47 = vmax.f32 %v263_v39, 0.0  ;;  %v266_v48 = vadd.f32 %v555_v36, %v150_v40  ;;  %v267_v49 = vadd.f32 %v558_v37, %v151_v41 }
   0xd   :  { %v296_v50 = vmax.f32 %v264_v42, 0.0  ;;  %v297_v51 = vmax.f32 %v265_v43, 0.0  ;;  %v576_v53 = vrot.slane %v62_v8, %v568_v45  ;;  %v585_v59 = vrot.slane %v178_v9, %v566_v44  ;;  %v21_v43 = vld [vmem:[%s772_s0 + $0x38] sm:$0xff] }
   0xe   :  { %v458_v56 = vpack.c.bf16 %v295_v47, %v294_v46  ;;  %v298_v57 = vmax.f32 %v266_v48, 0.0  ;;  %v299_v58 = vmax.f32 %v267_v49, 0.0  ;;  %v152_v62 = vmul.f32 %v573_v52, %v36_v20  ;;  %v20_v20 = vld [vmem:[%s772_s0 + $0x30] sm:$0xff] }
   0xf   :  { %v459_v61 = vpack.c.bf16 %v297_v51, %v296_v50  ;;  %v153_v63 = vmul.f32 %v576_v53, %v37_v21  ;;  %v593_v0 = vrot.slane %v178_v9, %v568_v45  ;;  %v38_v3 = vunpack.c.l.bf16 %v18_v54 }
  0x10   :  { %422 = vst [vmem:[%s775_s3] sm:$0xff] %v458_v56  ;;  %v460_v2 = vpack.c.bf16 %v299_v58, %v298_v57  ;;  %v39_v4 = vunpack.c.h.bf16 %v18_v54  ;;  %v601_v5 = vrot.slane %v63_v55, %v68_v14  ;;  %v268_v6 = vadd.f32 %v585_v59, %v152_v62 }
  0x11   :  { %423 = vst [vmem:[%s775_s3 + $0x8] sm:$0xff] %v459_v61  ;;  %v269_v7 = vadd.f32 %v593_v0, %v153_v63  ;;  %v609_v8 = vrot.slane %v63_v55, %v512_v15  ;;  %v611_v9 = vrot.slane %v179_v60, %v68_v14  ;;  %v618_v11 = vrot.slane %v179_v60, %v512_v15  ;;  %v22_v61 = vld [vmem:[%s772_s0 + $0x40] sm:$0xff] }
  0x12   :  { %424 = vst [vmem:[%s775_s3 + $0x10] sm:$0xff] %v460_v2  ;;  %v154_v10 = vmul.f32 %v601_v5, %v38_v3  ;;  %v40_v12 = vunpack.c.l.bf16 %v19_v1  ;;  %v41_v13 = vunpack.c.h.bf16 %v19_v1  ;;  %v300_v21 = vmax.f32 %v268_v6, 0.0 }
  0x13   :  { %v301_v30 = vmax.f32 %v269_v7, 0.0  ;;  %v155_v14 = vmul.f32 %v609_v8, %v39_v4  ;;  %v625_v31 = vrot.slane %v63_v55, %v514_v16  ;;  %v629_v35 = vrot.slane %v63_v55, %v516_v17 }
  0x14   :  { %v270_v34 = vadd.f32 %v611_v9, %v154_v10  ;;  %v632_v15 = vrot.slane %v179_v60, %v514_v16  ;;  %v635_v38 = vrot.slane %v179_v60, %v516_v17  ;;  %v42_v42 = vunpack.c.l.bf16 %v20_v20 }
  0x15   :  { %v461_v39 = vpack.c.bf16 %v301_v30, %v300_v21  ;;  %v271_v40 = vadd.f32 %v618_v11, %v155_v14  ;;  %v156_v41 = vmul.f32 %v625_v31, %v40_v12  ;;  %v157_v47 = vmul.f32 %v629_v35, %v41_v13 }
  0x16   :  { %v302_v46 = vmax.f32 %v270_v34, 0.0  ;;  %v43_v48 = vunpack.c.h.bf16 %v20_v20  ;;  %v644_v16 = vrot.slane %v63_v55, %v518_v18  ;;  %v651_v50 = vrot.slane %v63_v55, %v520_v19 }
  0x17   :  { %425 = vst [vmem:[%s775_s3 + $0x18] sm:$0xff] %v461_v39  ;;  %v303_v17 = vmax.f32 %v271_v40, 0.0  ;;  %v272_v49 = vadd.f32 %v632_v15, %v156_v41  ;;  %v654_v51 = vrot.slane %v179_v60, %v518_v18  ;;  %v273_v54 = vadd.f32 %v635_v38, %v157_v47 }
  0x18   :  { %v158_v56 = vmul.f32 %v644_v16, %v42_v42  ;;  %v659_v57 = vrot.slane %v179_v60, %v520_v19  ;;  %v44_v58 = vunpack.c.l.bf16 %v21_v43  ;;  %v159_v1 = vmul.f32 %v651_v50, %v43_v48  ;;  %v23_v19 = vld [vmem:[%s772_s0 + $0x48] sm:$0xff] }
  0x19   :  { %v462_v62 = vpack.c.bf16 %v303_v17, %v302_v46  ;;  %v304_v63 = vmax.f32 %v272_v49, 0.0  ;;  %v45_v2 = vunpack.c.h.bf16 %v21_v43  ;;  %v305_v3 = vmax.f32 %v273_v54, 0.0 }
  0x1a   :  { %v274_v18 = vadd.f32 %v654_v51, %v158_v56  ;;  %v667_v4 = vrot.slane %v63_v55, %v566_v44  ;;  %v670_v6 = vrot.slane %v63_v55, %v568_v45  ;;  %v275_v7 = vadd.f32 %v659_v57, %v159_v1  ;;  %v24_v55 = vld [vmem:[%s772_s0 + $0x50] sm:$0xff] }
  0x1b   :  { %426 = vst [vmem:[%s775_s3 + $0x20] sm:$0xff] %v462_v62  ;;  %v680_v10 = vrot.slane %v179_v60, %v566_v44  ;;  %v683_v12 = vrot.slane %v179_v60, %v568_v45  ;;  %v46_v13 = vunpack.c.l.bf16 %v22_v61  ;;  %v463_v20 = vpack.c.bf16 %v305_v3, %v304_v63 }
  0x1c   :  { %v306_v21 = vmax.f32 %v274_v18, 0.0  ;;  %v160_v30 = vmul.f32 %v667_v4, %v44_v58  ;;  %v161_v14 = vmul.f32 %v670_v6, %v45_v2  ;;  %v307_v34 = vmax.f32 %v275_v7, 0.0 }
  0x1d   :  { %v47_v39 = vunpack.c.h.bf16 %v22_v61  ;;  %v162_v40 = vmul.f32 %v522_v22, %v46_v13  ;;  %v48_v44 = vunpack.c.l.bf16 %v23_v19  ;;  %427 = vst [vmem:[%s775_s3 + $0x28] sm:$0xff] %v463_v20  ;;  %v49_v41 = vunpack.c.h.bf16 %v23_v19  ;;  %v25_v22 = vld [vmem:[%s772_s0 + $0x58] sm:$0xff]  ;;  %v26_v61 = vld [vmem:[%s772_s0 + $0x60] sm:$0xff]  ;;  %v28_v20 = vld [vmem:[%s772_s0 + $0x70] sm:$0xff] }
  0x1e   :  { %v276_v45 = vadd.f32 %v680_v10, %v160_v30  ;;  %v277_v60 = vadd.f32 %v683_v12, %v161_v14  ;;  %v50_v42 = vunpack.c.l.bf16 %v24_v55  ;;  %v464_v43 = vpack.c.bf16 %v307_v34, %v306_v21 }
  0x1f   :  { %v163_v46 = vmul.f32 %v525_v23, %v47_v39  ;;  %v278_v47 = vadd.f32 %v527_v24, %v162_v40  ;;  %v164_v48 = vmul.f32 %v533_v26, %v48_v44  ;;  %v165_v54 = vmul.f32 %v536_v27, %v49_v41  ;;  %v29_v40 = vld [vmem:[%s772_s0 + $0x78] sm:$0xff] }
  0x20   :  { %v308_v17 = vmax.f32 %v276_v45, 0.0  ;;  %v309_v49 = vmax.f32 %v277_v60, 0.0  ;;  %v51_v56 = vunpack.c.h.bf16 %v24_v55  ;;  %428 = vst [vmem:[%s775_s3 + $0x30] sm:$0xff] %v464_v43  ;;  %v166_v26 = vmul.f32 %v547_v32, %v50_v42 }
  0x21   :  { %v279_v58 = vadd.f32 %v530_v25, %v163_v46  ;;  %v310_v23 = vmax.f32 %v278_v47, 0.0  ;;  %v280_v24 = vadd.f32 %v539_v28, %v164_v48  ;;  %v281_v63 = vadd.f32 %v542_v29, %v165_v54  ;;  %v27_v29 = vld [vmem:[%s772_s0 + $0x68] sm:$0xff] }
  0x22   :  { %v465_v62 = vpack.c.bf16 %v309_v49, %v308_v17  ;;  %v167_v27 = vmul.f32 %v550_v33, %v51_v56  ;;  %v52_v1 = vunpack.c.l.bf16 %v25_v22  ;;  %v282_v18 = vadd.f32 %v555_v36, %v166_v26 }
  0x23   :  { %v311_v2 = vmax.f32 %v279_v58, 0.0  ;;  %v312_v3 = vmax.f32 %v280_v24, 0.0  ;;  %v53_v25 = vunpack.c.h.bf16 %v25_v22  ;;  %v313_v28 = vmax.f32 %v281_v63, 0.0 }
  0x24   :  { %429 = vst [vmem:[%s775_s3 + $0x38] sm:$0xff] %v465_v62  ;;  %v283_v32 = vadd.f32 %v558_v37, %v167_v27  ;;  %v168_v19 = vmul.f32 %v573_v52, %v52_v1  ;;  %v54_v7 = vunpack.c.l.bf16 %v26_v61  ;;  %v314_v13 = vmax.f32 %v282_v18, 0.0 }
  0x25   :  { %v466_v33 = vpack.c.bf16 %v311_v2, %v310_v23  ;;  %v169_v55 = vmul.f32 %v576_v53, %v53_v25  ;;  %v55_v36 = vunpack.c.h.bf16 %v26_v61  ;;  %v467_v21 = vpack.c.bf16 %v313_v28, %v312_v3 }
  0x26   :  { %v315_v30 = vmax.f32 %v283_v32, 0.0  ;;  %v284_v37 = vadd.f32 %v585_v59, %v168_v19  ;;  %v170_v52 = vmul.f32 %v601_v5, %v54_v7  ;;  %v56_v53 = vunpack.c.l.bf16 %v27_v29 }
  0x27   :  { %430 = vst [vmem:[%s775_s3 + $0x40] sm:$0xff] %v466_v33  ;;  %v285_v14 = vadd.f32 %v593_v0, %v169_v55  ;;  %v171_v34 = vmul.f32 %v609_v8, %v55_v36  ;;  %v57_v39 = vunpack.c.h.bf16 %v27_v29  ;;  %431 = vst [vmem:[%s775_s3 + $0x48] sm:$0xff] %v467_v21  ;;  %v58_v45 = vunpack.c.l.bf16 %v28_v20 }
  0x28   :  { %v468_v59 = vpack.c.bf16 %v315_v30, %v314_v13  ;;  %v316_v5 = vmax.f32 %v284_v37, 0.0  ;;  %v286_v44 = vadd.f32 %v611_v9, %v170_v52  ;;  %v172_v8 = vmul.f32 %v625_v31, %v56_v53 }
  0x29   :  { %v317_v60 = vmax.f32 %v285_v14, 0.0  ;;  %v287_v0 = vadd.f32 %v618_v11, %v171_v34  ;;  %v173_v41 = vmul.f32 %v629_v35, %v57_v39  ;;  %v59_v43 = vunpack.c.h.bf16 %v28_v20 }
  0x2a   :  { %432 = vst [vmem:[%s775_s3 + $0x50] sm:$0xff] %v468_v59  ;;  %v318_v42 = vmax.f32 %v286_v44, 0.0  ;;  %v174_v46 = vmul.f32 %v644_v16, %v58_v45  ;;  %v60_v47 = vunpack.c.l.bf16 %v29_v40  ;;  %v288_v9 = vadd.f32 %v632_v15, %v172_v8 }
  0x2b   :  { %v469_v48 = vpack.c.bf16 %v317_v60, %v316_v5  ;;  %v319_v22 = vmax.f32 %v287_v0, 0.0  ;;  %v289_v17 = vadd.f32 %v635_v38, %v173_v41  ;;  %v175_v11 = vmul.f32 %v651_v50, %v59_v43 }
  0x2c   :  { %v290_v31 = vadd.f32 %v654_v51, %v174_v46  ;;  %v61_v35 = vunpack.c.h.bf16 %v29_v40  ;;  %v176_v49 = vmul.f32 %v667_v4, %v60_v47  ;;  %v320_v16 = vmax.f32 %v288_v9, 0.0 }
  0x2d   :  { %433 = vst [vmem:[%s775_s3 + $0x58] sm:$0xff] %v469_v48  ;;  %v470_v54 = vpack.c.bf16 %v319_v22, %v318_v42  ;;  %v321_v56 = vmax.f32 %v289_v17, 0.0  ;;  %v291_v58 = vadd.f32 %v659_v57, %v175_v11 }
  0x2e   :  { %v322_v23 = vmax.f32 %v290_v31, 0.0  ;;  %v177_v15 = vmul.f32 %v670_v6, %v61_v35  ;;  %v292_v38 = vadd.f32 %v680_v10, %v176_v49 }
  0x2f   :  { %434 = vst [vmem:[%s775_s3 + $0x60] sm:$0xff] %v470_v54  ;;  %v471_v50 = vpack.c.bf16 %v321_v56, %v320_v16  ;;  %v323_v51 = vmax.f32 %v291_v58, 0.0 }
  0x30   :  { %v293_v4 = vadd.f32 %v683_v12, %v177_v15  ;;  %v324_v24 = vmax.f32 %v292_v38, 0.0 }
  0x31   :  { %435 = vst [vmem:[%s775_s3 + $0x68] sm:$0xff] %v471_v50  ;;  %v472_v26 = vpack.c.bf16 %v323_v51, %v322_v23 }
  0x32   :  { %v325_v57 = vmax.f32 %v293_v4, 0.0 }
  0x33   :  { %436 = vst [vmem:[%s775_s3 + $0x70] sm:$0xff] %v472_v26 }
  0x34   :  { %v473_v6 = vpack.c.bf16 %v325_v57, %v324_v24 }
  0x36   :  { %437 = vst [vmem:[%s775_s3 + $0x78] sm:$0xff] %v473_v6 }

// kernel: tile.43
= control target key start
LH: loop header
LB: loop body
LE: loop exit
PB: predicated region body
PF: predicated region fallthrough
CT: control target
= control target key end

     0   :  { %s22_s0 = inlined_call_operand.vmem [shape: f32[64], index: 0, kind: input, shape index: {}]   ;;  %s23_s1 = inlined_call_operand.vmem [shape: f32[4,64], index: 1, kind: output, shape index: {}]  }
   0x1   :  { %v4_v0 = vld [vmem:[%s22_s0] ss:$0 sm:$0xff] }
   0x2   :  { %5 = vst [vmem:[%s23_s1] sm:$0xf] %v4_v0 }

// kernel: tile.44
= control target key start
LH: loop header
LB: loop body
LE: loop exit
PB: predicated region body
PF: predicated region fallthrough
CT: control target
= control target key end

     0   :  { %s6_s8 = smov 3  ;;  %vm8_vm0 = vcmask 523264   ;;  %s30_s9 = smov 64   ;;  %vm15_vm1 = vcmask 1048064   ;;  %s50_s0 = inlined_call_operand.vmem [shape: f32[4,64], index: 0, kind: input, shape index: {}]   ;;  %s51_s1 = inlined_call_operand.vmem [shape: f32[1,256], index: 1, kind: output, shape index: {}]  }
   0x1   :  { %v4_v0 = vld [vmem:[%s50_s0] sm:$0xf]  ;;  %s11_s0 = smov 3 }
   0x2   :  { %5 = vst [vmem:[#allocation1] sm:$0xf] %v4_v0 }
   0x9   :  { %v12_v1 = vld [vmem:[#allocation1 + $0x1] ss:$2 sm:%s11_s0]   ;;  %v7_v2 = vld [vmem:[#allocation1] ss:$2 sm:%s6_s8]  }
   0xa   :  { %13 = vrot.lane.b32.xlu0 %v12_v1, %s30_s9  ;;  %9 = vst.msk [vmem:[#allocation0] ss:$8 sm:$0x3] %vm8_vm0, %v7_v2  }
  0x7c   :  { %v14_v3 = vpop.permute.xlu0 %13  }
  0x7d   :  { %16 = vst.msk [vmem:[#allocation0] ss:$8 sm:$0x3] %vm15_vm1, %v14_v3  }
  0x84   :  { %v20_v4 = vld [vmem:[#allocation0] sm:$0x1]  ;;  %v24_v5 = vld [vmem:[#allocation0 + $0x8] sm:$0x1] }
  0x85   :  { %22 = vst [vmem:[%s51_s1] sm:$0x1] %v20_v4  ;;  %28 = vst [vmem:[%s51_s1 + $0x1] sm:$0x1] %v24_v5 }

// kernel: generator_forward.7
= control target key start
LH: loop header
LB: loop body
LE: loop exit
PB: predicated region body
PF: predicated region fallthrough
CT: control target
= control target key end

     0   :  { %9 = vsyncpa [#allocation3], 0  ;;  %s1978_s12 = smov [#allocation2]   ;;  %s2207_s0 = inlined_call_operand.vmem [shape: bf16[16,128], index: 0, kind: input, shape index: {}]   ;;  %s2208_s1 = inlined_call_operand.hbm [shape: bf16[128,2048], index: 1, kind: input, shape index: {}]   ;;  %s2209_s2 = inlined_call_operand.vmem [shape: bf16[16,2048], index: 2, kind: output, shape index: {0}]   ;;  %s2210_s3 = inlined_call_operand.vmem [shape: f32[2,2048], index: 3, kind: output, shape index: {1}]  }
   0x1   :  { %s17_s13 = sshll.u32 %s1978_s12, 4  ;;  %s1954_s16 = scalar_lea.hbm %s2208_s1, 16384  ;;  %s18_s13 = int_to_ptr.vmem [resolvable:$true] %s17_s13 }
   0x2   :  { %p1955_p0 = scmp.ne.s32.totalorder %s2208_s1, %s1954_s16  ;;  %p1958_p1 = scmp.lt.u32.totalorder %s1954_s16, %s2208_s1 }
   0x4   :  { %p1960_p2 = pnand %p1958_p1, %p1955_p0 }
   0x6   :  { %1963 = shalt.err (!%p1960_p2)
}
   0x7   :  { %s1964_s21 = scalar_lea.vmem %s18_s13, 16384  ;;  %p1969_p4 = scmp.lt.s32.totalorder %s18_s13, %s18_s13 }
   0x8   :  { %p1965_p3 = scmp.ne.s32.totalorder %s18_s13, %s1964_s21  ;;  %p1970_p5 = scmp.lt.s32.totalorder %s1964_s21, %s1964_s21 }
   0xa   :  { %p1971_p6 = por %p1970_p5, %p1969_p4 }
   0xc   :  { %p1972_p7 = pnand %p1971_p6, %p1965_p3 }
   0xe   :  { %1975 = shalt.err (!%p1972_p7)
}
   0xf   :  { %s1979_s22 = smov 1024   ;;  %s1980_s23 = smov 64  }
  0x10   :  { %23 = dma.hbm_to_vmem [thread:$0]  %s2208_s1, 16384, %s18_s13, [#allocation3], %s1979_s22, %s1979_s22, %s1980_s23  }
  0x11   :  { %1976 = dma.done.wait [#allocation3], 16384  }
  0x12   :  { %1977 = vsyncadd [#allocation3], 4294950912  ;;  %v1981_v0 = vmov 0   ;;  %v38_v1 = vld [vmem:[#allocation2] sm:$0xff]  ;;  %v39_v3 = vld [vmem:[#allocation2 + $0x8] sm:$0xff] }
  0x13   :  { %844 = vmatprep.mubr.bf16.mxu0 %v1981_v0  ;;  %887 = vmatprep.mubr.bf16.mxu1 %v1981_v0  ;;  %v46_v2 = vld [vmem:[#allocation2 + $0x40] sm:$0xff]  ;;  %v47_v5 = vld [vmem:[#allocation2 + $0x48] sm:$0xff]  ;;  %v40_v63 = vld [vmem:[#allocation2 + $0x10] sm:$0xff] }
  0x14   :  { %v1782_v4 = vcombine.high %v38_v1, %v46_v2  ;;  %v1781_v6 = vcombine.low %v38_v1, %v46_v2  ;;  %v54_v7 = vld [vmem:[#allocation2 + $0x80] sm:$0xff]  ;;  %v1784_v9 = vcombine.high %v39_v3, %v47_v5  ;;  %v1783_v10 = vcombine.low %v39_v3, %v47_v5  ;;  %v55_v12 = vld [vmem:[#allocation2 + $0x88] sm:$0xff]  ;;  %v48_v1 = vld [vmem:[#allocation2 + $0x50] sm:$0xff] }
  0x15   :  { %v62_v8 = vld [vmem:[#allocation2 + $0xc0] sm:$0xff]  ;;  %v63_v13 = vld [vmem:[#allocation2 + $0xc8] sm:$0xff]  ;;  %v41_v2 = vld [vmem:[#allocation2 + $0x18] sm:$0xff] }
  0x16   :  { %v1798_v11 = vcombine.high %v54_v7, %v62_v8  ;;  %v70_v14 = vld [vmem:[#allocation2 + $0x100] sm:$0xff]  ;;  %812 = vmatprep.subr.bf16.mxu0 %v1782_v4  ;;  %v1800_v15 = vcombine.high %v55_v12, %v63_v13  ;;  %v71_v17 = vld [vmem:[#allocation2 + $0x108] sm:$0xff]  ;;  %855 = vmatprep.subr.bf16.mxu1 %v1784_v9  ;;  %v1797_v19 = vcombine.low %v54_v7, %v62_v8  ;;  %v49_v3 = vld [vmem:[#allocation2 + $0x58] sm:$0xff] }
  0x17   :  { %v78_v16 = vld [vmem:[#allocation2 + $0x140] sm:$0xff]  ;;  %v79_v18 = vld [vmem:[#allocation2 + $0x148] sm:$0xff]  ;;  %813 = vmatpush1.bf16.msra.mxu0 %v1781_v6  ;;  %856 = vmatpush1.bf16.msra.mxu1 %v1783_v10  ;;  %v1799_v20 = vcombine.low %v55_v12, %v63_v13  ;;  %v1786_v6 = vcombine.high %v40_v63, %v48_v1  ;;  %v1788_v7 = vcombine.high %v41_v2, %v49_v3  ;;  %v56_v8 = vld [vmem:[#allocation2 + $0x90] sm:$0xff] }
  0x18   :  { %814 = vmatprep.subr.bf16.mxu0 %v1798_v11  ;;  %v1814_v21 = vcombine.high %v70_v14, %v78_v16  ;;  %857 = vmatprep.subr.bf16.mxu1 %v1800_v15  ;;  %v1816_v22 = vcombine.high %v71_v17, %v79_v18  ;;  %v86_v23 = vld [vmem:[#allocation2 + $0x180] sm:$0xff]  ;;  %v87_v25 = vld [vmem:[#allocation2 + $0x188] sm:$0xff]  ;;  %v1813_v27 = vcombine.low %v70_v14, %v78_v16  ;;  %v64_v9 = vld [vmem:[#allocation2 + $0xd0] sm:$0xff] }
  0x19   :  { %v94_v24 = vld [vmem:[#allocation2 + $0x1c0] sm:$0xff]  ;;  %v95_v26 = vld [vmem:[#allocation2 + $0x1c8] sm:$0xff]  ;;  %v1815_v28 = vcombine.low %v71_v17, %v79_v18  ;;  %v57_v11 = vld [vmem:[#allocation2 + $0x98] sm:$0xff]  ;;  %v1785_v13 = vcombine.low %v40_v63, %v48_v1  ;;  %v1787_v14 = vcombine.low %v41_v2, %v49_v3  ;;  %v1802_v15 = vcombine.high %v56_v8, %v64_v9 }
  0x1a   :  { %v1830_v29 = vcombine.high %v86_v23, %v94_v24  ;;  %v1832_v30 = vcombine.high %v87_v25, %v95_v26  ;;  %v102_v31 = vld [vmem:[#allocation2 + $0x200] sm:$0xff]  ;;  %v103_v33 = vld [vmem:[#allocation2 + $0x208] sm:$0xff]  ;;  %v1829_v35 = vcombine.low %v86_v23, %v94_v24  ;;  %v1831_v36 = vcombine.low %v87_v25, %v95_v26  ;;  %v65_v12 = vld [vmem:[#allocation2 + $0xd8] sm:$0xff] }
  0x1b   :  { %815 = vmatpush1.bf16.msra.mxu0 %v1797_v19  ;;  %858 = vmatpush1.bf16.msra.mxu1 %v1799_v20  ;;  %v110_v32 = vld [vmem:[#allocation2 + $0x240] sm:$0xff]  ;;  %v111_v34 = vld [vmem:[#allocation2 + $0x248] sm:$0xff]  ;;  %v1804_v16 = vcombine.high %v57_v11, %v65_v12  ;;  %v72_v17 = vld [vmem:[#allocation2 + $0x110] sm:$0xff] }
  0x1c   :  { %816 = vmatprep.subr.bf16.mxu0 %v1814_v21  ;;  %859 = vmatprep.subr.bf16.mxu1 %v1816_v22  ;;  %v1846_v37 = vcombine.high %v102_v31, %v110_v32  ;;  %v1848_v38 = vcombine.high %v103_v33, %v111_v34  ;;  %v118_v39 = vld [vmem:[#allocation2 + $0x280] sm:$0xff]  ;;  %v119_v41 = vld [vmem:[#allocation2 + $0x288] sm:$0xff]  ;;  %v1845_v43 = vcombine.low %v102_v31, %v110_v32  ;;  %v80_v18 = vld [vmem:[#allocation2 + $0x150] sm:$0xff] }
  0x1d   :  { %v126_v40 = vld [vmem:[#allocation2 + $0x2c0] sm:$0xff]  ;;  %v127_v42 = vld [vmem:[#allocation2 + $0x2c8] sm:$0xff]  ;;  %v1847_v44 = vcombine.low %v103_v33, %v111_v34  ;;  %v73_v19 = vld [vmem:[#allocation2 + $0x118] sm:$0xff]  ;;  %v1801_v21 = vcombine.low %v56_v8, %v64_v9  ;;  %v1803_v22 = vcombine.low %v57_v11, %v65_v12  ;;  %v1818_v23 = vcombine.high %v72_v17, %v80_v18 }
  0x1e   :  { %v1862_v45 = vcombine.high %v118_v39, %v126_v40  ;;  %v1864_v46 = vcombine.high %v119_v41, %v127_v42  ;;  %v134_v47 = vld [vmem:[#allocation2 + $0x300] sm:$0xff]  ;;  %v135_v49 = vld [vmem:[#allocation2 + $0x308] sm:$0xff]  ;;  %v1861_v51 = vcombine.low %v118_v39, %v126_v40  ;;  %v1863_v52 = vcombine.low %v119_v41, %v127_v42  ;;  %v81_v20 = vld [vmem:[#allocation2 + $0x158] sm:$0xff] }
  0x1f   :  { %817 = vmatpush1.bf16.msra.mxu0 %v1813_v27  ;;  %860 = vmatpush1.bf16.msra.mxu1 %v1815_v28  ;;  %v142_v48 = vld [vmem:[#allocation2 + $0x340] sm:$0xff]  ;;  %v143_v50 = vld [vmem:[#allocation2 + $0x348] sm:$0xff]  ;;  %v1820_v24 = vcombine.high %v73_v19, %v81_v20  ;;  %v88_v25 = vld [vmem:[#allocation2 + $0x190] sm:$0xff] }
  0x20   :  { %818 = vmatprep.subr.bf16.mxu0 %v1830_v29  ;;  %861 = vmatprep.subr.bf16.mxu1 %v1832_v30  ;;  %v1878_v53 = vcombine.high %v134_v47, %v142_v48  ;;  %v1880_v54 = vcombine.high %v135_v49, %v143_v50  ;;  %v150_v55 = vld [vmem:[#allocation2 + $0x380] sm:$0xff]  ;;  %v151_v57 = vld [vmem:[#allocation2 + $0x388] sm:$0xff]  ;;  %v1877_v59 = vcombine.low %v134_v47, %v142_v48  ;;  %v96_v26 = vld [vmem:[#allocation2 + $0x1d0] sm:$0xff] }
  0x21   :  { %v158_v56 = vld [vmem:[#allocation2 + $0x3c0] sm:$0xff]  ;;  %v159_v58 = vld [vmem:[#allocation2 + $0x3c8] sm:$0xff]  ;;  %v1879_v60 = vcombine.low %v135_v49, %v143_v50  ;;  %v89_v27 = vld [vmem:[#allocation2 + $0x198] sm:$0xff]  ;;  %v1817_v29 = vcombine.low %v72_v17, %v80_v18  ;;  %v1819_v30 = vcombine.low %v73_v19, %v81_v20  ;;  %v1834_v31 = vcombine.high %v88_v25, %v96_v26 }
  0x22   :  { %v1894_v61 = vcombine.high %v150_v55, %v158_v56  ;;  %v1896_v62 = vcombine.high %v151_v57, %v159_v58  ;;  %v1893_v4 = vcombine.low %v150_v55, %v158_v56  ;;  %v1895_v5 = vcombine.low %v151_v57, %v159_v58  ;;  %v2021_v10 = vld [vmem:[%s2207_s0] sm:$0xff]   ;;  %v97_v28 = vld [vmem:[#allocation2 + $0x1d8] sm:$0xff]  ;;  %v104_v33 = vld [vmem:[#allocation2 + $0x210] sm:$0xff] }
  0x23   :  { %819 = vmatpush1.bf16.msra.mxu0 %v1829_v35  ;;  %862 = vmatpush1.bf16.msra.mxu1 %v1831_v36  ;;  %v1836_v32 = vcombine.high %v89_v27, %v97_v28  ;;  %v112_v34 = vld [vmem:[#allocation2 + $0x250] sm:$0xff]  ;;  %v105_v35 = vld [vmem:[#allocation2 + $0x218] sm:$0xff]  ;;  %v42_v2 = vld [vmem:[#allocation2 + $0x20] sm:$0xff] }
  0x24   :  { %820 = vmatprep.subr.bf16.mxu0 %v1846_v37  ;;  %863 = vmatprep.subr.bf16.mxu1 %v1848_v38  ;;  %v113_v36 = vld [vmem:[#allocation2 + $0x258] sm:$0xff]  ;;  %v1833_v37 = vcombine.low %v88_v25, %v96_v26  ;;  %v1835_v38 = vcombine.low %v89_v27, %v97_v28  ;;  %v1850_v39 = vcombine.high %v104_v33, %v112_v34  ;;  %v120_v41 = vld [vmem:[#allocation2 + $0x290] sm:$0xff]  ;;  %v50_v3 = vld [vmem:[#allocation2 + $0x60] sm:$0xff] }
  0x25   :  { %v1852_v40 = vcombine.high %v105_v35, %v113_v36  ;;  %v128_v42 = vld [vmem:[#allocation2 + $0x2d0] sm:$0xff]  ;;  %v1790_v8 = vcombine.high %v42_v2, %v50_v3  ;;  %v58_v11 = vld [vmem:[#allocation2 + $0xa0] sm:$0xff] }
  0x26   :  { %v1866_v47 = vcombine.high %v120_v41, %v128_v42  ;;  %v136_v49 = vld [vmem:[#allocation2 + $0x310] sm:$0xff]  ;;  %v66_v12 = vld [vmem:[#allocation2 + $0xe0] sm:$0xff] }
  0x27   :  { %821 = vmatpush1.bf16.msra.mxu0 %v1845_v43  ;;  %864 = vmatpush1.bf16.msra.mxu1 %v1847_v44  ;;  %v121_v43 = vld [vmem:[#allocation2 + $0x298] sm:$0xff]  ;;  %v144_v50 = vld [vmem:[#allocation2 + $0x350] sm:$0xff]  ;;  %v1806_v17 = vcombine.high %v58_v11, %v66_v12  ;;  %v74_v19 = vld [vmem:[#allocation2 + $0x120] sm:$0xff] }
  0x28   :  { %822 = vmatprep.subr.bf16.mxu0 %v1862_v45  ;;  %865 = vmatprep.subr.bf16.mxu1 %v1864_v46  ;;  %v129_v44 = vld [vmem:[#allocation2 + $0x2d8] sm:$0xff]  ;;  %v1849_v45 = vcombine.low %v104_v33, %v112_v34  ;;  %v1851_v46 = vcombine.low %v105_v35, %v113_v36  ;;  %v1882_v55 = vcombine.high %v136_v49, %v144_v50  ;;  %v152_v57 = vld [vmem:[#allocation2 + $0x390] sm:$0xff]  ;;  %v82_v20 = vld [vmem:[#allocation2 + $0x160] sm:$0xff] }
  0x29   :  { %v1868_v48 = vcombine.high %v121_v43, %v129_v44  ;;  %v160_v58 = vld [vmem:[#allocation2 + $0x3d0] sm:$0xff]  ;;  %v1822_v25 = vcombine.high %v74_v19, %v82_v20  ;;  %v90_v27 = vld [vmem:[#allocation2 + $0x1a0] sm:$0xff] }
  0x2a   :  { %v1898_v63 = vcombine.high %v152_v57, %v160_v58  ;;  %v98_v28 = vld [vmem:[#allocation2 + $0x1e0] sm:$0xff] }
  0x2b   :  { %823 = vmatpush1.bf16.msra.mxu0 %v1861_v51  ;;  %866 = vmatpush1.bf16.msra.mxu1 %v1863_v52  ;;  %v137_v51 = vld [vmem:[#allocation2 + $0x318] sm:$0xff]  ;;  %v1838_v33 = vcombine.high %v90_v27, %v98_v28  ;;  %v106_v35 = vld [vmem:[#allocation2 + $0x220] sm:$0xff] }
  0x2c   :  { %824 = vmatprep.subr.bf16.mxu0 %v1878_v53  ;;  %867 = vmatprep.subr.bf16.mxu1 %v1880_v54  ;;  %v145_v52 = vld [vmem:[#allocation2 + $0x358] sm:$0xff]  ;;  %v1865_v53 = vcombine.low %v120_v41, %v128_v42  ;;  %v1867_v54 = vcombine.low %v121_v43, %v129_v44  ;;  %v114_v36 = vld [vmem:[#allocation2 + $0x260] sm:$0xff] }
  0x2d   :  { %v1884_v56 = vcombine.high %v137_v51, %v145_v52  ;;  %v1854_v41 = vcombine.high %v106_v35, %v114_v36  ;;  %v122_v43 = vld [vmem:[#allocation2 + $0x2a0] sm:$0xff] }
  0x2e   :  { %v130_v44 = vld [vmem:[#allocation2 + $0x2e0] sm:$0xff] }
  0x2f   :  { %825 = vmatpush1.bf16.msra.mxu0 %v1877_v59  ;;  %868 = vmatpush1.bf16.msra.mxu1 %v1879_v60  ;;  %v153_v59 = vld [vmem:[#allocation2 + $0x398] sm:$0xff] }
  0x30   :  { %826 = vmatprep.subr.bf16.mxu0 %v1894_v61  ;;  %869 = vmatprep.subr.bf16.mxu1 %v1896_v62  ;;  %v161_v60 = vld [vmem:[#allocation2 + $0x3d8] sm:$0xff]  ;;  %v1881_v61 = vcombine.low %v136_v49, %v144_v50  ;;  %v1883_v62 = vcombine.low %v137_v51, %v145_v52  ;;  %v1870_v49 = vcombine.high %v122_v43, %v130_v44  ;;  %v138_v51 = vld [vmem:[#allocation2 + $0x320] sm:$0xff] }
  0x31   :  { %v1900_v1 = vcombine.high %v153_v59, %v161_v60  ;;  %v146_v52 = vld [vmem:[#allocation2 + $0x360] sm:$0xff] }
  0x33   :  { %827 = vmatpush1.bf16.msra.mxu0 %v1893_v4  ;;  %870 = vmatpush1.bf16.msra.mxu1 %v1895_v5  ;;  %v43_v4 = vld [vmem:[#allocation2 + $0x28] sm:$0xff] }
  0x34   :  { %898 = vmatprep.subr.bf16.mxu0 %v1786_v6  ;;  %941 = vmatprep.subr.bf16.mxu1 %v1788_v7  ;;  %v51_v5 = vld [vmem:[#allocation2 + $0x68] sm:$0xff]  ;;  %v1897_v6 = vcombine.low %v152_v57, %v160_v58  ;;  %v1899_v7 = vcombine.low %v153_v59, %v161_v60  ;;  %v1886_v57 = vcombine.high %v138_v51, %v146_v52  ;;  %v154_v59 = vld [vmem:[#allocation2 + $0x3a0] sm:$0xff] }
  0x35   :  { %v1792_v9 = vcombine.high %v43_v4, %v51_v5  ;;  %v162_v60 = vld [vmem:[#allocation2 + $0x3e0] sm:$0xff] }
  0x36   :  { %845 = vmatmul.mubr.bf16.vlgmr.msra.gmra.mrb[0].mxu0 %v2021_v10  ;;  %888 = vmatmul.mubr.bf16.vlgmr.msra.gmra.mrb[0].mxu1 %v2021_v10 }
  0x37   :  { %899 = vmatpush1.bf16.msra.mxu0 %v1785_v13  ;;  %942 = vmatpush1.bf16.msra.mxu1 %v1787_v14  ;;  %v59_v13 = vld [vmem:[#allocation2 + $0xa8] sm:$0xff] }
  0x38   :  { %900 = vmatprep.subr.bf16.mxu0 %v1802_v15  ;;  %943 = vmatprep.subr.bf16.mxu1 %v1804_v16  ;;  %v67_v14 = vld [vmem:[#allocation2 + $0xe8] sm:$0xff]  ;;  %v1789_v15 = vcombine.low %v42_v2, %v50_v3  ;;  %v1791_v16 = vcombine.low %v43_v4, %v51_v5  ;;  %v1902_v2 = vcombine.high %v154_v59, %v162_v60  ;;  %v44_v4 = vld [vmem:[#allocation2 + $0x30] sm:$0xff] }
  0x39   :  { %930 = vmatprep.mubr.bf16.mxu0 %v1981_v0  ;;  %973 = vmatprep.mubr.bf16.mxu1 %v1981_v0  ;;  %v1808_v18 = vcombine.high %v59_v13, %v67_v14  ;;  %v52_v5 = vld [vmem:[#allocation2 + $0x70] sm:$0xff] }
  0x3b   :  { %901 = vmatpush1.bf16.msra.mxu0 %v1801_v21  ;;  %944 = vmatpush1.bf16.msra.mxu1 %v1803_v22  ;;  %v75_v21 = vld [vmem:[#allocation2 + $0x128] sm:$0xff] }
  0x3c   :  { %902 = vmatprep.subr.bf16.mxu0 %v1818_v23  ;;  %945 = vmatprep.subr.bf16.mxu1 %v1820_v24  ;;  %v83_v22 = vld [vmem:[#allocation2 + $0x168] sm:$0xff]  ;;  %v1805_v23 = vcombine.low %v58_v11, %v66_v12  ;;  %v1807_v24 = vcombine.low %v59_v13, %v67_v14  ;;  %v1794_v11 = vcombine.high %v44_v4, %v52_v5  ;;  %v60_v13 = vld [vmem:[#allocation2 + $0xb0] sm:$0xff] }
  0x3d   :  { %v1824_v26 = vcombine.high %v75_v21, %v83_v22  ;;  %v68_v14 = vld [vmem:[#allocation2 + $0xf0] sm:$0xff] }
  0x3f   :  { %903 = vmatpush1.bf16.msra.mxu0 %v1817_v29  ;;  %946 = vmatpush1.bf16.msra.mxu1 %v1819_v30  ;;  %v91_v29 = vld [vmem:[#allocation2 + $0x1a8] sm:$0xff] }
  0x40   :  { %904 = vmatprep.subr.bf16.mxu0 %v1834_v31  ;;  %947 = vmatprep.subr.bf16.mxu1 %v1836_v32  ;;  %v99_v30 = vld [vmem:[#allocation2 + $0x1e8] sm:$0xff]  ;;  %v1821_v31 = vcombine.low %v74_v19, %v82_v20  ;;  %v1823_v32 = vcombine.low %v75_v21, %v83_v22  ;;  %v1810_v19 = vcombine.high %v60_v13, %v68_v14  ;;  %v76_v21 = vld [vmem:[#allocation2 + $0x130] sm:$0xff] }
  0x41   :  { %v1840_v34 = vcombine.high %v91_v29, %v99_v30  ;;  %v84_v22 = vld [vmem:[#allocation2 + $0x170] sm:$0xff] }
  0x43   :  { %905 = vmatpush1.bf16.msra.mxu0 %v1833_v37  ;;  %948 = vmatpush1.bf16.msra.mxu1 %v1835_v38  ;;  %v107_v37 = vld [vmem:[#allocation2 + $0x228] sm:$0xff] }
  0x44   :  { %906 = vmatprep.subr.bf16.mxu0 %v1850_v39  ;;  %949 = vmatprep.subr.bf16.mxu1 %v1852_v40  ;;  %v115_v38 = vld [vmem:[#allocation2 + $0x268] sm:$0xff]  ;;  %v1837_v39 = vcombine.low %v90_v27, %v98_v28  ;;  %v1839_v40 = vcombine.low %v91_v29, %v99_v30  ;;  %v1826_v27 = vcombine.high %v76_v21, %v84_v22  ;;  %v92_v29 = vld [vmem:[#allocation2 + $0x1b0] sm:$0xff] }
  0x45   :  { %v1856_v42 = vcombine.high %v107_v37, %v115_v38  ;;  %v100_v30 = vld [vmem:[#allocation2 + $0x1f0] sm:$0xff] }
  0x47   :  { %907 = vmatpush1.bf16.msra.mxu0 %v1849_v45  ;;  %950 = vmatpush1.bf16.msra.mxu1 %v1851_v46  ;;  %v123_v45 = vld [vmem:[#allocation2 + $0x2a8] sm:$0xff] }
  0x48   :  { %908 = vmatprep.subr.bf16.mxu0 %v1866_v47  ;;  %951 = vmatprep.subr.bf16.mxu1 %v1868_v48  ;;  %v131_v46 = vld [vmem:[#allocation2 + $0x2e8] sm:$0xff]  ;;  %v1853_v47 = vcombine.low %v106_v35, %v114_v36  ;;  %v1855_v48 = vcombine.low %v107_v37, %v115_v38  ;;  %v1842_v35 = vcombine.high %v92_v29, %v100_v30  ;;  %v108_v37 = vld [vmem:[#allocation2 + $0x230] sm:$0xff] }
  0x49   :  { %v1872_v50 = vcombine.high %v123_v45, %v131_v46  ;;  %v116_v38 = vld [vmem:[#allocation2 + $0x270] sm:$0xff] }
  0x4b   :  { %909 = vmatpush1.bf16.msra.mxu0 %v1865_v53  ;;  %952 = vmatpush1.bf16.msra.mxu1 %v1867_v54  ;;  %v139_v53 = vld [vmem:[#allocation2 + $0x328] sm:$0xff] }
  0x4c   :  { %910 = vmatprep.subr.bf16.mxu0 %v1882_v55  ;;  %953 = vmatprep.subr.bf16.mxu1 %v1884_v56  ;;  %v147_v54 = vld [vmem:[#allocation2 + $0x368] sm:$0xff]  ;;  %v1869_v55 = vcombine.low %v122_v43, %v130_v44  ;;  %v1871_v56 = vcombine.low %v123_v45, %v131_v46  ;;  %v1858_v43 = vcombine.high %v108_v37, %v116_v38  ;;  %v124_v44 = vld [vmem:[#allocation2 + $0x2b0] sm:$0xff]  ;;  %v125_v46 = vld [vmem:[#allocation2 + $0x2b8] sm:$0xff] }
  0x4d   :  { %v1888_v58 = vcombine.high %v139_v53, %v147_v54  ;;  %v132_v45 = vld [vmem:[#allocation2 + $0x2f0] sm:$0xff] }
  0x4f   :  { %911 = vmatpush1.bf16.msra.mxu0 %v1881_v61  ;;  %954 = vmatpush1.bf16.msra.mxu1 %v1883_v62  ;;  %v155_v61 = vld [vmem:[#allocation2 + $0x3a8] sm:$0xff] }
  0x50   :  { %912 = vmatprep.subr.bf16.mxu0 %v1898_v63  ;;  %955 = vmatprep.subr.bf16.mxu1 %v1900_v1  ;;  %v163_v62 = vld [vmem:[#allocation2 + $0x3e8] sm:$0xff]  ;;  %v1885_v63 = vcombine.low %v138_v51, %v146_v52  ;;  %v1887_v1 = vcombine.low %v139_v53, %v147_v54  ;;  %v140_v52 = vld [vmem:[#allocation2 + $0x330] sm:$0xff]  ;;  %v141_v54 = vld [vmem:[#allocation2 + $0x338] sm:$0xff] }
  0x51   :  { %v1904_v3 = vcombine.high %v155_v61, %v163_v62  ;;  %v148_v53 = vld [vmem:[#allocation2 + $0x370] sm:$0xff] }
  0x53   :  { %913 = vmatpush1.bf16.msra.mxu0 %v1897_v6  ;;  %956 = vmatpush1.bf16.msra.mxu1 %v1899_v7  ;;  %v45_v6 = vld [vmem:[#allocation2 + $0x38] sm:$0xff] }
  0x54   :  { %984 = vmatprep.subr.bf16.mxu0 %v1790_v8  ;;  %1027 = vmatprep.subr.bf16.mxu1 %v1792_v9  ;;  %v53_v7 = vld [vmem:[#allocation2 + $0x78] sm:$0xff]  ;;  %v1901_v8 = vcombine.low %v154_v59, %v162_v60  ;;  %v1903_v9 = vcombine.low %v155_v61, %v163_v62  ;;  %v156_v60 = vld [vmem:[#allocation2 + $0x3b0] sm:$0xff] }
  0x55   :  { %v1796_v12 = vcombine.high %v45_v6, %v53_v7  ;;  %v164_v61 = vld [vmem:[#allocation2 + $0x3f0] sm:$0xff]  ;;  %v157_v62 = vld [vmem:[#allocation2 + $0x3b8] sm:$0xff] }
  0x56   :  { %931 = vmatmul.mubr.bf16.vlgmr.msra.gmra.mrb[4].mxu0 %v2021_v10  ;;  %974 = vmatmul.mubr.bf16.vlgmr.msra.gmra.mrb[4].mxu1 %v2021_v10 }
  0x57   :  { %985 = vmatpush1.bf16.msra.mxu0 %v1789_v15  ;;  %1028 = vmatpush1.bf16.msra.mxu1 %v1791_v16  ;;  %v61_v15 = vld [vmem:[#allocation2 + $0xb8] sm:$0xff] }
  0x58   :  { %986 = vmatprep.subr.bf16.mxu0 %v1806_v17  ;;  %1029 = vmatprep.subr.bf16.mxu1 %v1808_v18  ;;  %v69_v16 = vld [vmem:[#allocation2 + $0xf8] sm:$0xff]  ;;  %v1793_v17 = vcombine.low %v44_v4, %v52_v5  ;;  %v1795_v18 = vcombine.low %v45_v6, %v53_v7  ;;  %v1905_v5 = vcombine.low %v156_v60, %v164_v61  ;;  %v1982_v7 = vmov 0.0  }
  0x59   :  { %1016 = vmatprep.mubr.bf16.mxu0 %v1981_v0  ;;  %1059 = vmatprep.mubr.bf16.mxu1 %v1981_v0  ;;  %v1812_v20 = vcombine.high %v61_v15, %v69_v16  ;;  %32 = vst [vmem:[%s2210_s3] sm:$0xff] %v1982_v7  ;;  %33 = vst [vmem:[%s2210_s3 + $0x8] sm:$0xff] %v1982_v7 }
  0x5a   :  { %34 = vst [vmem:[%s2210_s3 + $0x10] sm:$0xff] %v1982_v7  ;;  %35 = vst [vmem:[%s2210_s3 + $0x18] sm:$0xff] %v1982_v7 }
  0x5b   :  { %987 = vmatpush1.bf16.msra.mxu0 %v1805_v23  ;;  %1030 = vmatpush1.bf16.msra.mxu1 %v1807_v24  ;;  %v77_v23 = vld [vmem:[#allocation2 + $0x138] sm:$0xff] }
  0x5c   :  { %988 = vmatprep.subr.bf16.mxu0 %v1822_v25  ;;  %1031 = vmatprep.subr.bf16.mxu1 %v1824_v26  ;;  %v85_v24 = vld [vmem:[#allocation2 + $0x178] sm:$0xff]  ;;  %v1809_v25 = vcombine.low %v60_v13, %v68_v14  ;;  %v1811_v26 = vcombine.low %v61_v15, %v69_v16 }
  0x5d   :  { %v1828_v28 = vcombine.high %v77_v23, %v85_v24 }
  0x5f   :  { %989 = vmatpush1.bf16.msra.mxu0 %v1821_v31  ;;  %1032 = vmatpush1.bf16.msra.mxu1 %v1823_v32  ;;  %v93_v31 = vld [vmem:[#allocation2 + $0x1b8] sm:$0xff] }
  0x60   :  { %990 = vmatprep.subr.bf16.mxu0 %v1838_v33  ;;  %1033 = vmatprep.subr.bf16.mxu1 %v1840_v34  ;;  %v101_v32 = vld [vmem:[#allocation2 + $0x1f8] sm:$0xff]  ;;  %v1825_v33 = vcombine.low %v76_v21, %v84_v22  ;;  %v1827_v34 = vcombine.low %v77_v23, %v85_v24 }
  0x61   :  { %v1844_v36 = vcombine.high %v93_v31, %v101_v32 }
  0x63   :  { %991 = vmatpush1.bf16.msra.mxu0 %v1837_v39  ;;  %1034 = vmatpush1.bf16.msra.mxu1 %v1839_v40  ;;  %v109_v39 = vld [vmem:[#allocation2 + $0x238] sm:$0xff] }
  0x64   :  { %992 = vmatprep.subr.bf16.mxu0 %v1854_v41  ;;  %1035 = vmatprep.subr.bf16.mxu1 %v1856_v42  ;;  %v117_v40 = vld [vmem:[#allocation2 + $0x278] sm:$0xff]  ;;  %v1841_v41 = vcombine.low %v92_v29, %v100_v30  ;;  %v1843_v42 = vcombine.low %v93_v31, %v101_v32 }
  0x67   :  { %993 = vmatpush1.bf16.msra.mxu0 %v1853_v47  ;;  %1036 = vmatpush1.bf16.msra.mxu1 %v1855_v48  ;;  %v133_v47 = vld [vmem:[#allocation2 + $0x2f8] sm:$0xff]  ;;  %v1857_v48 = vcombine.low %v108_v37, %v116_v38 }
  0x68   :  { %994 = vmatprep.subr.bf16.mxu0 %v1870_v49  ;;  %1037 = vmatprep.subr.bf16.mxu1 %v1872_v50  ;;  %v1859_v49 = vcombine.low %v109_v39, %v117_v40  ;;  %v1874_v50 = vcombine.high %v124_v44, %v132_v45  ;;  %v1876_v51 = vcombine.high %v125_v46, %v133_v47 }
  0x6b   :  { %995 = vmatpush1.bf16.msra.mxu0 %v1869_v55  ;;  %1038 = vmatpush1.bf16.msra.mxu1 %v1871_v56  ;;  %v149_v55 = vld [vmem:[#allocation2 + $0x378] sm:$0xff]  ;;  %v1873_v56 = vcombine.low %v124_v44, %v132_v45 }
  0x6c   :  { %996 = vmatprep.subr.bf16.mxu0 %v1886_v57  ;;  %1039 = vmatprep.subr.bf16.mxu1 %v1888_v58  ;;  %v1875_v57 = vcombine.low %v125_v46, %v133_v47  ;;  %v1890_v58 = vcombine.high %v140_v52, %v148_v53  ;;  %v1892_v59 = vcombine.high %v141_v54, %v149_v55 }
  0x6f   :  { %997 = vmatpush1.bf16.msra.mxu0 %v1885_v63  ;;  %1040 = vmatpush1.bf16.msra.mxu1 %v1887_v1  ;;  %v165_v63 = vld [vmem:[#allocation2 + $0x3f8] sm:$0xff]  ;;  %v1889_v1 = vcombine.low %v140_v52, %v148_v53 }
  0x70   :  { %998 = vmatprep.subr.bf16.mxu0 %v1902_v2  ;;  %1041 = vmatprep.subr.bf16.mxu1 %v1904_v3  ;;  %v1891_v2 = vcombine.low %v141_v54, %v149_v55  ;;  %v1906_v3 = vcombine.high %v156_v60, %v164_v61  ;;  %v1908_v4 = vcombine.high %v157_v62, %v165_v63 }
  0x71   :  { %v1907_v6 = vcombine.low %v157_v62, %v165_v63 }
  0x73   :  { %999 = vmatpush1.bf16.msra.mxu0 %v1901_v8  ;;  %1042 = vmatpush1.bf16.msra.mxu1 %v1903_v9  ;;  %v1983_v8 = vmov 1966171168  }
  0x74   :  { %1070 = vmatprep.subr.bf16.mxu0 %v1794_v11  ;;  %1113 = vmatprep.subr.bf16.mxu1 %v1796_v12  ;;  %v1292_v9 = vunpack.c.l.s4 %v1983_v8 }
  0x76   :  { %1017 = vmatmul.mubr.bf16.vlgmr.msra.gmra.mrb[8].mxu0 %v2021_v10  ;;  %1060 = vmatmul.mubr.bf16.vlgmr.msra.gmra.mrb[8].mxu1 %v2021_v10  ;;  %v1293_v11 = vunpack.c.0.s8 %v1292_v9 }
  0x77   :  { %1071 = vmatpush1.bf16.msra.mxu0 %v1793_v17  ;;  %1114 = vmatpush1.bf16.msra.mxu1 %v1795_v18 }
  0x78   :  { %1072 = vmatprep.subr.bf16.mxu0 %v1810_v19  ;;  %1115 = vmatprep.subr.bf16.mxu1 %v1812_v20 }
  0x79   :  { %1102 = vmatprep.mubr.bf16.mxu0 %v1981_v0  ;;  %1145 = vmatprep.mubr.bf16.mxu1 %v1981_v0  ;;  %v1860_v0 = vcombine.high %v109_v39, %v117_v40 }
  0x7b   :  { %1073 = vmatpush1.bf16.msra.mxu0 %v1809_v25  ;;  %1116 = vmatpush1.bf16.msra.mxu1 %v1811_v26 }
  0x7c   :  { %1074 = vmatprep.subr.bf16.mxu0 %v1826_v27  ;;  %1117 = vmatprep.subr.bf16.mxu1 %v1828_v28 }
  0x7f   :  { %1075 = vmatpush1.bf16.msra.mxu0 %v1825_v33  ;;  %1118 = vmatpush1.bf16.msra.mxu1 %v1827_v34 }
  0x80   :  { %1076 = vmatprep.subr.bf16.mxu0 %v1842_v35  ;;  %1119 = vmatprep.subr.bf16.mxu1 %v1844_v36 }
  0x83   :  { %1077 = vmatpush1.bf16.msra.mxu0 %v1841_v41  ;;  %1120 = vmatpush1.bf16.msra.mxu1 %v1843_v42 }
  0x84   :  { %1078 = vmatprep.subr.bf16.mxu0 %v1858_v43  ;;  %1121 = vmatprep.subr.bf16.mxu1 %v1860_v0 }
  0x87   :  { %1079 = vmatpush1.bf16.msra.mxu0 %v1857_v48  ;;  %1122 = vmatpush1.bf16.msra.mxu1 %v1859_v49 }
  0x88   :  { %1080 = vmatprep.subr.bf16.mxu0 %v1874_v50  ;;  %1123 = vmatprep.subr.bf16.mxu1 %v1876_v51 }
  0x8b   :  { %1081 = vmatpush1.bf16.msra.mxu0 %v1873_v56  ;;  %1124 = vmatpush1.bf16.msra.mxu1 %v1875_v57 }
  0x8c   :  { %1082 = vmatprep.subr.bf16.mxu0 %v1890_v58  ;;  %1125 = vmatprep.subr.bf16.mxu1 %v1892_v59 }
  0x8f   :  { %1083 = vmatpush1.bf16.msra.mxu0 %v1889_v1  ;;  %1126 = vmatpush1.bf16.msra.mxu1 %v1891_v2 }
  0x90   :  { %1084 = vmatprep.subr.bf16.mxu0 %v1906_v3  ;;  %1127 = vmatprep.subr.bf16.mxu1 %v1908_v4 }
  0x93   :  { %1085 = vmatpush1.bf16.msra.mxu0 %v1905_v5  ;;  %1128 = vmatpush1.bf16.msra.mxu1 %v1907_v6 }
  0x96   :  { %1103 = vmatmul.mubr.bf16.vlgmr.msra.gmra.mrb[12].mxu0 %v2021_v10  ;;  %1146 = vmatmul.mubr.bf16.vlgmr.msra.gmra.mrb[12].mxu1 %v2021_v10  ;;  %v1294_v10 = vlaneseq }
  0x98   :  { %v1295_v12 = vshrl.u32 %v1294_v10, 7 }
  0x9a   :  { %v2049_v22 = vsub.s32 %v1293_v11, %v1295_v12 }
 0x109   :  { %v846_v13 = vpop.f32.mrb[0].mxu0  ;;  %v889_v15 = vpop.f32.mrb[0].mxu1 }
 0x10a   :  { %v1395_v14 = vmul.f32 %v846_v13, %v846_v13  ;;  %v848_v16 = vpop.f32.mrb[1].mxu0  ;;  %v1397_v17 = vmul.f32 %v889_v15, %v889_v15  ;;  %v891_v20 = vpop.f32.mrb[1].mxu1 }
 0x10b   :  { %v1396_v18 = vmul.f32 %v848_v16, %v848_v16  ;;  %v1931_v19 = vpack.c.bf16 %v848_v16, %v846_v13  ;;  %v850_v21 = vpop.f32.mrb[2].mxu0  ;;  %v1398_v23 = vmul.f32 %v891_v20, %v891_v20  ;;  %v1932_v24 = vpack.c.bf16 %v891_v20, %v889_v15  ;;  %v2051_v27 = vpop.f32.mrb[2].mxu1 }
 0x10c   :  { %v1159_v25 = vadd.f32 %v850_v21, %v846_v13  ;;  %v1411_v26 = vmul.f32 %v850_v21, %v850_v21  ;;  %v852_v28 = vpop.f32.mrb[3].mxu0  ;;  %v1173_v29 = vadd.f32 %v2051_v27, %v889_v15  ;;  %v1413_v30 = vmul.f32 %v2051_v27, %v2051_v27  ;;  %v895_v33 = vpop.f32.mrb[3].mxu1 }
 0x10d   :  { %1755 = vst [vmem:[%s2209_s2] sm:$0xff] %v1931_v19  ;;  %v1166_v31 = vadd.f32 %v852_v28, %v848_v16  ;;  %v1412_v32 = vmul.f32 %v852_v28, %v852_v28  ;;  %1756 = vst [vmem:[%s2209_s2 + $0x8] sm:$0xff] %v1932_v24  ;;  %v1939_v36 = vpack.c.bf16 %v852_v28, %v850_v21 }
 0x10e   :  { %v1160_v34 = vrot.slane %v1159_v25, 4  ;;  %v1427_v35 = vadd.f32 %v1411_v26, %v1395_v14  ;;  %v1180_v37 = vadd.f32 %v895_v33, %v891_v20  ;;  %v1174_v38 = vrot.slane %v1173_v29, 4 }
 0x10f   :  { %v1441_v39 = vadd.f32 %v1413_v30, %v1397_v17  ;;  %v1167_v40 = vrot.slane %v1166_v31, 4  ;;  %v1434_v41 = vadd.f32 %v1412_v32, %v1396_v18  ;;  %1763 = vst [vmem:[%s2209_s2 + $0x40] sm:$0xff] %v1939_v36  ;;  %v1414_v44 = vmul.f32 %v895_v33, %v895_v33 }
 0x110   :  { %v1161_v42 = vadd.f32 %v1160_v34, %v1159_v25  ;;  %v1428_v43 = vrot.slane %v1427_v35, 4  ;;  %v1181_v0 = vrot.slane %v1180_v37, 4  ;;  %v1175_v45 = vadd.f32 %v1174_v38, %v1173_v29 }
 0x111   :  { %v1442_v46 = vrot.slane %v1441_v39, 4  ;;  %v1168_v47 = vadd.f32 %v1167_v40, %v1166_v31  ;;  %v1435_v48 = vrot.slane %v1434_v41, 4  ;;  %v1448_v52 = vadd.f32 %v1414_v44, %v1398_v23 }
 0x112   :  { %v1162_v49 = vrot.slane %v1161_v42, 2  ;;  %v1429_v50 = vadd.f32 %v1428_v43, %v1427_v35  ;;  %v1182_v51 = vadd.f32 %v1181_v0, %v1180_v37  ;;  %v1176_v53 = vrot.slane %v1175_v45, 2 }
 0x113   :  { %v1443_v54 = vadd.f32 %v1442_v46, %v1441_v39  ;;  %v1169_v55 = vrot.slane %v1168_v47, 2  ;;  %v1436_v56 = vadd.f32 %v1435_v48, %v1434_v41  ;;  %v1449_v60 = vrot.slane %v1448_v52, 4 }
 0x114   :  { %v1163_v57 = vadd.f32 %v1162_v49, %v1161_v42  ;;  %v1430_v58 = vrot.slane %v1429_v50, 2  ;;  %v1183_v59 = vrot.slane %v1182_v51, 2  ;;  %v1177_v61 = vadd.f32 %v1176_v53, %v1175_v45 }
 0x115   :  { %v1444_v62 = vrot.slane %v1443_v54, 2  ;;  %v1170_v63 = vadd.f32 %v1169_v55, %v1168_v47  ;;  %v1437_v1 = vrot.slane %v1436_v56, 2  ;;  %v1450_v5 = vadd.f32 %v1449_v60, %v1448_v52 }
 0x116   :  { %v1164_v2 = vrot.slane %v1163_v57, 1  ;;  %v1431_v3 = vadd.f32 %v1430_v58, %v1429_v50  ;;  %v1184_v4 = vadd.f32 %v1183_v59, %v1182_v51  ;;  %v1178_v6 = vrot.slane %v1177_v61, 1 }
 0x117   :  { %v1445_v7 = vadd.f32 %v1444_v62, %v1443_v54  ;;  %v1171_v8 = vrot.slane %v1170_v63, 1  ;;  %v1438_v9 = vadd.f32 %v1437_v1, %v1436_v56  ;;  %v1451_v13 = vrot.slane %v1450_v5, 2 }
 0x118   :  { %v1165_v10 = vadd.f32 %v1164_v2, %v1163_v57  ;;  %v1432_v11 = vrot.slane %v1431_v3, 1  ;;  %v1185_v12 = vrot.slane %v1184_v4, 1  ;;  %v1179_v14 = vadd.f32 %v1178_v6, %v1177_v61 }
 0x119   :  { %v1446_v15 = vrot.slane %v1445_v7, 1  ;;  %v1172_v16 = vadd.f32 %v1171_v8, %v1170_v63  ;;  %v1439_v17 = vrot.slane %v1438_v9, 1  ;;  %v1452_v20 = vadd.f32 %v1451_v13, %v1450_v5 }
 0x11a   :  { %v1433_v18 = vadd.f32 %v1432_v11, %v1431_v3  ;;  %v1186_v19 = vadd.f32 %v1185_v12, %v1184_v4  ;;  %v1940_v21 = vpack.c.bf16 %v895_v33, %v2051_v27 }
 0x11b   :  { %v1287_v23 = vcombine.low %v1165_v10, %v1172_v16  ;;  %v1440_v24 = vadd.f32 %v1439_v17, %v1438_v9  ;;  %v1447_v25 = vadd.f32 %v1446_v15, %v1445_v7  ;;  %v1453_v28 = vrot.slane %v1452_v20, 1 }
 0x11c   :  { %v1288_v26 = vcombine.low %v1179_v14, %v1186_v19  ;;  %1764 = vst [vmem:[%s2209_s2 + $0x48] sm:$0xff] %v1940_v21 }
 0x11d   :  { %v2070_v29 = vrot.slane %v1287_v23, %v2049_v22  ;;  %v1555_v30 = vcombine.low %v1433_v18, %v1440_v24  ;;  %v1454_v32 = vadd.f32 %v1453_v28, %v1452_v20 }
 0x11e   :  { %v2073_v31 = vrot.slane %v1288_v26, %v2049_v22 }
 0x11f   :  { %v2076_v34 = vrot.slane %v1555_v30, %v2049_v22  ;;  %v1556_v33 = vcombine.low %v1447_v25, %v1454_v32 }
 0x120   :  { %v1319_v27 = vcombine.low %v2070_v29, %v2073_v31  ;;  %v1911_v29 = vld [vmem:[%s2210_s3 + $0x1] ss:$2 sm:$0xff] }
 0x121   :  { %v2081_v35 = vrot.slane %v1556_v33, %v2049_v22 }
 0x123   :  { %v1587_v36 = vcombine.low %v2076_v34, %v2081_v35 }
 0x129   :  { %v932_v37 = vpop.f32.mrb[4].mxu0  ;;  %v975_v39 = vpop.f32.mrb[4].mxu1 }
 0x12a   :  { %v1399_v38 = vmul.f32 %v932_v37, %v932_v37  ;;  %v934_v40 = vpop.f32.mrb[5].mxu0  ;;  %v1401_v41 = vmul.f32 %v975_v39, %v975_v39  ;;  %v977_v0 = vpop.f32.mrb[5].mxu1 }
 0x12b   :  { %v1400_v42 = vmul.f32 %v934_v40, %v934_v40  ;;  %v1933_v43 = vpack.c.bf16 %v934_v40, %v932_v37  ;;  %v936_v44 = vpop.f32.mrb[6].mxu0  ;;  %v1402_v45 = vmul.f32 %v977_v0, %v977_v0  ;;  %v1934_v46 = vpack.c.bf16 %v977_v0, %v975_v39  ;;  %v2085_v49 = vpop.f32.mrb[6].mxu1 }
 0x12c   :  { %v1187_v47 = vadd.f32 %v936_v44, %v932_v37  ;;  %v1415_v48 = vmul.f32 %v936_v44, %v936_v44  ;;  %v938_v50 = vpop.f32.mrb[7].mxu0  ;;  %v1201_v51 = vadd.f32 %v2085_v49, %v975_v39  ;;  %v1417_v52 = vmul.f32 %v2085_v49, %v2085_v49  ;;  %v981_v55 = vpop.f32.mrb[7].mxu1 }
 0x12d   :  { %1757 = vst [vmem:[%s2209_s2 + $0x10] sm:$0xff] %v1933_v43  ;;  %v1194_v53 = vadd.f32 %v938_v50, %v934_v40  ;;  %v1416_v54 = vmul.f32 %v938_v50, %v938_v50  ;;  %1758 = vst [vmem:[%s2209_s2 + $0x18] sm:$0xff] %v1934_v46  ;;  %v1941_v58 = vpack.c.bf16 %v938_v50, %v936_v44 }
 0x12e   :  { %v1188_v56 = vrot.slane %v1187_v47, 4  ;;  %v1455_v57 = vadd.f32 %v1415_v48, %v1399_v38  ;;  %v1208_v59 = vadd.f32 %v981_v55, %v977_v0  ;;  %v1202_v60 = vrot.slane %v1201_v51, 4 }
 0x12f   :  { %v1469_v61 = vadd.f32 %v1417_v52, %v1401_v41  ;;  %v1195_v62 = vrot.slane %v1194_v53, 4  ;;  %v1462_v63 = vadd.f32 %v1416_v54, %v1400_v42  ;;  %1765 = vst [vmem:[%s2209_s2 + $0x50] sm:$0xff] %v1941_v58  ;;  %v1418_v4 = vmul.f32 %v981_v55, %v981_v55 }
 0x130   :  { %v1189_v1 = vadd.f32 %v1188_v56, %v1187_v47  ;;  %v1456_v2 = vrot.slane %v1455_v57, 4  ;;  %v1209_v3 = vrot.slane %v1208_v59, 4  ;;  %v1203_v5 = vadd.f32 %v1202_v60, %v1201_v51 }
 0x131   :  { %v1470_v6 = vrot.slane %v1469_v61, 4  ;;  %v1196_v7 = vadd.f32 %v1195_v62, %v1194_v53  ;;  %v1463_v8 = vrot.slane %v1462_v63, 4  ;;  %v1476_v12 = vadd.f32 %v1418_v4, %v1402_v45 }
 0x132   :  { %v1190_v9 = vrot.slane %v1189_v1, 2  ;;  %v1457_v10 = vadd.f32 %v1456_v2, %v1455_v57  ;;  %v1210_v11 = vadd.f32 %v1209_v3, %v1208_v59  ;;  %v1204_v13 = vrot.slane %v1203_v5, 2  ;;  %v1156_v3 = vld [vmem:[%s2210_s3] ss:$2 sm:$0xff] }
 0x133   :  { %v1471_v14 = vadd.f32 %v1470_v6, %v1469_v61  ;;  %v1197_v15 = vrot.slane %v1196_v7, 2  ;;  %v1464_v16 = vadd.f32 %v1463_v8, %v1462_v63  ;;  %v1477_v20 = vrot.slane %v1476_v12, 4 }
 0x134   :  { %v1191_v17 = vadd.f32 %v1190_v9, %v1189_v1  ;;  %v1458_v18 = vrot.slane %v1457_v10, 2  ;;  %v1211_v19 = vrot.slane %v1210_v11, 2  ;;  %v1205_v21 = vadd.f32 %v1204_v13, %v1203_v5 }
 0x135   :  { %v1472_v23 = vrot.slane %v1471_v14, 2  ;;  %v1198_v24 = vadd.f32 %v1197_v15, %v1196_v7  ;;  %v1465_v25 = vrot.slane %v1464_v16, 2  ;;  %v1478_v32 = vadd.f32 %v1477_v20, %v1476_v12 }
 0x136   :  { %v1192_v26 = vrot.slane %v1191_v17, 1  ;;  %v1459_v28 = vadd.f32 %v1458_v18, %v1457_v10  ;;  %v1212_v30 = vadd.f32 %v1211_v19, %v1210_v11  ;;  %v1206_v33 = vrot.slane %v1205_v21, 1 }
 0x137   :  { %v1473_v37 = vadd.f32 %v1472_v23, %v1471_v14  ;;  %v1199_v38 = vrot.slane %v1198_v24, 1  ;;  %v1466_v39 = vadd.f32 %v1465_v25, %v1464_v16  ;;  %v1479_v43 = vrot.slane %v1478_v32, 2 }
 0x138   :  { %v1193_v40 = vadd.f32 %v1192_v26, %v1191_v17  ;;  %v1460_v41 = vrot.slane %v1459_v28, 1  ;;  %v1213_v42 = vrot.slane %v1212_v30, 1  ;;  %v1207_v0 = vadd.f32 %v1206_v33, %v1205_v21 }
 0x139   :  { %v1474_v44 = vrot.slane %v1473_v37, 1  ;;  %v1200_v45 = vadd.f32 %v1199_v38, %v1198_v24  ;;  %v1467_v46 = vrot.slane %v1466_v39, 1  ;;  %v1480_v50 = vadd.f32 %v1479_v43, %v1478_v32 }
 0x13a   :  { %v1461_v47 = vadd.f32 %v1460_v41, %v1459_v28  ;;  %v1214_v48 = vadd.f32 %v1213_v42, %v1212_v30  ;;  %v1942_v51 = vpack.c.bf16 %v981_v55, %v2085_v49  ;;  %v1327_v49 = vrot.slane %v1319_v27, %v2049_v22 }
 0x13b   :  { %v1289_v52 = vcombine.low %v1193_v40, %v1200_v45  ;;  %v1468_v53 = vadd.f32 %v1467_v46, %v1466_v39  ;;  %v1475_v54 = vadd.f32 %v1474_v44, %v1473_v37  ;;  %v1481_v57 = vrot.slane %v1480_v50, 1 }
 0x13c   :  { %v1290_v56 = vcombine.low %v1207_v0, %v1214_v48  ;;  %1766 = vst [vmem:[%s2209_s2 + $0x58] sm:$0xff] %v1942_v51  ;;  %v1595_v6 = vrot.slane %v1587_v36, %v2049_v22 }
 0x13d   :  { %v1311_v58 = vrot.slane %v1289_v52, %v2049_v22  ;;  %v1557_v59 = vcombine.low %v1461_v47, %v1468_v53  ;;  %v1482_v61 = vadd.f32 %v1481_v57, %v1480_v50 }
 0x13e   :  { %v1318_v60 = vrot.slane %v1290_v56, %v2049_v22 }
 0x13f   :  { %v1579_v62 = vrot.slane %v1557_v59, %v2049_v22  ;;  %v1558_v1 = vcombine.low %v1475_v54, %v1482_v61 }
 0x140   :  { %v1320_v63 = vcombine.low %v1311_v58, %v1318_v60 }
 0x141   :  { %v1586_v2 = vrot.slane %v1558_v1, %v2049_v22 }
 0x142   :  { %v1334_v55 = vrot.slane %v1320_v63, %v2049_v22 }
 0x143   :  { %v1588_v5 = vcombine.low %v1579_v62, %v1586_v2 }
 0x144   :  { %v1335_v4 = vcombine.low %v1327_v49, %v1334_v55 }
 0x145   :  { %v1602_v8 = vrot.slane %v1588_v5, %v2049_v22 }
 0x146   :  { %v1387_v7 = vadd.f32 %v1335_v4, %v1156_v3 }
 0x147   :  { %v1603_v31 = vcombine.low %v1595_v6, %v1602_v8 }
 0x148   :  { %1389 = vst [vmem:[%s2210_s3] ss:$2 sm:$0xff] %v1387_v7 }
 0x149   :  { %v1018_v27 = vpop.f32.mrb[8].mxu0  ;;  %v1655_v9 = vadd.f32 %v1911_v29, %v1603_v31  ;;  %v1061_v11 = vpop.f32.mrb[8].mxu1 }
 0x14a   :  { %v1403_v10 = vmul.f32 %v1018_v27, %v1018_v27  ;;  %v1020_v12 = vpop.f32.mrb[9].mxu0  ;;  %v1405_v13 = vmul.f32 %v1061_v11, %v1061_v11  ;;  %v1063_v36 = vpop.f32.mrb[9].mxu1 }
 0x14b   :  { %v1404_v34 = vmul.f32 %v1020_v12, %v1020_v12  ;;  %v1935_v35 = vpack.c.bf16 %v1020_v12, %v1018_v27  ;;  %v1022_v14 = vpop.f32.mrb[10].mxu0  ;;  %1913 = vst [vmem:[%s2210_s3 + $0x1] ss:$2 sm:$0xff] %v1655_v9  ;;  %v1406_v15 = vmul.f32 %v1063_v36, %v1063_v36  ;;  %v1936_v16 = vpack.c.bf16 %v1063_v36, %v1061_v11  ;;  %v2129_v19 = vpop.f32.mrb[10].mxu1 }
 0x14c   :  { %v1215_v17 = vadd.f32 %v1022_v14, %v1018_v27  ;;  %v1419_v18 = vmul.f32 %v1022_v14, %v1022_v14  ;;  %v1024_v20 = vpop.f32.mrb[11].mxu0  ;;  %v1229_v21 = vadd.f32 %v2129_v19, %v1061_v11  ;;  %v1421_v23 = vmul.f32 %v2129_v19, %v2129_v19  ;;  %v1067_v26 = vpop.f32.mrb[11].mxu1 }
 0x14d   :  { %1759 = vst [vmem:[%s2209_s2 + $0x20] sm:$0xff] %v1935_v35  ;;  %v1222_v24 = vadd.f32 %v1024_v20, %v1020_v12  ;;  %v1420_v25 = vmul.f32 %v1024_v20, %v1024_v20  ;;  %1760 = vst [vmem:[%s2209_s2 + $0x28] sm:$0xff] %v1936_v16  ;;  %v1943_v32 = vpack.c.bf16 %v1024_v20, %v1022_v14 }
 0x14e   :  { %v1216_v28 = vrot.slane %v1215_v17, 4  ;;  %v1483_v30 = vadd.f32 %v1419_v18, %v1403_v10  ;;  %v1236_v33 = vadd.f32 %v1067_v26, %v1063_v36  ;;  %v1230_v37 = vrot.slane %v1229_v21, 4 }
 0x14f   :  { %v1497_v38 = vadd.f32 %v1421_v23, %v1405_v13  ;;  %v1223_v39 = vrot.slane %v1222_v24, 4  ;;  %v1490_v40 = vadd.f32 %v1420_v25, %v1404_v34  ;;  %1767 = vst [vmem:[%s2209_s2 + $0x60] sm:$0xff] %v1943_v32  ;;  %v1422_v0 = vmul.f32 %v1067_v26, %v1067_v26 }
 0x150   :  { %v1217_v41 = vadd.f32 %v1216_v28, %v1215_v17  ;;  %v1484_v42 = vrot.slane %v1483_v30, 4  ;;  %v1237_v43 = vrot.slane %v1236_v33, 4  ;;  %v1231_v44 = vadd.f32 %v1230_v37, %v1229_v21 }
 0x151   :  { %v1498_v45 = vrot.slane %v1497_v38, 4  ;;  %v1224_v46 = vadd.f32 %v1223_v39, %v1222_v24  ;;  %v1491_v47 = vrot.slane %v1490_v40, 4  ;;  %v1504_v52 = vadd.f32 %v1422_v0, %v1406_v15 }
 0x152   :  { %v1218_v48 = vrot.slane %v1217_v41, 2  ;;  %v1485_v50 = vadd.f32 %v1484_v42, %v1483_v30  ;;  %v1238_v51 = vadd.f32 %v1237_v43, %v1236_v33  ;;  %v1232_v53 = vrot.slane %v1231_v44, 2 }
 0x153   :  { %v1499_v54 = vadd.f32 %v1498_v45, %v1497_v38  ;;  %v1225_v56 = vrot.slane %v1224_v46, 2  ;;  %v1492_v57 = vadd.f32 %v1491_v47, %v1490_v40  ;;  %v1505_v61 = vrot.slane %v1504_v52, 4 }
 0x154   :  { %v1219_v58 = vadd.f32 %v1218_v48, %v1217_v41  ;;  %v1486_v59 = vrot.slane %v1485_v50, 2  ;;  %v1239_v60 = vrot.slane %v1238_v51, 2  ;;  %v1233_v62 = vadd.f32 %v1232_v53, %v1231_v44 }
 0x155   :  { %v1500_v63 = vrot.slane %v1499_v54, 2  ;;  %v1226_v1 = vadd.f32 %v1225_v56, %v1224_v46  ;;  %v1493_v49 = vrot.slane %v1492_v57, 2  ;;  %v1506_v4 = vadd.f32 %v1505_v61, %v1504_v52 }
 0x156   :  { %v1220_v55 = vrot.slane %v1219_v58, 1  ;;  %v1487_v2 = vadd.f32 %v1486_v59, %v1485_v50  ;;  %v1240_v3 = vadd.f32 %v1239_v60, %v1238_v51  ;;  %v1234_v5 = vrot.slane %v1233_v62, 1 }
 0x157   :  { %v1501_v6 = vadd.f32 %v1500_v63, %v1499_v54  ;;  %v1227_v7 = vrot.slane %v1226_v1, 1  ;;  %v1494_v8 = vadd.f32 %v1493_v49, %v1492_v57  ;;  %v1507_v9 = vrot.slane %v1506_v4, 2 }
 0x158   :  { %v1221_v29 = vadd.f32 %v1220_v55, %v1219_v58  ;;  %v1488_v31 = vrot.slane %v1487_v2, 1  ;;  %v1241_v27 = vrot.slane %v1240_v3, 1  ;;  %v1235_v10 = vadd.f32 %v1234_v5, %v1233_v62 }
 0x159   :  { %v1502_v11 = vrot.slane %v1501_v6, 1  ;;  %v1228_v12 = vadd.f32 %v1227_v7, %v1226_v1  ;;  %v1495_v13 = vrot.slane %v1494_v8, 1  ;;  %v1508_v36 = vadd.f32 %v1507_v9, %v1506_v4 }
 0x15a   :  { %v1489_v34 = vadd.f32 %v1488_v31, %v1487_v2  ;;  %v1242_v35 = vadd.f32 %v1241_v27, %v1240_v3  ;;  %v1944_v14 = vpack.c.bf16 %v1067_v26, %v2129_v19 }
 0x15b   :  { %v1336_v15 = vcombine.low %v1221_v29, %v1228_v12  ;;  %v1496_v16 = vadd.f32 %v1495_v13, %v1494_v8  ;;  %v1503_v17 = vadd.f32 %v1502_v11, %v1501_v6  ;;  %v1509_v20 = vrot.slane %v1508_v36, 1 }
 0x15c   :  { %v1337_v18 = vcombine.low %v1235_v10, %v1242_v35  ;;  %1768 = vst [vmem:[%s2209_s2 + $0x68] sm:$0xff] %v1944_v14 }
 0x15d   :  { %v2148_v21 = vrot.slane %v1336_v15, %v2049_v22  ;;  %v1604_v23 = vcombine.low %v1489_v34, %v1496_v16  ;;  %v1510_v25 = vadd.f32 %v1509_v20, %v1508_v36 }
 0x15e   :  { %v2151_v24 = vrot.slane %v1337_v18, %v2049_v22 }
 0x15f   :  { %v2154_v28 = vrot.slane %v1604_v23, %v2049_v22  ;;  %v1605_v26 = vcombine.low %v1503_v17, %v1510_v25 }
 0x160   :  { %v1368_v19 = vcombine.low %v2148_v21, %v2151_v24  ;;  %v1912_v21 = vld [vmem:[%s2210_s3 + $0x11] ss:$2 sm:$0xff] }
 0x161   :  { %v2159_v30 = vrot.slane %v1605_v26, %v2049_v22 }
 0x163   :  { %v1636_v32 = vcombine.low %v2154_v28, %v2159_v30 }
 0x169   :  { %v1104_v33 = vpop.f32.mrb[12].mxu0  ;;  %v1147_v37 = vpop.f32.mrb[12].mxu1 }
 0x16a   :  { %v1106_v38 = vpop.f32.mrb[13].mxu0  ;;  %v1407_v39 = vmul.f32 %v1104_v33, %v1104_v33  ;;  %v1409_v40 = vmul.f32 %v1147_v37, %v1147_v37  ;;  %v1149_v43 = vpop.f32.mrb[13].mxu1 }
 0x16b   :  { %v1408_v41 = vmul.f32 %v1106_v38, %v1106_v38  ;;  %v1937_v42 = vpack.c.bf16 %v1106_v38, %v1104_v33  ;;  %v1108_v0 = vpop.f32.mrb[14].mxu0  ;;  %v1410_v44 = vmul.f32 %v1149_v43, %v1149_v43  ;;  %v1938_v45 = vpack.c.bf16 %v1149_v43, %v1147_v37  ;;  %v2163_v48 = vpop.f32.mrb[14].mxu1 }
 0x16c   :  { %v1243_v46 = vadd.f32 %v1108_v0, %v1104_v33  ;;  %v1423_v47 = vmul.f32 %v1108_v0, %v1108_v0  ;;  %v1110_v50 = vpop.f32.mrb[15].mxu0  ;;  %v1257_v51 = vadd.f32 %v2163_v48, %v1147_v37  ;;  %v1425_v52 = vmul.f32 %v2163_v48, %v2163_v48  ;;  %v1153_v56 = vpop.f32.mrb[15].mxu1 }
 0x16d   :  { %1761 = vst [vmem:[%s2209_s2 + $0x30] sm:$0xff] %v1937_v42  ;;  %v1250_v53 = vadd.f32 %v1110_v50, %v1106_v38  ;;  %v1424_v54 = vmul.f32 %v1110_v50, %v1110_v50  ;;  %1762 = vst [vmem:[%s2209_s2 + $0x38] sm:$0xff] %v1938_v45  ;;  %v1945_v59 = vpack.c.bf16 %v1110_v50, %v1108_v0 }
 0x16e   :  { %v1244_v57 = vrot.slane %v1243_v46, 4  ;;  %v1511_v58 = vadd.f32 %v1423_v47, %v1407_v39  ;;  %v1264_v60 = vadd.f32 %v1153_v56, %v1149_v43  ;;  %v1258_v61 = vrot.slane %v1257_v51, 4 }
 0x16f   :  { %v1525_v62 = vadd.f32 %v1425_v52, %v1409_v40  ;;  %v1251_v63 = vrot.slane %v1250_v53, 4  ;;  %v1518_v1 = vadd.f32 %v1424_v54, %v1408_v41  ;;  %1769 = vst [vmem:[%s2209_s2 + $0x70] sm:$0xff] %v1945_v59  ;;  %v1426_v3 = vmul.f32 %v1153_v56, %v1153_v56 }
 0x170   :  { %v1245_v49 = vadd.f32 %v1244_v57, %v1243_v46  ;;  %v1512_v55 = vrot.slane %v1511_v58, 4  ;;  %v1265_v2 = vrot.slane %v1264_v60, 4  ;;  %v1259_v4 = vadd.f32 %v1258_v61, %v1257_v51 }
 0x171   :  { %v1526_v5 = vrot.slane %v1525_v62, 4  ;;  %v1252_v6 = vadd.f32 %v1251_v63, %v1250_v53  ;;  %v1519_v7 = vrot.slane %v1518_v1, 4  ;;  %v1532_v27 = vadd.f32 %v1426_v3, %v1410_v44 }
 0x172   :  { %v1246_v8 = vrot.slane %v1245_v49, 2  ;;  %v1513_v29 = vadd.f32 %v1512_v55, %v1511_v58  ;;  %v1266_v31 = vadd.f32 %v1265_v2, %v1264_v60  ;;  %v1260_v9 = vrot.slane %v1259_v4, 2  ;;  %v1909_v2 = vld [vmem:[%s2210_s3 + $0x10] ss:$2 sm:$0xff] }
 0x173   :  { %v1527_v10 = vadd.f32 %v1526_v5, %v1525_v62  ;;  %v1253_v11 = vrot.slane %v1252_v6, 2  ;;  %v1520_v12 = vadd.f32 %v1519_v7, %v1518_v1  ;;  %v1533_v36 = vrot.slane %v1532_v27, 4 }
 0x174   :  { %v1247_v13 = vadd.f32 %v1246_v8, %v1245_v49  ;;  %v1514_v34 = vrot.slane %v1513_v29, 2  ;;  %v1267_v35 = vrot.slane %v1266_v31, 2  ;;  %v1261_v14 = vadd.f32 %v1260_v9, %v1259_v4 }
 0x175   :  { %v1528_v15 = vrot.slane %v1527_v10, 2  ;;  %v1254_v16 = vadd.f32 %v1253_v11, %v1252_v6  ;;  %v1521_v17 = vrot.slane %v1520_v12, 2  ;;  %v1534_v25 = vadd.f32 %v1533_v36, %v1532_v27 }
 0x176   :  { %v1248_v18 = vrot.slane %v1247_v13, 1  ;;  %v1515_v20 = vadd.f32 %v1514_v34, %v1513_v29  ;;  %v1268_v23 = vadd.f32 %v1267_v35, %v1266_v31  ;;  %v1262_v26 = vrot.slane %v1261_v14, 1 }
 0x177   :  { %v1529_v33 = vadd.f32 %v1528_v15, %v1527_v10  ;;  %v1255_v37 = vrot.slane %v1254_v16, 1  ;;  %v1522_v38 = vadd.f32 %v1521_v17, %v1520_v12  ;;  %v1535_v42 = vrot.slane %v1534_v25, 2 }
 0x178   :  { %v1249_v39 = vadd.f32 %v1248_v18, %v1247_v13  ;;  %v1516_v40 = vrot.slane %v1515_v20, 1  ;;  %v1269_v41 = vrot.slane %v1268_v23, 1  ;;  %v1263_v43 = vadd.f32 %v1262_v26, %v1261_v14 }
 0x179   :  { %v1530_v0 = vrot.slane %v1529_v33, 1  ;;  %v1256_v44 = vadd.f32 %v1255_v37, %v1254_v16  ;;  %v1523_v45 = vrot.slane %v1522_v38, 1  ;;  %v1536_v50 = vadd.f32 %v1535_v42, %v1534_v25 }
 0x17a   :  { %v1517_v46 = vadd.f32 %v1516_v40, %v1515_v20  ;;  %v1270_v47 = vadd.f32 %v1269_v41, %v1268_v23  ;;  %v1946_v51 = vpack.c.bf16 %v1153_v56, %v2163_v48  ;;  %v1376_v48 = vrot.slane %v1368_v19, %v2049_v22 }
 0x17b   :  { %v1338_v52 = vcombine.low %v1249_v39, %v1256_v44  ;;  %v1524_v53 = vadd.f32 %v1523_v45, %v1522_v38  ;;  %v1531_v54 = vadd.f32 %v1530_v0, %v1529_v33  ;;  %v1537_v58 = vrot.slane %v1536_v50, 1 }
 0x17c   :  { %v1339_v57 = vcombine.low %v1263_v43, %v1270_v47  ;;  %1770 = vst [vmem:[%s2209_s2 + $0x78] sm:$0xff] %v1946_v51  ;;  %v1644_v5 = vrot.slane %v1636_v32, %v2049_v22 }
 0x17d   :  { %v1360_v59 = vrot.slane %v1338_v52, %v2049_v22  ;;  %v1606_v60 = vcombine.low %v1517_v46, %v1524_v53  ;;  %v1538_v62 = vadd.f32 %v1537_v58, %v1536_v50 }
 0x17e   :  { %v1367_v61 = vrot.slane %v1339_v57, %v2049_v22 }
 0x17f   :  { %v1628_v63 = vrot.slane %v1606_v60, %v2049_v22  ;;  %v1607_v49 = vcombine.low %v1531_v54, %v1538_v62 }
 0x180   :  { %v1369_v1 = vcombine.low %v1360_v59, %v1367_v61 }
 0x181   :  { %v1635_v55 = vrot.slane %v1607_v49, %v2049_v22 }
 0x182   :  { %v1383_v56 = vrot.slane %v1369_v1, %v2049_v22 }
 0x183   :  { %v1637_v4 = vcombine.low %v1628_v63, %v1635_v55 }
 0x184   :  { %v1384_v3 = vcombine.low %v1376_v48, %v1383_v56 }
 0x185   :  { %v1651_v7 = vrot.slane %v1637_v4, %v2049_v22 }
 0x186   :  { %v1388_v6 = vadd.f32 %v1909_v2, %v1384_v3 }
 0x187   :  { %v1652_v24 = vcombine.low %v1644_v5, %v1651_v7 }
 0x188   :  { %1910 = vst [vmem:[%s2210_s3 + $0x10] ss:$2 sm:$0xff] %v1388_v6 }
 0x189   :  { %v1656_v19 = vadd.f32 %v1912_v21, %v1652_v24 }
 0x18b   :  { %1914 = vst [vmem:[%s2210_s3 + $0x11] ss:$2 sm:$0xff] %v1656_v19 }
 0x18c   :  { %1779 = vsyncpa [#allocation3], 1 }

// kernel: generator_forward.10
= control target key start
LH: loop header
LB: loop body
LE: loop exit
PB: predicated region body
PF: predicated region fallthrough
CT: control target
= control target key end

     0   :  { %v28_v0 = vlaneseq  ;;  %s164_s0 = inlined_call_operand.vmem [shape: bf16[32,256], index: 0, kind: input, shape index: {}]   ;;  %s165_s1 = inlined_call_operand.vmem [shape: f32[1,256], index: 1, kind: input, shape index: {}]   ;;  %s166_s2 = inlined_call_operand.vmem [shape: f32[1,256], index: 2, kind: input, shape index: {}]   ;;  %s167_s3 = inlined_call_operand.vmem [shape: bf16[32,256], index: 3, kind: output, shape index: {}]  }
   0x1   :  { %v14_v1 = vld [vmem:[%s164_s0] sm:$0xff]  ;;  %v15_v3 = vld [vmem:[%s164_s0 + $0x8] sm:$0xff]  ;;  %v16_v4 = vld [vmem:[%s164_s0 + $0x10] sm:$0xff] }
   0x2   :  { %v29_v2 = vshrl.u32 %v28_v0, 7  ;;  %v17_v5 = vld [vmem:[%s164_s0 + $0x18] sm:$0xff]  ;;  %v18_v6 = vunpack.c.l.bf16 %v14_v1  ;;  %v19_v7 = vunpack.c.h.bf16 %v14_v1  ;;  %v26_v8 = vld [vmem:[%s165_s1] sm:$0x3]  ;;  %v20_v12 = vunpack.c.l.bf16 %v15_v3 }
   0x3   :  { %v46_v9 = vld [vmem:[%s166_s2] sm:$0x3]  ;;  %v21_v13 = vunpack.c.h.bf16 %v15_v3  ;;  %v22_v14 = vunpack.c.l.bf16 %v16_v4  ;;  %v23_v15 = vunpack.c.h.bf16 %v16_v4  ;;  %v24_v16 = vunpack.c.l.bf16 %v17_v5 }
   0x4   :  { %v30_v10 = vsub.s32 0, %v29_v2  ;;  %v34_v11 = vsub.s32 1, %v29_v2  ;;  %v25_v17 = vunpack.c.h.bf16 %v17_v5 }
   0x6   :  { %v31_v18 = vrot.slane %v26_v8, %v30_v10  ;;  %v35_v19 = vrot.slane %v26_v8, %v34_v11  ;;  %v51_v20 = vrot.slane %v46_v9, %v30_v10  ;;  %v55_v21 = vrot.slane %v46_v9, %v34_v11 }
   0x8   :  { %v38_v22 = vmul.f32 %v31_v18, %v18_v6  ;;  %v39_v23 = vmul.f32 %v35_v19, %v19_v7  ;;  %v40_v24 = vmul.f32 %v31_v18, %v20_v12  ;;  %v41_v25 = vmul.f32 %v35_v19, %v21_v13 }
   0x9   :  { %v42_v26 = vmul.f32 %v31_v18, %v22_v14  ;;  %v43_v27 = vmul.f32 %v35_v19, %v23_v15  ;;  %v44_v28 = vmul.f32 %v31_v18, %v24_v16  ;;  %v45_v29 = vmul.f32 %v35_v19, %v25_v17 }
   0xa   :  { %v58_v30 = vadd.f32 %v51_v20, %v38_v22  ;;  %v59_v31 = vadd.f32 %v55_v21, %v39_v23  ;;  %v60_v32 = vadd.f32 %v51_v20, %v40_v24  ;;  %v61_v33 = vadd.f32 %v55_v21, %v41_v25 }
   0xb   :  { %v62_v34 = vadd.f32 %v51_v20, %v42_v26  ;;  %v63_v35 = vadd.f32 %v55_v21, %v43_v27  ;;  %v64_v36 = vadd.f32 %v51_v20, %v44_v28  ;;  %v65_v37 = vadd.f32 %v55_v21, %v45_v29 }
   0xc   :  { %v66_v38 = vmax.f32 %v58_v30, 0.0  ;;  %v67_v39 = vmax.f32 %v59_v31, 0.0  ;;  %v68_v40 = vmax.f32 %v60_v32, 0.0  ;;  %v69_v41 = vmax.f32 %v61_v33, 0.0 }
   0xd   :  { %v70_v42 = vmax.f32 %v62_v34, 0.0  ;;  %v71_v43 = vmax.f32 %v63_v35, 0.0  ;;  %v72_v44 = vmax.f32 %v64_v36, 0.0  ;;  %v73_v45 = vmax.f32 %v65_v37, 0.0 }
   0xe   :  { %v110_v46 = vpack.c.bf16 %v67_v39, %v66_v38  ;;  %v111_v47 = vpack.c.bf16 %v69_v41, %v68_v40 }
   0xf   :  { %v112_v48 = vpack.c.bf16 %v71_v43, %v70_v42  ;;  %v113_v49 = vpack.c.bf16 %v73_v45, %v72_v44 }
  0x10   :  { %98 = vst [vmem:[%s167_s3] sm:$0xff] %v110_v46  ;;  %99 = vst [vmem:[%s167_s3 + $0x8] sm:$0xff] %v111_v47 }
  0x11   :  { %100 = vst [vmem:[%s167_s3 + $0x10] sm:$0xff] %v112_v48  ;;  %101 = vst [vmem:[%s167_s3 + $0x18] sm:$0xff] %v113_v49 }

// kernel: generator_forward.9
= control target key start
LH: loop header
LB: loop body
LE: loop exit
PB: predicated region body
PF: predicated region fallthrough
CT: control target
= control target key end

     0   :  { %s2388_s1 = inlined_call_operand.vmem [shape: bf16[1152,256], index: 1, kind: input, shape index: {}]   ;;  %s2389_s0 = inlined_call_operand.vmem [shape: bf16[32,1152], index: 0, kind: input, shape index: {}]   ;;  %s2390_s3 = inlined_call_operand.vmem [shape: f32[2,256], index: 3, kind: output, shape index: {1}]   ;;  %s2391_s2 = inlined_call_operand.vmem [shape: bf16[32,256], index: 2, kind: output, shape index: {0}]  }
   0x1   :  { %v1610_v0 = vld [vmem:[%s2388_s1 + $0x4] ss:$8 sps:$4 sm:$0xff]   ;;  %v1614_v2 = vld [vmem:[%s2388_s1] ss:$8 sps:$4 sm:$0xff]   ;;  %v1616_v4 = vld [vmem:[%s2388_s1 + $0x14] ss:$8 sps:$4 sm:$0xff]  }
   0x2   :  { %v1612_v1 = vld [vmem:[%s2388_s1 + $0x204] ss:$8 sps:$4 sm:$0xff]   ;;  %995 = vmatprep.subr.bf16.mxu1 %v1610_v0  ;;  %v1615_v3 = vld [vmem:[%s2388_s1 + $0x200] ss:$8 sps:$4 sm:$0xff]   ;;  %v1618_v5 = vld [vmem:[%s2388_s1 + $0x214] ss:$8 sps:$4 sm:$0xff]  }
   0x3   :  { %1101 = vmatprep.subr.bf16.mxu0 %v1612_v1  ;;  %996 = vmatpush1.bf16.msra.mxu1 %v1614_v2  ;;  %v1620_v6 = vld [vmem:[%s2388_s1 + $0x10] ss:$8 sps:$4 sm:$0xff]   ;;  %v1622_v8 = vld [vmem:[%s2388_s1 + $0x24] ss:$8 sps:$4 sm:$0xff]   ;;  %v1626_v10 = vld [vmem:[%s2388_s1 + $0x20] ss:$8 sps:$4 sm:$0xff]  }
   0x4   :  { %1102 = vmatpush1.bf16.msra.mxu0 %v1615_v3  ;;  %997 = vmatprep.subr.bf16.mxu1 %v1616_v4  ;;  %v1621_v7 = vld [vmem:[%s2388_s1 + $0x210] ss:$8 sps:$4 sm:$0xff]   ;;  %v1624_v9 = vld [vmem:[%s2388_s1 + $0x224] ss:$8 sps:$4 sm:$0xff]   ;;  %v1627_v11 = vld [vmem:[%s2388_s1 + $0x220] ss:$8 sps:$4 sm:$0xff]  }
   0x5   :  { %1103 = vmatprep.subr.bf16.mxu0 %v1618_v5  ;;  %v1628_v12 = vld [vmem:[%s2388_s1 + $0x34] ss:$8 sps:$4 sm:$0xff]   ;;  %v1632_v14 = vld [vmem:[%s2388_s1 + $0x30] ss:$8 sps:$4 sm:$0xff]   ;;  %v1634_v16 = vld [vmem:[%s2388_s1 + $0x44] ss:$8 sps:$4 sm:$0xff]  }
   0x6   :  { %v1630_v13 = vld [vmem:[%s2388_s1 + $0x234] ss:$8 sps:$4 sm:$0xff]   ;;  %v1633_v15 = vld [vmem:[%s2388_s1 + $0x230] ss:$8 sps:$4 sm:$0xff]   ;;  %v1636_v17 = vld [vmem:[%s2388_s1 + $0x244] ss:$8 sps:$4 sm:$0xff]  }
   0x7   :  { %998 = vmatpush1.bf16.msra.mxu1 %v1620_v6  ;;  %v1638_v18 = vld [vmem:[%s2388_s1 + $0x40] ss:$8 sps:$4 sm:$0xff]   ;;  %v1640_v20 = vld [vmem:[%s2388_s1 + $0x54] ss:$8 sps:$4 sm:$0xff]   ;;  %v1644_v22 = vld [vmem:[%s2388_s1 + $0x50] ss:$8 sps:$4 sm:$0xff]  }
   0x8   :  { %1104 = vmatpush1.bf16.msra.mxu0 %v1621_v7  ;;  %999 = vmatprep.subr.bf16.mxu1 %v1622_v8  ;;  %v1639_v19 = vld [vmem:[%s2388_s1 + $0x240] ss:$8 sps:$4 sm:$0xff]   ;;  %v1642_v21 = vld [vmem:[%s2388_s1 + $0x254] ss:$8 sps:$4 sm:$0xff]   ;;  %v1645_v23 = vld [vmem:[%s2388_s1 + $0x250] ss:$8 sps:$4 sm:$0xff]  }
   0x9   :  { %1105 = vmatprep.subr.bf16.mxu0 %v1624_v9  ;;  %v1646_v24 = vld [vmem:[%s2388_s1 + $0x64] ss:$8 sps:$4 sm:$0xff]   ;;  %v1650_v26 = vld [vmem:[%s2388_s1 + $0x60] ss:$8 sps:$4 sm:$0xff]   ;;  %v1652_v28 = vld [vmem:[%s2388_s1 + $0x74] ss:$8 sps:$4 sm:$0xff]  }
   0xa   :  { %v1648_v25 = vld [vmem:[%s2388_s1 + $0x264] ss:$8 sps:$4 sm:$0xff]   ;;  %v1651_v27 = vld [vmem:[%s2388_s1 + $0x260] ss:$8 sps:$4 sm:$0xff]   ;;  %v1654_v29 = vld [vmem:[%s2388_s1 + $0x274] ss:$8 sps:$4 sm:$0xff]  }
   0xb   :  { %1000 = vmatpush1.bf16.msra.mxu1 %v1626_v10  ;;  %v1656_v30 = vld [vmem:[%s2388_s1 + $0x70] ss:$8 sps:$4 sm:$0xff]   ;;  %v1658_v32 = vld [vmem:[%s2388_s1 + $0x84] ss:$8 sps:$4 sm:$0xff]   ;;  %v1662_v34 = vld [vmem:[%s2388_s1 + $0x80] ss:$8 sps:$4 sm:$0xff]  }
   0xc   :  { %1106 = vmatpush1.bf16.msra.mxu0 %v1627_v11  ;;  %1001 = vmatprep.subr.bf16.mxu1 %v1628_v12  ;;  %v1657_v31 = vld [vmem:[%s2388_s1 + $0x270] ss:$8 sps:$4 sm:$0xff]   ;;  %v1660_v33 = vld [vmem:[%s2388_s1 + $0x284] ss:$8 sps:$4 sm:$0xff]   ;;  %v1663_v35 = vld [vmem:[%s2388_s1 + $0x280] ss:$8 sps:$4 sm:$0xff]  }
   0xd   :  { %1107 = vmatprep.subr.bf16.mxu0 %v1630_v13  ;;  %v1664_v36 = vld [vmem:[%s2388_s1 + $0x94] ss:$8 sps:$4 sm:$0xff]   ;;  %v1668_v38 = vld [vmem:[%s2388_s1 + $0x90] ss:$8 sps:$4 sm:$0xff]   ;;  %v1670_v40 = vld [vmem:[%s2388_s1 + $0xa4] ss:$8 sps:$4 sm:$0xff]  }
   0xe   :  { %v1666_v37 = vld [vmem:[%s2388_s1 + $0x294] ss:$8 sps:$4 sm:$0xff]   ;;  %v1669_v39 = vld [vmem:[%s2388_s1 + $0x290] ss:$8 sps:$4 sm:$0xff]   ;;  %v1672_v41 = vld [vmem:[%s2388_s1 + $0x2a4] ss:$8 sps:$4 sm:$0xff]  }
   0xf   :  { %1002 = vmatpush1.bf16.msra.mxu1 %v1632_v14  ;;  %v1674_v42 = vld [vmem:[%s2388_s1 + $0xa0] ss:$8 sps:$4 sm:$0xff]   ;;  %v1676_v44 = vld [vmem:[%s2388_s1 + $0xb4] ss:$8 sps:$4 sm:$0xff]   ;;  %v1680_v46 = vld [vmem:[%s2388_s1 + $0xb0] ss:$8 sps:$4 sm:$0xff]  }
  0x10   :  { %1108 = vmatpush1.bf16.msra.mxu0 %v1633_v15  ;;  %1003 = vmatprep.subr.bf16.mxu1 %v1634_v16  ;;  %v1675_v43 = vld [vmem:[%s2388_s1 + $0x2a0] ss:$8 sps:$4 sm:$0xff]   ;;  %v1678_v45 = vld [vmem:[%s2388_s1 + $0x2b4] ss:$8 sps:$4 sm:$0xff]   ;;  %v1681_v47 = vld [vmem:[%s2388_s1 + $0x2b0] ss:$8 sps:$4 sm:$0xff]  }
  0x11   :  { %1109 = vmatprep.subr.bf16.mxu0 %v1636_v17  ;;  %v1708_v48 = vld [vmem:[%s2389_s0 + $0x4] ss:$36 sps:$4 sm:$0xff]   ;;  %v1714_v51 = vld [vmem:[%s2389_s0 + $0x14] ss:$36 sps:$4 sm:$0xff]  }
  0x12   :  { %v1682_v49 = vld [vmem:[%s2388_s1 + $0xc4] ss:$8 sps:$4 sm:$0xff]   ;;  %1027 = vmatprep.mubr.bf16.mxu1 %v1708_v48  ;;  %v1686_v52 = vld [vmem:[%s2388_s1 + $0xc0] ss:$8 sps:$4 sm:$0xff]   ;;  %v1688_v54 = vld [vmem:[%s2388_s1 + $0xd4] ss:$8 sps:$4 sm:$0xff]   ;;  %1133 = vmatprep.mubr.bf16.mxu0 %v1714_v51 }
  0x13   :  { %1004 = vmatpush1.bf16.msra.mxu1 %v1638_v18  ;;  %v1684_v50 = vld [vmem:[%s2388_s1 + $0x2c4] ss:$8 sps:$4 sm:$0xff]   ;;  %v1687_v53 = vld [vmem:[%s2388_s1 + $0x2c0] ss:$8 sps:$4 sm:$0xff]   ;;  %v1690_v55 = vld [vmem:[%s2388_s1 + $0x2d4] ss:$8 sps:$4 sm:$0xff]  }
  0x14   :  { %1110 = vmatpush1.bf16.msra.mxu0 %v1639_v19  ;;  %1005 = vmatprep.subr.bf16.mxu1 %v1640_v20  ;;  %v1692_v56 = vld [vmem:[%s2388_s1 + $0xd0] ss:$8 sps:$4 sm:$0xff]   ;;  %v1694_v58 = vld [vmem:[%s2388_s1 + $0xe4] ss:$8 sps:$4 sm:$0xff]   ;;  %v1698_v60 = vld [vmem:[%s2388_s1 + $0xe0] ss:$8 sps:$4 sm:$0xff]  }
  0x15   :  { %1111 = vmatprep.subr.bf16.mxu0 %v1642_v21  ;;  %v1693_v57 = vld [vmem:[%s2388_s1 + $0x2d0] ss:$8 sps:$4 sm:$0xff]   ;;  %v1696_v59 = vld [vmem:[%s2388_s1 + $0x2e4] ss:$8 sps:$4 sm:$0xff]   ;;  %v1699_v61 = vld [vmem:[%s2388_s1 + $0x2e0] ss:$8 sps:$4 sm:$0xff]  }
  0x16   :  { %v1700_v62 = vld [vmem:[%s2388_s1 + $0xf4] ss:$8 sps:$4 sm:$0xff]   ;;  %v1704_v0 = vld [vmem:[%s2388_s1 + $0xf0] ss:$8 sps:$4 sm:$0xff]   ;;  %v1711_v2 = vld [vmem:[%s2388_s1 + $0x104] ss:$8 sps:$4 sm:$0xff]  }
  0x17   :  { %1006 = vmatpush1.bf16.msra.mxu1 %v1644_v22  ;;  %v1702_v63 = vld [vmem:[%s2388_s1 + $0x2f4] ss:$8 sps:$4 sm:$0xff]   ;;  %v1705_v1 = vld [vmem:[%s2388_s1 + $0x2f0] ss:$8 sps:$4 sm:$0xff]   ;;  %v1717_v3 = vld [vmem:[%s2388_s1 + $0x304] ss:$8 sps:$4 sm:$0xff]  }
  0x18   :  { %1112 = vmatpush1.bf16.msra.mxu0 %v1645_v23  ;;  %1007 = vmatprep.subr.bf16.mxu1 %v1646_v24  ;;  %v1706_v4 = vld [vmem:[%s2389_s0] ss:$36 sps:$4 sm:$0xff]   ;;  %v1712_v6 = vld [vmem:[%s2389_s0 + $0x10] ss:$36 sps:$4 sm:$0xff]  }
  0x19   :  { %1113 = vmatprep.subr.bf16.mxu0 %v1648_v25  ;;  %v1709_v5 = vld [vmem:[%s2388_s1 + $0x100] ss:$8 sps:$4 sm:$0xff]   ;;  %v1720_v8 = vld [vmem:[%s2388_s1 + $0x114] ss:$8 sps:$4 sm:$0xff]   ;;  %v1718_v10 = vld [vmem:[%s2388_s1 + $0x110] ss:$8 sps:$4 sm:$0xff]  }
  0x1a   :  { %v1715_v7 = vld [vmem:[%s2388_s1 + $0x300] ss:$8 sps:$4 sm:$0xff]   ;;  %v1723_v9 = vld [vmem:[%s2388_s1 + $0x314] ss:$8 sps:$4 sm:$0xff]   ;;  %v1721_v11 = vld [vmem:[%s2388_s1 + $0x310] ss:$8 sps:$4 sm:$0xff]  }
  0x1b   :  { %1008 = vmatpush1.bf16.msra.mxu1 %v1650_v26  ;;  %v1726_v12 = vld [vmem:[%s2388_s1 + $0x124] ss:$8 sps:$4 sm:$0xff]   ;;  %v1724_v14 = vld [vmem:[%s2388_s1 + $0x120] ss:$8 sps:$4 sm:$0xff]   ;;  %v1732_v16 = vld [vmem:[%s2388_s1 + $0x134] ss:$8 sps:$4 sm:$0xff]  }
  0x1c   :  { %1114 = vmatpush1.bf16.msra.mxu0 %v1651_v27  ;;  %1009 = vmatprep.subr.bf16.mxu1 %v1652_v28  ;;  %v1729_v13 = vld [vmem:[%s2388_s1 + $0x324] ss:$8 sps:$4 sm:$0xff]   ;;  %v1727_v15 = vld [vmem:[%s2388_s1 + $0x320] ss:$8 sps:$4 sm:$0xff]   ;;  %v1735_v17 = vld [vmem:[%s2388_s1 + $0x334] ss:$8 sps:$4 sm:$0xff]  }
  0x1d   :  { %1115 = vmatprep.subr.bf16.mxu0 %v1654_v29  ;;  %v1730_v18 = vld [vmem:[%s2388_s1 + $0x130] ss:$8 sps:$4 sm:$0xff]   ;;  %v1738_v20 = vld [vmem:[%s2388_s1 + $0x144] ss:$8 sps:$4 sm:$0xff]   ;;  %v1736_v22 = vld [vmem:[%s2388_s1 + $0x140] ss:$8 sps:$4 sm:$0xff]  }
  0x1e   :  { %v1733_v19 = vld [vmem:[%s2388_s1 + $0x330] ss:$8 sps:$4 sm:$0xff]   ;;  %v1741_v21 = vld [vmem:[%s2388_s1 + $0x344] ss:$8 sps:$4 sm:$0xff]   ;;  %v1739_v23 = vld [vmem:[%s2388_s1 + $0x340] ss:$8 sps:$4 sm:$0xff]  }
  0x1f   :  { %1010 = vmatpush1.bf16.msra.mxu1 %v1656_v30  ;;  %v1744_v24 = vld [vmem:[%s2388_s1 + $0x154] ss:$8 sps:$4 sm:$0xff]   ;;  %v1742_v26 = vld [vmem:[%s2388_s1 + $0x150] ss:$8 sps:$4 sm:$0xff]   ;;  %v1750_v28 = vld [vmem:[%s2388_s1 + $0x164] ss:$8 sps:$4 sm:$0xff]  }
  0x20   :  { %1116 = vmatpush1.bf16.msra.mxu0 %v1657_v31  ;;  %1011 = vmatprep.subr.bf16.mxu1 %v1658_v32  ;;  %v1747_v25 = vld [vmem:[%s2388_s1 + $0x354] ss:$8 sps:$4 sm:$0xff]   ;;  %v1745_v27 = vld [vmem:[%s2388_s1 + $0x350] ss:$8 sps:$4 sm:$0xff]   ;;  %v1800_v31 = vld [vmem:[%s2389_s0 + $0x48] ss:$36 sps:$4 sm:$0xff]  }
  0x21   :  { %1117 = vmatprep.subr.bf16.mxu0 %v1660_v33  ;;  %v1796_v29 = vld [vmem:[%s2389_s0 + $0x4c] ss:$36 sps:$4 sm:$0xff]   ;;  %v1798_v30 = vld [vmem:[%s2389_s0 + $0x5c] ss:$36 sps:$4 sm:$0xff]  }
  0x22   :  { %v1753_v32 = vld [vmem:[%s2388_s1 + $0x364] ss:$8 sps:$4 sm:$0xff]   ;;  %v1804_v33 = vld [vmem:[%s2389_s0 + $0x58] ss:$36 sps:$4 sm:$0xff]  }
  0x23   :  { %1012 = vmatpush1.bf16.msra.mxu1 %v1662_v34  ;;  %v1748_v34 = vld [vmem:[%s2388_s1 + $0x160] ss:$8 sps:$4 sm:$0xff]   ;;  %v1766_v48 = vld [vmem:[%s2388_s1 + $0x190] ss:$8 sps:$4 sm:$0xff]   ;;  %v1777_v51 = vld [vmem:[%s2388_s1 + $0x3a4] ss:$8 sps:$4 sm:$0xff]  }
  0x24   :  { %1118 = vmatpush1.bf16.msra.mxu0 %v1663_v35  ;;  %1013 = vmatprep.subr.bf16.mxu1 %v1664_v36  ;;  %v1751_v35 = vld [vmem:[%s2388_s1 + $0x360] ss:$8 sps:$4 sm:$0xff]   ;;  %v1756_v36 = vld [vmem:[%s2388_s1 + $0x174] ss:$8 sps:$4 sm:$0xff]  }
  0x25   :  { %1119 = vmatprep.subr.bf16.mxu0 %v1666_v37  ;;  %v1759_v37 = vld [vmem:[%s2388_s1 + $0x374] ss:$8 sps:$4 sm:$0xff]  }
  0x27   :  { %1014 = vmatpush1.bf16.msra.mxu1 %v1668_v38  ;;  %v1754_v38 = vld [vmem:[%s2388_s1 + $0x170] ss:$8 sps:$4 sm:$0xff]  }
  0x28   :  { %1120 = vmatpush1.bf16.msra.mxu0 %v1669_v39  ;;  %1015 = vmatprep.subr.bf16.mxu1 %v1670_v40  ;;  %v1757_v39 = vld [vmem:[%s2388_s1 + $0x370] ss:$8 sps:$4 sm:$0xff]   ;;  %v1762_v40 = vld [vmem:[%s2388_s1 + $0x184] ss:$8 sps:$4 sm:$0xff]  }
  0x29   :  { %1121 = vmatprep.subr.bf16.mxu0 %v1672_v41  ;;  %v1816_v41 = vld [vmem:[%s2389_s0 + $0xc] ss:$36 sps:$4 sm:$0xff]  }
  0x2b   :  { %1016 = vmatpush1.bf16.msra.mxu1 %v1674_v42  ;;  %v1765_v42 = vld [vmem:[%s2388_s1 + $0x384] ss:$8 sps:$4 sm:$0xff]  }
  0x2c   :  { %1122 = vmatpush1.bf16.msra.mxu0 %v1675_v43  ;;  %1017 = vmatprep.subr.bf16.mxu1 %v1676_v44  ;;  %v1819_v43 = vld [vmem:[%s2389_s0 + $0x1c] ss:$36 sps:$4 sm:$0xff]  }
  0x2d   :  { %1123 = vmatprep.subr.bf16.mxu0 %v1678_v45  ;;  %v1760_v44 = vld [vmem:[%s2388_s1 + $0x180] ss:$8 sps:$4 sm:$0xff]  }
  0x2e   :  { %v1763_v45 = vld [vmem:[%s2388_s1 + $0x380] ss:$8 sps:$4 sm:$0xff]  }
  0x2f   :  { %1018 = vmatpush1.bf16.msra.mxu1 %v1680_v46  ;;  %v1768_v46 = vld [vmem:[%s2388_s1 + $0x194] ss:$8 sps:$4 sm:$0xff]  }
  0x30   :  { %1124 = vmatpush1.bf16.msra.mxu0 %v1681_v47  ;;  %1019 = vmatprep.subr.bf16.mxu1 %v1682_v49  ;;  %v1771_v47 = vld [vmem:[%s2388_s1 + $0x394] ss:$8 sps:$4 sm:$0xff]   ;;  %v1769_v49 = vld [vmem:[%s2388_s1 + $0x390] ss:$8 sps:$4 sm:$0xff]  }
  0x31   :  { %1125 = vmatprep.subr.bf16.mxu0 %v1684_v50  ;;  %v1774_v50 = vld [vmem:[%s2388_s1 + $0x1a4] ss:$8 sps:$4 sm:$0xff]  }
  0x33   :  { %1020 = vmatpush1.bf16.msra.mxu1 %v1686_v52  ;;  %v1772_v52 = vld [vmem:[%s2388_s1 + $0x1a0] ss:$8 sps:$4 sm:$0xff]  }
  0x34   :  { %1126 = vmatpush1.bf16.msra.mxu0 %v1687_v53  ;;  %1021 = vmatprep.subr.bf16.mxu1 %v1688_v54  ;;  %v1775_v53 = vld [vmem:[%s2388_s1 + $0x3a0] ss:$8 sps:$4 sm:$0xff]   ;;  %v1780_v54 = vld [vmem:[%s2388_s1 + $0x1b4] ss:$8 sps:$4 sm:$0xff]  }
  0x35   :  { %1127 = vmatprep.subr.bf16.mxu0 %v1690_v55  ;;  %v1783_v55 = vld [vmem:[%s2388_s1 + $0x3b4] ss:$8 sps:$4 sm:$0xff]  }
  0x37   :  { %1022 = vmatpush1.bf16.msra.mxu1 %v1692_v56  ;;  %v1778_v56 = vld [vmem:[%s2388_s1 + $0x1b0] ss:$8 sps:$4 sm:$0xff]  }
  0x38   :  { %1128 = vmatpush1.bf16.msra.mxu0 %v1693_v57  ;;  %1023 = vmatprep.subr.bf16.mxu1 %v1694_v58  ;;  %v1781_v57 = vld [vmem:[%s2388_s1 + $0x3b0] ss:$8 sps:$4 sm:$0xff]   ;;  %v1786_v58 = vld [vmem:[%s2388_s1 + $0x1c4] ss:$8 sps:$4 sm:$0xff]  }
  0x39   :  { %1129 = vmatprep.subr.bf16.mxu0 %v1696_v59  ;;  %v1789_v59 = vld [vmem:[%s2388_s1 + $0x3c4] ss:$8 sps:$4 sm:$0xff]  }
  0x3b   :  { %1024 = vmatpush1.bf16.msra.mxu1 %v1698_v60  ;;  %v1784_v60 = vld [vmem:[%s2388_s1 + $0x1c0] ss:$8 sps:$4 sm:$0xff]  }
  0x3c   :  { %1130 = vmatpush1.bf16.msra.mxu0 %v1699_v61  ;;  %1025 = vmatprep.subr.bf16.mxu1 %v1700_v62  ;;  %v1787_v61 = vld [vmem:[%s2388_s1 + $0x3c0] ss:$8 sps:$4 sm:$0xff]   ;;  %v1792_v62 = vld [vmem:[%s2388_s1 + $0x1d4] ss:$8 sps:$4 sm:$0xff]  }
  0x3d   :  { %1131 = vmatprep.subr.bf16.mxu0 %v1702_v63  ;;  %v1795_v63 = vld [vmem:[%s2388_s1 + $0x3d4] ss:$8 sps:$4 sm:$0xff]  }
  0x3f   :  { %1026 = vmatpush1.bf16.msra.mxu1 %v1704_v0  ;;  %v1790_v0 = vld [vmem:[%s2388_s1 + $0x1d0] ss:$8 sps:$4 sm:$0xff]  }
  0x40   :  { %1132 = vmatpush1.bf16.msra.mxu0 %v1705_v1  ;;  %1048 = vmatprep.subr.bf16.mxu1 %v1711_v2  ;;  %v1793_v1 = vld [vmem:[%s2388_s1 + $0x3d0] ss:$8 sps:$4 sm:$0xff]   ;;  %v1803_v2 = vld [vmem:[%s2388_s1 + $0x1e4] ss:$8 sps:$4 sm:$0xff]  }
  0x41   :  { %1154 = vmatprep.subr.bf16.mxu0 %v1717_v3  ;;  %v1807_v3 = vld [vmem:[%s2388_s1 + $0x3e4] ss:$8 sps:$4 sm:$0xff]  }
  0x42   :  { %1028 = vmatmul.mubr.bf16.vlgmr.msra.gmra.mrb[0].mxu1 %v1706_v4  ;;  %v1801_v4 = vld [vmem:[%s2388_s1 + $0x1e0] ss:$8 sps:$4 sm:$0xff]  }
  0x43   :  { %1134 = vmatmul.mubr.bf16.vlgmr.msra.gmra.mrb[0].mxu0 %v1712_v6  ;;  %1049 = vmatpush1.bf16.msra.mxu1 %v1709_v5  ;;  %v1805_v5 = vld [vmem:[%s2388_s1 + $0x3e0] ss:$8 sps:$4 sm:$0xff]   ;;  %v1810_v6 = vld [vmem:[%s2388_s1 + $0x1f4] ss:$8 sps:$4 sm:$0xff]  }
  0x44   :  { %1155 = vmatpush1.bf16.msra.mxu0 %v1715_v7  ;;  %1050 = vmatprep.subr.bf16.mxu1 %v1720_v8  ;;  %v1813_v7 = vld [vmem:[%s2388_s1 + $0x3f4] ss:$8 sps:$4 sm:$0xff]   ;;  %v1808_v8 = vld [vmem:[%s2388_s1 + $0x1f0] ss:$8 sps:$4 sm:$0xff]  }
  0x45   :  { %1156 = vmatprep.subr.bf16.mxu0 %v1723_v9  ;;  %1037 = vmatprep.mubr.bf16.mxu1 %v1796_v29  ;;  %v1811_v9 = vld [vmem:[%s2388_s1 + $0x3f0] ss:$8 sps:$4 sm:$0xff]   ;;  %v1846_v29 = vld [vmem:[%s2388_s1 + $0x464] ss:$8 sps:$4 sm:$0xff]  }
  0x46   :  { %1143 = vmatprep.mubr.bf16.mxu0 %v1798_v30  ;;  %v1844_v30 = vld [vmem:[%s2388_s1 + $0x460] ss:$8 sps:$4 sm:$0xff]  }
  0x47   :  { %1051 = vmatpush1.bf16.msra.mxu1 %v1718_v10  ;;  %v1822_v10 = vld [vmem:[%s2388_s1 + $0x404] ss:$8 sps:$4 sm:$0xff]  }
  0x48   :  { %1157 = vmatpush1.bf16.msra.mxu0 %v1721_v11  ;;  %1052 = vmatprep.subr.bf16.mxu1 %v1726_v12  ;;  %v1814_v11 = vld [vmem:[%s2389_s0 + $0x8] ss:$36 sps:$4 sm:$0xff]   ;;  %v1817_v12 = vld [vmem:[%s2389_s0 + $0x18] ss:$36 sps:$4 sm:$0xff]  }
  0x49   :  { %1158 = vmatprep.subr.bf16.mxu0 %v1729_v13  ;;  %v1820_v13 = vld [vmem:[%s2388_s1 + $0x400] ss:$8 sps:$4 sm:$0xff]  }
  0x4a   :  { %1038 = vmatmul.mubr.bf16.gmra.mrb[4].mxu1 %v1800_v31  ;;  %v1849_v31 = vld [vmem:[%s2388_s1 + $0x474] ss:$8 sps:$4 sm:$0xff]  }
  0x4b   :  { %1053 = vmatpush1.bf16.msra.mxu1 %v1724_v14  ;;  %1144 = vmatmul.mubr.bf16.gmra.mrb[4].mxu0 %v1804_v33  ;;  %v1825_v14 = vld [vmem:[%s2388_s1 + $0x414] ss:$8 sps:$4 sm:$0xff]   ;;  %v1850_v33 = vld [vmem:[%s2389_s0 + $0x20] ss:$36 sps:$4 sm:$0xff]  }
  0x4c   :  { %1159 = vmatpush1.bf16.msra.mxu0 %v1727_v15  ;;  %1054 = vmatprep.subr.bf16.mxu1 %v1732_v16  ;;  %v1826_v15 = vld [vmem:[%s2389_s0 + $0x54] ss:$36 sps:$4 sm:$0xff]   ;;  %v1828_v16 = vld [vmem:[%s2389_s0 + $0x64] ss:$36 sps:$4 sm:$0xff]  }
  0x4d   :  { %1160 = vmatprep.subr.bf16.mxu0 %v1735_v17  ;;  %1080 = vmatprep.mubr.bf16.mxu1 %v1816_v41  ;;  %v1823_v17 = vld [vmem:[%s2388_s1 + $0x410] ss:$8 sps:$4 sm:$0xff]  }
  0x4e   :  { %1186 = vmatprep.mubr.bf16.mxu0 %v1819_v43 }
  0x4f   :  { %1055 = vmatpush1.bf16.msra.mxu1 %v1730_v18  ;;  %v1834_v18 = vld [vmem:[%s2388_s1 + $0x424] ss:$8 sps:$4 sm:$0xff]  }
  0x50   :  { %1161 = vmatpush1.bf16.msra.mxu0 %v1733_v19  ;;  %1056 = vmatprep.subr.bf16.mxu1 %v1738_v20  ;;  %v1830_v19 = vld [vmem:[%s2389_s0 + $0x50] ss:$36 sps:$4 sm:$0xff]   ;;  %v1831_v20 = vld [vmem:[%s2389_s0 + $0x60] ss:$36 sps:$4 sm:$0xff]  }
  0x51   :  { %1162 = vmatprep.subr.bf16.mxu0 %v1741_v21  ;;  %v1832_v21 = vld [vmem:[%s2388_s1 + $0x420] ss:$8 sps:$4 sm:$0xff]  }
  0x53   :  { %1057 = vmatpush1.bf16.msra.mxu1 %v1736_v22  ;;  %v1837_v22 = vld [vmem:[%s2388_s1 + $0x434] ss:$8 sps:$4 sm:$0xff]  }
  0x54   :  { %1163 = vmatpush1.bf16.msra.mxu0 %v1739_v23  ;;  %1058 = vmatprep.subr.bf16.mxu1 %v1744_v24  ;;  %v1835_v23 = vld [vmem:[%s2388_s1 + $0x430] ss:$8 sps:$4 sm:$0xff]   ;;  %v1840_v24 = vld [vmem:[%s2388_s1 + $0x444] ss:$8 sps:$4 sm:$0xff]  }
  0x55   :  { %1164 = vmatprep.subr.bf16.mxu0 %v1747_v25  ;;  %v1852_v25 = vmov 0  }
  0x57   :  { %1059 = vmatpush1.bf16.msra.mxu1 %v1742_v26  ;;  %v1838_v26 = vld [vmem:[%s2388_s1 + $0x440] ss:$8 sps:$4 sm:$0xff]  }
  0x58   :  { %1165 = vmatpush1.bf16.msra.mxu0 %v1745_v27  ;;  %1060 = vmatprep.subr.bf16.mxu1 %v1750_v28  ;;  %v1843_v27 = vld [vmem:[%s2388_s1 + $0x454] ss:$8 sps:$4 sm:$0xff]   ;;  %v1841_v28 = vld [vmem:[%s2388_s1 + $0x450] ss:$8 sps:$4 sm:$0xff]  }
  0x59   :  { %1166 = vmatprep.subr.bf16.mxu0 %v1753_v32  ;;  %v1847_v32 = vld [vmem:[%s2388_s1 + $0x470] ss:$8 sps:$4 sm:$0xff]  }
  0x5b   :  { %1061 = vmatpush1.bf16.msra.mxu1 %v1748_v34  ;;  %v1851_v34 = vld [vmem:[%s2389_s0 + $0x68] ss:$36 sps:$4 sm:$0xff]  }
  0x5c   :  { %1167 = vmatpush1.bf16.msra.mxu0 %v1751_v35  ;;  %1062 = vmatprep.subr.bf16.mxu1 %v1756_v36  ;;  %v1853_v35 = vmov 0.0  }
  0x5d   :  { %1168 = vmatprep.subr.bf16.mxu0 %v1759_v37  ;;  %18 = vst [vmem:[%s2390_s3] sm:$0xf] %v1853_v35 }
  0x5f   :  { %1063 = vmatpush1.bf16.msra.mxu1 %v1754_v38 }
  0x60   :  { %1169 = vmatpush1.bf16.msra.mxu0 %v1757_v39  ;;  %1064 = vmatprep.subr.bf16.mxu1 %v1762_v40 }
  0x61   :  { %1170 = vmatprep.subr.bf16.mxu0 %v1765_v42 }
  0x63   :  { %1065 = vmatpush1.bf16.msra.mxu1 %v1760_v44 }
  0x64   :  { %1171 = vmatpush1.bf16.msra.mxu0 %v1763_v45  ;;  %1066 = vmatprep.subr.bf16.mxu1 %v1768_v46 }
  0x65   :  { %1172 = vmatprep.subr.bf16.mxu0 %v1771_v47 }
  0x67   :  { %1067 = vmatpush1.bf16.msra.mxu1 %v1766_v48 }
  0x68   :  { %1173 = vmatpush1.bf16.msra.mxu0 %v1769_v49  ;;  %1068 = vmatprep.subr.bf16.mxu1 %v1774_v50 }
  0x69   :  { %1174 = vmatprep.subr.bf16.mxu0 %v1777_v51 }
  0x6b   :  { %1069 = vmatpush1.bf16.msra.mxu1 %v1772_v52 }
  0x6c   :  { %1175 = vmatpush1.bf16.msra.mxu0 %v1775_v53  ;;  %1070 = vmatprep.subr.bf16.mxu1 %v1780_v54 }
  0x6d   :  { %1176 = vmatprep.subr.bf16.mxu0 %v1783_v55 }
  0x6f   :  { %1071 = vmatpush1.bf16.msra.mxu1 %v1778_v56 }
  0x70   :  { %1177 = vmatpush1.bf16.msra.mxu0 %v1781_v57  ;;  %1072 = vmatprep.subr.bf16.mxu1 %v1786_v58 }
  0x71   :  { %1178 = vmatprep.subr.bf16.mxu0 %v1789_v59 }
  0x73   :  { %1073 = vmatpush1.bf16.msra.mxu1 %v1784_v60 }
  0x74   :  { %1179 = vmatpush1.bf16.msra.mxu0 %v1787_v61  ;;  %1074 = vmatprep.subr.bf16.mxu1 %v1792_v62 }
  0x75   :  { %1180 = vmatprep.subr.bf16.mxu0 %v1795_v63 }
  0x77   :  { %1075 = vmatpush1.bf16.msra.mxu1 %v1790_v0 }
  0x78   :  { %1181 = vmatpush1.bf16.msra.mxu0 %v1793_v1  ;;  %1076 = vmatprep.subr.bf16.mxu1 %v1803_v2 }
  0x79   :  { %1182 = vmatprep.subr.bf16.mxu0 %v1807_v3 }
  0x7b   :  { %1077 = vmatpush1.bf16.msra.mxu1 %v1801_v4 }
  0x7c   :  { %1183 = vmatpush1.bf16.msra.mxu0 %v1805_v5  ;;  %1078 = vmatprep.subr.bf16.mxu1 %v1810_v6 }
  0x7d   :  { %1184 = vmatprep.subr.bf16.mxu0 %v1813_v7 }
  0x7f   :  { %1079 = vmatpush1.bf16.msra.mxu1 %v1808_v8 }
  0x80   :  { %1185 = vmatpush1.bf16.msra.mxu0 %v1811_v9  ;;  %1559 = vmatprep.subr.bf16.mxu1 %v1822_v10 }
  0x81   :  { %1207 = vmatprep.subr.bf16.mxu0 %v1822_v10 }
  0x82   :  { %1081 = vmatmul.mubr.bf16.vlgmr.msra.gmra.mrb[0].mxu1 %v1814_v11 }
  0x83   :  { %1187 = vmatmul.mubr.bf16.vlgmr.msra.gmra.mrb[0].mxu0 %v1817_v12  ;;  %1567 = vmatpush1.bf16.msra.mxu1 %v1820_v13 }
  0x84   :  { %1208 = vmatpush1.bf16.msra.mxu0 %v1820_v13  ;;  %1560 = vmatprep.subr.bf16.mxu1 %v1825_v14 }
  0x85   :  { %1209 = vmatprep.subr.bf16.mxu0 %v1825_v14  ;;  %1090 = vmatprep.mubr.bf16.mxu1 %v1826_v15 }
  0x86   :  { %1196 = vmatprep.mubr.bf16.mxu0 %v1828_v16 }
  0x87   :  { %1568 = vmatpush1.bf16.msra.mxu1 %v1823_v17 }
  0x88   :  { %1210 = vmatpush1.bf16.msra.mxu0 %v1823_v17  ;;  %1561 = vmatprep.subr.bf16.mxu1 %v1834_v18 }
  0x89   :  { %1211 = vmatprep.subr.bf16.mxu0 %v1834_v18 }
  0x8a   :  { %1091 = vmatmul.mubr.bf16.gmra.mrb[4].mxu1 %v1830_v19 }
  0x8b   :  { %1197 = vmatmul.mubr.bf16.gmra.mrb[4].mxu0 %v1831_v20  ;;  %1569 = vmatpush1.bf16.msra.mxu1 %v1832_v21 }
  0x8c   :  { %1212 = vmatpush1.bf16.msra.mxu0 %v1832_v21  ;;  %1562 = vmatprep.subr.bf16.mxu1 %v1837_v22 }
  0x8d   :  { %1213 = vmatprep.subr.bf16.mxu0 %v1837_v22  ;;  %1239 = vmatprep.mubr.bf16.mxu0 %v1852_v25 }
  0x8e   :  { %1249 = vmatprep.mubr.bf16.mxu1 %v1852_v25 }
  0x8f   :  { %1570 = vmatpush1.bf16.msra.mxu1 %v1835_v23 }
  0x90   :  { %1214 = vmatpush1.bf16.msra.mxu0 %v1835_v23  ;;  %1563 = vmatprep.subr.bf16.mxu1 %v1840_v24 }
  0x91   :  { %1215 = vmatprep.subr.bf16.mxu0 %v1840_v24 }
  0x93   :  { %1571 = vmatpush1.bf16.msra.mxu1 %v1838_v26 }
  0x94   :  { %1216 = vmatpush1.bf16.msra.mxu0 %v1838_v26  ;;  %1564 = vmatprep.subr.bf16.mxu1 %v1843_v27 }
  0x95   :  { %1217 = vmatprep.subr.bf16.mxu0 %v1843_v27 }
  0x97   :  { %1572 = vmatpush1.bf16.msra.mxu1 %v1841_v28 }
  0x98   :  { %1218 = vmatpush1.bf16.msra.mxu0 %v1841_v28  ;;  %1565 = vmatprep.subr.bf16.mxu1 %v1846_v29 }
  0x99   :  { %1219 = vmatprep.subr.bf16.mxu0 %v1846_v29 }
  0x9b   :  { %1573 = vmatpush1.bf16.msra.mxu1 %v1844_v30 }
  0x9c   :  { %1220 = vmatpush1.bf16.msra.mxu0 %v1844_v30  ;;  %1566 = vmatprep.subr.bf16.mxu1 %v1849_v31 }
  0x9d   :  { %1221 = vmatprep.subr.bf16.mxu0 %v1849_v31 }
  0x9f   :  { %1574 = vmatpush1.bf16.msra.mxu1 %v1847_v32 }
  0xa0   :  { %1222 = vmatpush1.bf16.msra.mxu0 %v1847_v32  ;;  %v1854_v32 = vmov 1966171168  }
  0xa2   :  { %1250 = vmatmul.mubr.bf16.vlgmr.msra.gmra.mrb[8].mxu1 %v1851_v34  ;;  %v1285_v34 = vlaneseq }
  0xa3   :  { %1240 = vmatmul.mubr.bf16.vlgmr.msra.gmra.mrb[0].mxu0 %v1850_v33  ;;  %v1283_v33 = vunpack.c.l.s4 %v1854_v32 }
  0xa4   :  { %vm1300_vm0 = vcmp.lt.s32.totalorder %v1285_v34, 256 }
 0x155   :  { %v1082_v36 = vpop.f32.mrb[0].mxu1 }
 0x156   :  { %v1084_v37 = vpop.f32.mrb[1].mxu1 }
 0x157   :  { %v1086_v38 = vpop.f32.mrb[2].mxu1 }
 0x158   :  { %v1088_v39 = vpop.f32.mrb[3].mxu1 }
 0x15d   :  { %v1092_v40 = vpop.f32.mrb[4].mxu1 }
 0x15e   :  { %v1198_v41 = vpop.f32.mrb[4].mxu0  ;;  %v1094_v43 = vpop.f32.mrb[5].mxu1 }
 0x15f   :  { %v1579_v42 = vadd.f32 %v1198_v41, %v1092_v40  ;;  %v1200_v44 = vpop.f32.mrb[5].mxu0  ;;  %v1096_v46 = vpop.f32.mrb[6].mxu1 }
 0x160   :  { %v1581_v45 = vadd.f32 %v1200_v44, %v1094_v43  ;;  %v1202_v47 = vpop.f32.mrb[6].mxu0  ;;  %v1098_v49 = vpop.f32.mrb[7].mxu1  ;;  %v1284_v43 = vunpack.c.0.s8 %v1283_v33  ;;  %v1286_v44 = vshrl.u32 %v1285_v34, 7 }
 0x161   :  { %v1583_v48 = vadd.f32 %v1202_v47, %v1096_v46  ;;  %v1204_v50 = vpop.f32.mrb[7].mxu0 }
 0x162   :  { %v1585_v51 = vadd.f32 %v1204_v50, %v1098_v49 }
 0x175   :  { %v1251_v53 = vpop.f32.mrb[8].mxu1 }
 0x176   :  { %v1241_v52 = vpop.f32.mrb[0].mxu0  ;;  %v1580_v55 = vadd.f32 %v1579_v42, %v1251_v53  ;;  %v1253_v57 = vpop.f32.mrb[9].mxu1 }
 0x177   :  { %v1575_v54 = vadd.f32 %v1241_v52, %v1082_v36  ;;  %v1243_v56 = vpop.f32.mrb[1].mxu0  ;;  %v1582_v59 = vadd.f32 %v1581_v45, %v1253_v57  ;;  %v1255_v61 = vpop.f32.mrb[10].mxu1 }
 0x178   :  { %v1576_v58 = vadd.f32 %v1243_v56, %v1084_v37  ;;  %v1245_v60 = vpop.f32.mrb[2].mxu0  ;;  %v1584_v63 = vadd.f32 %v1583_v48, %v1255_v61  ;;  %v1257_v1 = vpop.f32.mrb[11].mxu1  ;;  %v1309_v8 = vmul.f32 %v1580_v55, %v1580_v55  ;;  %v1260_v61 = vld [vmem:[%s2390_s3] ss:$2 sm:$0x3] }
 0x179   :  { %v1577_v62 = vadd.f32 %v1245_v60, %v1086_v38  ;;  %v1247_v0 = vpop.f32.mrb[3].mxu0  ;;  %v1557_v3 = vpack.c.bf16 %v1582_v59, %v1580_v55  ;;  %v1305_v4 = vmul.f32 %v1575_v54, %v1575_v54  ;;  %v1586_v10 = vadd.f32 %v1585_v51, %v1257_v1 }
 0x17a   :  { %v1555_v2 = vpack.c.bf16 %v1576_v58, %v1575_v54  ;;  %v1578_v7 = vadd.f32 %v1247_v0, %v1088_v39  ;;  %v1306_v9 = vmul.f32 %v1576_v58, %v1576_v58  ;;  %v1310_v15 = vmul.f32 %v1582_v59, %v1582_v59  ;;  %v1549_v0 = vld [vmem:[%s2390_s3 + $0x1] ss:$2 sm:$0x3] }
 0x17b   :  { %v1261_v5 = vadd.f32 %v1577_v62, %v1575_v54  ;;  %v1307_v6 = vmul.f32 %v1577_v62, %v1577_v62  ;;  %1377 = vst [vmem:[%s2391_s2 + $0x10] sm:$0xff] %v1557_v3  ;;  %v1311_v16 = vmul.f32 %v1584_v63, %v1584_v63  ;;  %v1558_v18 = vpack.c.bf16 %v1586_v10, %v1584_v63 }
 0x17c   :  { %1375 = vst [vmem:[%s2391_s2] sm:$0xff] %v1555_v2  ;;  %v1270_v13 = vadd.f32 %v1578_v7, %v1576_v58  ;;  %v1308_v14 = vmul.f32 %v1578_v7, %v1578_v7  ;;  %v1556_v17 = vpack.c.bf16 %v1578_v7, %v1577_v62  ;;  %v1312_v23 = vmul.f32 %v1586_v10, %v1586_v10 }
 0x17d   :  { %v1313_v11 = vadd.f32 %v1307_v6, %v1305_v4  ;;  %v1262_v12 = vadd.f32 %v1580_v55, %v1261_v5  ;;  %1378 = vst [vmem:[%s2391_s2 + $0x18] sm:$0xff] %v1558_v18  ;;  %v1287_v55 = vsub.s32 %v1284_v43, %v1286_v44 }
 0x17e   :  { %v1322_v21 = vadd.f32 %v1308_v14, %v1306_v9  ;;  %v1271_v22 = vadd.f32 %v1582_v59, %v1270_v13  ;;  %1376 = vst [vmem:[%s2391_s2 + $0x8] sm:$0xff] %v1556_v17 }
 0x17f   :  { %v1263_v19 = vadd.f32 %v1584_v63, %v1262_v12  ;;  %v1314_v20 = vadd.f32 %v1313_v11, %v1309_v8 }
 0x180   :  { %v1272_v26 = vadd.f32 %v1586_v10, %v1271_v22  ;;  %v1323_v27 = vadd.f32 %v1322_v21, %v1310_v15 }
 0x181   :  { %v1264_v24 = vrot.slane %v1263_v19, 4  ;;  %v1315_v25 = vadd.f32 %v1314_v20, %v1311_v16 }
 0x182   :  { %v1273_v30 = vrot.slane %v1272_v26, 4  ;;  %v1324_v31 = vadd.f32 %v1323_v27, %v1312_v23 }
 0x183   :  { %v1265_v28 = vadd.f32 %v1264_v24, %v1263_v19  ;;  %v1316_v29 = vrot.slane %v1315_v25, 4 }
 0x184   :  { %v1274_v37 = vadd.f32 %v1273_v30, %v1272_v26  ;;  %v1325_v38 = vrot.slane %v1324_v31, 4 }
 0x185   :  { %v1266_v35 = vrot.slane %v1265_v28, 2  ;;  %v1317_v36 = vadd.f32 %v1316_v29, %v1315_v25 }
 0x186   :  { %v1275_v41 = vrot.slane %v1274_v37, 2  ;;  %v1326_v42 = vadd.f32 %v1325_v38, %v1324_v31 }
 0x187   :  { %v1267_v39 = vadd.f32 %v1266_v35, %v1265_v28  ;;  %v1318_v40 = vrot.slane %v1317_v36, 2 }
 0x188   :  { %v1276_v47 = vadd.f32 %v1275_v41, %v1274_v37  ;;  %v1327_v48 = vrot.slane %v1326_v42, 2 }
 0x189   :  { %v1268_v45 = vrot.slane %v1267_v39, 1  ;;  %v1319_v46 = vadd.f32 %v1318_v40, %v1317_v36 }
 0x18a   :  { %v1277_v51 = vrot.slane %v1276_v47, 1  ;;  %v1328_v52 = vadd.f32 %v1327_v48, %v1326_v42 }
 0x18b   :  { %v1269_v49 = vadd.f32 %v1268_v45, %v1267_v39  ;;  %v1320_v50 = vrot.slane %v1319_v46, 1 }
 0x18c   :  { %v1278_v54 = vadd.f32 %v1277_v51, %v1276_v47  ;;  %v1329_v56 = vrot.slane %v1328_v52, 1 }
 0x18d   :  { %v1321_v53 = vadd.f32 %v1320_v50, %v1319_v46 }
 0x18e   :  { %v1281_v57 = vcombine.low %v1269_v49, %v1278_v54  ;;  %v1330_v58 = vadd.f32 %v1329_v56, %v1328_v52 }
 0x190   :  { %v1288_v59 = vrot.slane %v1281_v57, %v1287_v55  ;;  %v1333_v60 = vcombine.low %v1321_v53, %v1330_v58 }
 0x192   :  { %v1295_v62 = vrot.slane %v1288_v59, %v1287_v55  ;;  %v1340_v63 = vrot.slane %v1333_v60, %v1287_v55 }
 0x194   :  { %v1297_v1 = vadd.f32 %v1295_v62, %v1260_v61  ;;  %v1347_v2 = vrot.slane %v1340_v63, %v1287_v55 }
 0x196   :  { %1302 = vst.msk [vmem:[%s2390_s3] ss:$2 sm:$0x3] %vm1300_vm0, %v1297_v1  ;;  %v1349_v3 = vadd.f32 %v1549_v0, %v1347_v2 }
 0x198   :  { %1550 = vst.msk [vmem:[%s2390_s3 + $0x1] ss:$2 sm:$0x3] %vm1300_vm0, %v1349_v3 }

// kernel: tile.53
= control target key start
LH: loop header
LB: loop body
LE: loop exit
PB: predicated region body
PF: predicated region fallthrough
CT: control target
= control target key end

     0   :  { %s22_s0 = inlined_call_operand.vmem [shape: f32[32], index: 0, kind: input, shape index: {}]   ;;  %s23_s1 = inlined_call_operand.vmem [shape: f32[4,32], index: 1, kind: output, shape index: {}]  }
   0x1   :  { %v4_v0 = vld [vmem:[%s22_s0] ss:$0 sm:$0xff] }
   0x2   :  { %5 = vst [vmem:[%s23_s1] sm:$0xf] %v4_v0 }

// kernel: tile.54
= control target key start
LH: loop header
LB: loop body
LE: loop exit
PB: predicated region body
PF: predicated region fallthrough
CT: control target
= control target key end

     0   :  { %vm7_vm0 = vcmask 261120   ;;  %s37_s8 = smov 32   ;;  %s38_s9 = smov 64   ;;  %vm13_vm1 = vcmask 1048320   ;;  %vm19_vm2 = vcmask 785920   ;;  %vm25_vm3 = vcmask 523520   ;;  %s55_s0 = inlined_call_operand.vmem [shape: f32[4,32], index: 0, kind: input, shape index: {}]   ;;  %s56_s1 = inlined_call_operand.vmem [shape: f32[1,128], index: 1, kind: output, shape index: {}]  }
   0x1   :  { %v4_v0 = vld [vmem:[%s55_s0] sm:$0xf]  ;;  %s36_s0 = smov 96  }
   0x2   :  { %5 = vst [vmem:[#allocation1] sm:$0xf] %v4_v0 }
   0x9   :  { %v10_v1 = vld [vmem:[#allocation1 + $0x3] sm:$0x1]   ;;  %v22_v2 = vld [vmem:[#allocation1 + $0x1] sm:$0x1]   ;;  %v6_v3 = vld [vmem:[#allocation1] sm:$0x1]  }
   0xa   :  { %11 = vrot.lane.b32.xlu0 %v10_v1, %s36_s0  ;;  %23 = vrot.lane.b32.xlu1 %v22_v2, %s37_s8  ;;  %v16_v4 = vld [vmem:[#allocation1 + $0x2] sm:$0x1]   ;;  %8 = vst.msk [vmem:[#allocation0] sm:$0x1] %vm7_vm0, %v6_v3  }
   0xe   :  { %17 = vrot.lane.b32.xlu0 %v16_v4, %s38_s9 }
  0x7c   :  { %v12_v5 = vpop.permute.xlu0 %11   ;;  %v24_v6 = vpop.permute.xlu1 %23  }
  0x7d   :  { %14 = vst.msk [vmem:[#allocation0] sm:$0x1] %vm13_vm1, %v12_v5  }
  0x80   :  { %v18_v7 = vpop.permute.xlu0 %17  }
  0x81   :  { %20 = vst.msk [vmem:[#allocation0] sm:$0x1] %vm19_vm2, %v18_v7  }
  0x82   :  { %26 = vst.msk [vmem:[#allocation0] sm:$0x1] %vm25_vm3, %v24_v6  }
  0x89   :  { %v30_v8 = vld [vmem:[#allocation0] sm:$0x1] }
  0x8a   :  { %32 = vst [vmem:[%s56_s1] sm:$0x1] %v30_v8 }

// kernel: generator_forward.12
= control target key start
LH: loop header
LB: loop body
LE: loop exit
PB: predicated region body
PF: predicated region fallthrough
CT: control target
= control target key end

     0   :  { %s422_s0 = inlined_call_operand.vmem [shape: bf16[128,128], index: 0, kind: input, shape index: {}]   ;;  %s423_s1 = inlined_call_operand.vmem [shape: f32[1,128], index: 1, kind: input, shape index: {}]   ;;  %s424_s2 = inlined_call_operand.vmem [shape: f32[1,128], index: 2, kind: input, shape index: {}]   ;;  %s425_s3 = inlined_call_operand.vmem [shape: bf16[128,128], index: 3, kind: output, shape index: {}]  }
   0x1   :  { %v227_v0 = vld [vmem:[%s422_s0] sm:$0xff]   ;;  %v298_v4 = vld [vmem:[%s422_s0 + $0x8] sm:$0xff]   ;;  %v299_v5 = vld [vmem:[%s422_s0 + $0x10] sm:$0xff]  }
   0x2   :  { %v338_v1 = vld [vmem:[%s423_s1] ss:$0 sm:$0xff]  ;;  %v228_v2 = vunpack.c.l.bf16 %v227_v0  ;;  %v229_v3 = vunpack.c.h.bf16 %v227_v0  ;;  %v300_v6 = vld [vmem:[%s422_s0 + $0x18] sm:$0xff]   ;;  %v232_v8 = vunpack.c.l.bf16 %v298_v4  ;;  %v233_v9 = vunpack.c.h.bf16 %v298_v4  ;;  %v302_v33 = vld [vmem:[%s422_s0 + $0x28] sm:$0xff]  }
   0x3   :  { %v352_v7 = vld [vmem:[%s424_s2] ss:$0 sm:$0xff]  ;;  %v236_v10 = vunpack.c.l.bf16 %v299_v5  ;;  %v237_v11 = vunpack.c.h.bf16 %v299_v5  ;;  %v240_v14 = vunpack.c.l.bf16 %v300_v6  ;;  %v241_v15 = vunpack.c.h.bf16 %v300_v6  ;;  %v303_v38 = vld [vmem:[%s422_s0 + $0x30] sm:$0xff]   ;;  %v304_v43 = vld [vmem:[%s422_s0 + $0x38] sm:$0xff]  }
   0x4   :  { %v53_v12 = vmul.f32 %v228_v2, %v338_v1  ;;  %v54_v13 = vmul.f32 %v229_v3, %v338_v1  ;;  %v55_v16 = vmul.f32 %v232_v8, %v338_v1  ;;  %v56_v17 = vmul.f32 %v233_v9, %v338_v1  ;;  %v301_v28 = vld [vmem:[%s422_s0 + $0x20] sm:$0xff]  }
   0x5   :  { %v57_v18 = vmul.f32 %v236_v10, %v338_v1  ;;  %v58_v19 = vmul.f32 %v237_v11, %v338_v1  ;;  %v59_v22 = vmul.f32 %v240_v14, %v338_v1  ;;  %v60_v23 = vmul.f32 %v241_v15, %v338_v1 }
   0x6   :  { %v76_v20 = vadd.f32 %v352_v7, %v53_v12  ;;  %v77_v21 = vadd.f32 %v352_v7, %v54_v13  ;;  %v78_v24 = vadd.f32 %v352_v7, %v55_v16  ;;  %v79_v25 = vadd.f32 %v352_v7, %v56_v17 }
   0x7   :  { %v80_v26 = vadd.f32 %v352_v7, %v57_v18  ;;  %v81_v27 = vadd.f32 %v352_v7, %v58_v19  ;;  %v82_v31 = vadd.f32 %v352_v7, %v59_v22  ;;  %v83_v32 = vadd.f32 %v352_v7, %v60_v23 }
   0x8   :  { %v92_v29 = vmax.f32 %v76_v20, 0.0  ;;  %v93_v30 = vmax.f32 %v77_v21, 0.0  ;;  %v94_v34 = vmax.f32 %v78_v24, 0.0  ;;  %v95_v35 = vmax.f32 %v79_v25, 0.0 }
   0x9   :  { %v96_v36 = vmax.f32 %v80_v26, 0.0  ;;  %v97_v37 = vmax.f32 %v81_v27, 0.0  ;;  %v98_v40 = vmax.f32 %v82_v31, 0.0  ;;  %v99_v41 = vmax.f32 %v83_v32, 0.0 }
   0xa   :  { %v261_v39 = vpack.c.bf16 %v93_v30, %v92_v29  ;;  %v244_v42 = vunpack.c.l.bf16 %v301_v28  ;;  %v266_v44 = vpack.c.bf16 %v95_v35, %v94_v34  ;;  %v245_v46 = vunpack.c.h.bf16 %v301_v28 }
   0xb   :  { %v271_v45 = vpack.c.bf16 %v97_v37, %v96_v36  ;;  %v248_v47 = vunpack.c.l.bf16 %v302_v33  ;;  %v276_v48 = vpack.c.bf16 %v99_v41, %v98_v40  ;;  %v249_v50 = vunpack.c.h.bf16 %v302_v33 }
   0xc   :  { %262 = vst [vmem:[%s425_s3] sm:$0xff] %v261_v39   ;;  %v61_v49 = vmul.f32 %v244_v42, %v338_v1  ;;  %v252_v51 = vunpack.c.l.bf16 %v303_v38  ;;  %305 = vst [vmem:[%s425_s3 + $0x8] sm:$0xff] %v266_v44   ;;  %v62_v52 = vmul.f32 %v245_v46, %v338_v1  ;;  %v253_v54 = vunpack.c.h.bf16 %v303_v38 }
   0xd   :  { %306 = vst [vmem:[%s425_s3 + $0x10] sm:$0xff] %v271_v45   ;;  %v63_v53 = vmul.f32 %v248_v47, %v338_v1  ;;  %v256_v55 = vunpack.c.l.bf16 %v304_v43  ;;  %307 = vst [vmem:[%s425_s3 + $0x18] sm:$0xff] %v276_v48   ;;  %v64_v57 = vmul.f32 %v249_v50, %v338_v1  ;;  %v257_v59 = vunpack.c.h.bf16 %v304_v43 }
   0xe   :  { %v84_v56 = vadd.f32 %v352_v7, %v61_v49  ;;  %v65_v58 = vmul.f32 %v252_v51, %v338_v1  ;;  %v85_v60 = vadd.f32 %v352_v7, %v62_v52  ;;  %v66_v62 = vmul.f32 %v253_v54, %v338_v1 }
   0xf   :  { %v86_v61 = vadd.f32 %v352_v7, %v63_v53  ;;  %v67_v63 = vmul.f32 %v256_v55, %v338_v1  ;;  %v87_v2 = vadd.f32 %v352_v7, %v64_v57  ;;  %v68_v4 = vmul.f32 %v257_v59, %v338_v1 }
  0x10   :  { %v100_v0 = vmax.f32 %v84_v56, 0.0  ;;  %v88_v3 = vadd.f32 %v352_v7, %v65_v58  ;;  %v101_v5 = vmax.f32 %v85_v60, 0.0  ;;  %v89_v8 = vadd.f32 %v352_v7, %v66_v62 }
  0x11   :  { %v102_v6 = vmax.f32 %v86_v61, 0.0  ;;  %v90_v9 = vadd.f32 %v352_v7, %v67_v63  ;;  %v103_v10 = vmax.f32 %v87_v2, 0.0  ;;  %v91_v12 = vadd.f32 %v352_v7, %v68_v4 }
  0x12   :  { %v104_v11 = vmax.f32 %v88_v3, 0.0  ;;  %v281_v13 = vpack.c.bf16 %v101_v5, %v100_v0  ;;  %v105_v14 = vmax.f32 %v89_v8, 0.0 }
  0x13   :  { %v106_v15 = vmax.f32 %v90_v9, 0.0  ;;  %v286_v16 = vpack.c.bf16 %v103_v10, %v102_v6  ;;  %v107_v17 = vmax.f32 %v91_v12, 0.0 }
  0x14   :  { %308 = vst [vmem:[%s425_s3 + $0x20] sm:$0xff] %v281_v13   ;;  %v291_v1 = vpack.c.bf16 %v105_v14, %v104_v11 }
  0x15   :  { %309 = vst [vmem:[%s425_s3 + $0x28] sm:$0xff] %v286_v16   ;;  %v296_v18 = vpack.c.bf16 %v107_v17, %v106_v15 }
  0x16   :  { %310 = vst [vmem:[%s425_s3 + $0x30] sm:$0xff] %v291_v1  }
  0x17   :  { %311 = vst [vmem:[%s425_s3 + $0x38] sm:$0xff] %v296_v18  }

// kernel: generator_forward.11
= control target key start
LH: loop header
LB: loop body
LE: loop exit
PB: predicated region body
PF: predicated region fallthrough
CT: control target
= control target key end

     0   :  { %vm555_vm0 = vcmask 523264   ;;  %s1792_s1 = inlined_call_operand.vmem [shape: bf16[576,128], index: 1, kind: input, shape index: {}]   ;;  %s1793_s0 = inlined_call_operand.vmem [shape: bf16[128,576], index: 0, kind: input, shape index: {}]   ;;  %s1794_s3 = inlined_call_operand.vmem [shape: f32[2,128], index: 3, kind: output, shape index: {1}]   ;;  %s1795_s2 = inlined_call_operand.vmem [shape: bf16[128,128], index: 2, kind: output, shape index: {0}]  }
   0x1   :  { %v1359_v0 = vld [vmem:[%s1792_s1 + $0x40] sm:$0xff]   ;;  %v1363_v4 = vld [vmem:[%s1792_s1 + $0x48] sm:$0xff]   ;;  %v1367_v8 = vld [vmem:[%s1792_s1 + $0x50] sm:$0xff]  }
   0x2   :  { %v1360_v1 = vld [vmem:[%s1792_s1 + $0xc0] sm:$0xff]   ;;  %1186 = vmatprep.subr.bf16.mxu0 %v1359_v0  ;;  %v1364_v5 = vld [vmem:[%s1792_s1 + $0xc8] sm:$0xff]   ;;  %v1368_v9 = vld [vmem:[%s1792_s1 + $0xd0] sm:$0xff]  }
   0x3   :  { %v1361_v2 = vld [vmem:[%s1792_s1] sm:$0xff]   ;;  %1250 = vmatprep.subr.bf16.mxu1 %v1360_v1  ;;  %v1365_v6 = vld [vmem:[%s1792_s1 + $0x8] sm:$0xff]   ;;  %v1369_v10 = vld [vmem:[%s1792_s1 + $0x10] sm:$0xff]  }
   0x4   :  { %v1362_v3 = vld [vmem:[%s1792_s1 + $0x80] sm:$0xff]   ;;  %1187 = vmatpush3.bf16.msra.mxu0 %v1361_v2  ;;  %v1366_v7 = vld [vmem:[%s1792_s1 + $0x88] sm:$0xff]   ;;  %v1370_v11 = vld [vmem:[%s1792_s1 + $0x90] sm:$0xff]  }
   0x5   :  { %1251 = vmatpush3.bf16.msra.mxu1 %v1362_v3  ;;  %1188 = vmatprep.subr.bf16.mxu0 %v1363_v4  ;;  %v1371_v12 = vld [vmem:[%s1792_s1 + $0x58] sm:$0xff]   ;;  %v1375_v16 = vld [vmem:[%s1792_s1 + $0x60] sm:$0xff]   ;;  %v1379_v20 = vld [vmem:[%s1792_s1 + $0x68] sm:$0xff]  }
   0x6   :  { %1252 = vmatprep.subr.bf16.mxu1 %v1364_v5  ;;  %v1372_v13 = vld [vmem:[%s1792_s1 + $0xd8] sm:$0xff]   ;;  %v1376_v17 = vld [vmem:[%s1792_s1 + $0xe0] sm:$0xff]   ;;  %v1380_v21 = vld [vmem:[%s1792_s1 + $0xe8] sm:$0xff]  }
   0x7   :  { %v1373_v14 = vld [vmem:[%s1792_s1 + $0x18] sm:$0xff]   ;;  %v1377_v18 = vld [vmem:[%s1792_s1 + $0x20] sm:$0xff]   ;;  %v1381_v22 = vld [vmem:[%s1792_s1 + $0x28] sm:$0xff]  }
   0x8   :  { %1189 = vmatpush3.bf16.msra.mxu0 %v1365_v6  ;;  %v1374_v15 = vld [vmem:[%s1792_s1 + $0x98] sm:$0xff]   ;;  %v1378_v19 = vld [vmem:[%s1792_s1 + $0xa0] sm:$0xff]   ;;  %v1382_v23 = vld [vmem:[%s1792_s1 + $0xa8] sm:$0xff]  }
   0x9   :  { %1253 = vmatpush3.bf16.msra.mxu1 %v1366_v7  ;;  %1190 = vmatprep.subr.bf16.mxu0 %v1367_v8  ;;  %v1383_v24 = vld [vmem:[%s1792_s1 + $0x70] sm:$0xff]   ;;  %v1387_v28 = vld [vmem:[%s1792_s1 + $0x78] sm:$0xff]   ;;  %v1396_v35 = vld [vmem:[%s1793_s0 + $0xc] ss:$20 sps:$4 sm:$0xff]  }
   0xa   :  { %1254 = vmatprep.subr.bf16.mxu1 %v1368_v9  ;;  %v1384_v25 = vld [vmem:[%s1792_s1 + $0xf0] sm:$0xff]   ;;  %v1388_v29 = vld [vmem:[%s1792_s1 + $0xf8] sm:$0xff]   ;;  %v1397_v36 = vld [vmem:[%s1792_s1 + $0x100] sm:$0xff]   ;;  %709 = vmatprep.mubr.bf16.mxu1 %v1396_v35 }
   0xb   :  { %v1385_v26 = vld [vmem:[%s1792_s1 + $0x30] sm:$0xff]   ;;  %v1389_v30 = vld [vmem:[%s1792_s1 + $0x38] sm:$0xff]   ;;  %v1398_v37 = vld [vmem:[%s1793_s0 + $0x2c] ss:$20 sps:$4 sm:$0xff]  }
   0xc   :  { %1191 = vmatpush3.bf16.msra.mxu0 %v1369_v10  ;;  %v1386_v27 = vld [vmem:[%s1792_s1 + $0xb0] sm:$0xff]   ;;  %v1390_v31 = vld [vmem:[%s1792_s1 + $0xb8] sm:$0xff]   ;;  %v1410_v42 = vld [vmem:[%s1792_s1 + $0x108] sm:$0xff]  }
   0xd   :  { %1255 = vmatpush3.bf16.msra.mxu1 %v1370_v11  ;;  %1192 = vmatprep.subr.bf16.mxu0 %v1371_v12  ;;  %v1391_v32 = vld [vmem:[%s1793_s0] ss:$20 sps:$4 sm:$0xff]   ;;  %v1393_v33 = vld [vmem:[%s1793_s0 + $0x4] ss:$20 sps:$4 sm:$0xff]   ;;  %v1394_v34 = vld [vmem:[%s1793_s0 + $0x8] ss:$20 sps:$4 sm:$0xff]  }
   0xe   :  { %1256 = vmatprep.subr.bf16.mxu1 %v1372_v13  ;;  %612 = vmatprep.mubr.bf16.mxu0 %v1393_v33  ;;  %v1400_v38 = vld [vmem:[%s1793_s0 + $0x34] ss:$20 sps:$4 sm:$0xff]   ;;  %v1403_v40 = vld [vmem:[%s1793_s0 + $0x30] ss:$20 sps:$4 sm:$0xff]   ;;  %v1409_v45 = vld [vmem:[%s1793_s0 + $0x58] ss:$20 sps:$4 sm:$0xff]  }
   0xf   :  { %v1402_v39 = vld [vmem:[%s1793_s0 + $0x28] ss:$20 sps:$4 sm:$0xff]   ;;  %v1408_v44 = vld [vmem:[%s1793_s0 + $0x50] ss:$20 sps:$4 sm:$0xff]   ;;  %v1415_v50 = vld [vmem:[%s1793_s0 + $0x78] ss:$20 sps:$4 sm:$0xff]  }
  0x10   :  { %1193 = vmatpush3.bf16.msra.mxu0 %v1373_v14  ;;  %v1404_v41 = vld [vmem:[%s1793_s0 + $0x54] ss:$20 sps:$4 sm:$0xff]   ;;  %v1406_v43 = vld [vmem:[%s1793_s0 + $0x5c] ss:$20 sps:$4 sm:$0xff]   ;;  %v1413_v48 = vld [vmem:[%s1793_s0 + $0x84] ss:$20 sps:$4 sm:$0xff]  }
  0x11   :  { %1257 = vmatpush3.bf16.msra.mxu1 %v1374_v15  ;;  %1194 = vmatprep.subr.bf16.mxu0 %v1375_v16  ;;  %v1423_v46 = vld [vmem:[%s1792_s1 + $0x110] sm:$0xff]   ;;  %v1436_v49 = vld [vmem:[%s1792_s1 + $0x118] sm:$0xff]   ;;  %v1419_v53 = vld [vmem:[%s1793_s0 + $0xac] ss:$20 sps:$4 sm:$0xff]   ;;  %v1451_v12 = vmov 0.0  }
  0x12   :  { %1258 = vmatprep.subr.bf16.mxu1 %v1376_v17  ;;  %v1411_v47 = vld [vmem:[%s1793_s0 + $0x7c] ss:$20 sps:$4 sm:$0xff]   ;;  %v1416_v51 = vld [vmem:[%s1793_s0 + $0x80] ss:$20 sps:$4 sm:$0xff]   ;;  %v1417_v52 = vld [vmem:[%s1793_s0 + $0xa4] ss:$20 sps:$4 sm:$0xff]  }
  0x13   :  { %v1421_v54 = vld [vmem:[%s1793_s0 + $0xa0] ss:$20 sps:$4 sm:$0xff]   ;;  %v1422_v55 = vld [vmem:[%s1793_s0 + $0xa8] ss:$20 sps:$4 sm:$0xff]   ;;  %v1429_v59 = vld [vmem:[%s1793_s0 + $0xd0] ss:$20 sps:$4 sm:$0xff]  }
  0x14   :  { %1195 = vmatpush3.bf16.msra.mxu0 %v1377_v18  ;;  %v1424_v56 = vld [vmem:[%s1793_s0 + $0xcc] ss:$20 sps:$4 sm:$0xff]   ;;  %v1426_v57 = vld [vmem:[%s1793_s0 + $0xd4] ss:$20 sps:$4 sm:$0xff]   ;;  %v1432_v61 = vld [vmem:[%s1793_s0 + $0xfc] ss:$20 sps:$4 sm:$0xff]  }
  0x15   :  { %1259 = vmatpush3.bf16.msra.mxu1 %v1378_v19  ;;  %1196 = vmatprep.subr.bf16.mxu0 %v1379_v20  ;;  %v1428_v58 = vld [vmem:[%s1793_s0 + $0xc8] ss:$20 sps:$4 sm:$0xff]   ;;  %v1434_v62 = vld [vmem:[%s1793_s0 + $0xf0] ss:$20 sps:$4 sm:$0xff]   ;;  %v1435_v63 = vld [vmem:[%s1793_s0 + $0xf8] ss:$20 sps:$4 sm:$0xff]  }
  0x16   :  { %1260 = vmatprep.subr.bf16.mxu1 %v1380_v21  ;;  %v1430_v60 = vld [vmem:[%s1793_s0 + $0xf4] ss:$20 sps:$4 sm:$0xff]   ;;  %v1437_v0 = vld [vmem:[%s1793_s0 + $0x11c] ss:$20 sps:$4 sm:$0xff]   ;;  %v1439_v1 = vld [vmem:[%s1793_s0 + $0x124] ss:$20 sps:$4 sm:$0xff]  }
  0x17   :  { %v1441_v2 = vld [vmem:[%s1793_s0 + $0x118] ss:$20 sps:$4 sm:$0xff]   ;;  %v1442_v3 = vld [vmem:[%s1793_s0 + $0x120] ss:$20 sps:$4 sm:$0xff]   ;;  %v1443_v4 = vld [vmem:[%s1793_s0 + $0x10] ss:$20 sps:$4 sm:$0xff]  }
  0x18   :  { %1197 = vmatpush3.bf16.msra.mxu0 %v1381_v22  ;;  %v1444_v5 = vld [vmem:[%s1793_s0 + $0xb0] ss:$20 sps:$4 sm:$0xff]   ;;  %v1445_v6 = vld [vmem:[%s1793_s0 + $0x38] ss:$20 sps:$4 sm:$0xff]   ;;  %v1447_v8 = vld [vmem:[%s1793_s0 + $0x60] ss:$20 sps:$4 sm:$0xff]  }
  0x19   :  { %1261 = vmatpush3.bf16.msra.mxu1 %v1382_v23  ;;  %1198 = vmatprep.subr.bf16.mxu0 %v1383_v24  ;;  %v1446_v7 = vld [vmem:[%s1793_s0 + $0xd8] ss:$20 sps:$4 sm:$0xff]   ;;  %v1448_v9 = vld [vmem:[%s1793_s0 + $0x100] ss:$20 sps:$4 sm:$0xff]   ;;  %v1449_v10 = vld [vmem:[%s1793_s0 + $0x88] ss:$20 sps:$4 sm:$0xff]  }
  0x1a   :  { %1262 = vmatprep.subr.bf16.mxu1 %v1384_v25  ;;  %v1450_v11 = vld [vmem:[%s1793_s0 + $0x128] ss:$20 sps:$4 sm:$0xff]   ;;  %18 = vst [vmem:[%s1794_s3] sm:$0x3] %v1451_v12 }
  0x1c   :  { %1199 = vmatpush3.bf16.msra.mxu0 %v1385_v26 }
  0x1d   :  { %1263 = vmatpush3.bf16.msra.mxu1 %v1386_v27  ;;  %1200 = vmatprep.subr.bf16.mxu0 %v1387_v28 }
  0x1e   :  { %1264 = vmatprep.subr.bf16.mxu1 %v1388_v29 }
  0x20   :  { %1201 = vmatpush3.bf16.msra.mxu0 %v1389_v30 }
  0x21   :  { %1265 = vmatpush3.bf16.msra.mxu1 %v1390_v31  ;;  %1326 = vmatprep.subr.bf16.mxu0 %v1397_v36 }
  0x22   :  { %1350 = vmatprep.subr.bf16.mxu1 %v1397_v36 }
  0x23   :  { %613 = vmatmul.mubr.bf16.vlgmr.msra.gmra.mrb[0].mxu0 %v1391_v32 }
  0x24   :  { %710 = vmatmul.mubr.bf16.vlgmr.msra.gmra.mrb[0].mxu1 %v1394_v34  ;;  %1327 = vmatpush3.bf16.msra.mxu0 %v1397_v36 }
  0x25   :  { %620 = vmatprep.mubr.bf16.mxu0 %v1398_v37  ;;  %717 = vmatprep.mubr.bf16.mxu1 %v1400_v38 }
  0x26   :  { %1354 = vmatpush3.bf16.msra.mxu1 %v1397_v36  ;;  %1328 = vmatprep.subr.bf16.mxu0 %v1410_v42 }
  0x27   :  { %1351 = vmatprep.subr.bf16.mxu1 %v1410_v42 }
  0x28   :  { %1329 = vmatpush3.bf16.msra.mxu0 %v1410_v42 }
  0x29   :  { %1330 = vmatprep.subr.bf16.mxu0 %v1423_v46 }
  0x2a   :  { %1355 = vmatpush3.bf16.msra.mxu1 %v1410_v42 }
  0x2b   :  { %621 = vmatmul.mubr.bf16.gmra.mrb[4].mxu0 %v1402_v39  ;;  %1352 = vmatprep.subr.bf16.mxu1 %v1423_v46 }
  0x2c   :  { %718 = vmatmul.mubr.bf16.gmra.mrb[4].mxu1 %v1403_v40  ;;  %628 = vmatprep.mubr.bf16.mxu0 %v1404_v41 }
  0x2d   :  { %725 = vmatprep.mubr.bf16.mxu1 %v1406_v43  ;;  %1331 = vmatpush3.bf16.msra.mxu0 %v1423_v46 }
  0x2e   :  { %1356 = vmatpush3.bf16.msra.mxu1 %v1423_v46  ;;  %1332 = vmatprep.subr.bf16.mxu0 %v1436_v49 }
  0x2f   :  { %1353 = vmatprep.subr.bf16.mxu1 %v1436_v49 }
  0x31   :  { %1333 = vmatpush3.bf16.msra.mxu0 %v1436_v49 }
  0x32   :  { %1357 = vmatpush3.bf16.msra.mxu1 %v1436_v49 }
  0x33   :  { %629 = vmatmul.mubr.bf16.gmra.mrb[8].mxu0 %v1408_v44 }
  0x34   :  { %726 = vmatmul.mubr.bf16.gmra.mrb[8].mxu1 %v1409_v45  ;;  %636 = vmatprep.mubr.bf16.mxu0 %v1411_v47 }
  0x35   :  { %733 = vmatprep.mubr.bf16.mxu1 %v1413_v48 }
  0x3b   :  { %637 = vmatmul.mubr.bf16.gmra.mrb[12].mxu0 %v1415_v50 }
  0x3c   :  { %734 = vmatmul.mubr.bf16.gmra.mrb[12].mxu1 %v1416_v51  ;;  %644 = vmatprep.mubr.bf16.mxu0 %v1417_v52 }
  0x3d   :  { %741 = vmatprep.mubr.bf16.mxu1 %v1419_v53 }
  0x43   :  { %645 = vmatmul.mubr.bf16.gmra.mrb[16].mxu0 %v1421_v54 }
  0x44   :  { %742 = vmatmul.mubr.bf16.gmra.mrb[16].mxu1 %v1422_v55  ;;  %652 = vmatprep.mubr.bf16.mxu0 %v1424_v56 }
  0x45   :  { %749 = vmatprep.mubr.bf16.mxu1 %v1426_v57 }
  0x4b   :  { %653 = vmatmul.mubr.bf16.gmra.mrb[20].mxu0 %v1428_v58 }
  0x4c   :  { %750 = vmatmul.mubr.bf16.gmra.mrb[20].mxu1 %v1429_v59  ;;  %660 = vmatprep.mubr.bf16.mxu0 %v1430_v60 }
  0x4d   :  { %757 = vmatprep.mubr.bf16.mxu1 %v1432_v61 }
  0x53   :  { %661 = vmatmul.mubr.bf16.gmra.mrb[24].mxu0 %v1434_v62 }
  0x54   :  { %758 = vmatmul.mubr.bf16.gmra.mrb[24].mxu1 %v1435_v63  ;;  %668 = vmatprep.mubr.bf16.mxu0 %v1437_v0 }
  0x55   :  { %765 = vmatprep.mubr.bf16.mxu1 %v1439_v1 }
  0x5b   :  { %669 = vmatmul.mubr.bf16.gmra.mrb[28].mxu0 %v1441_v2 }
  0x5c   :  { %766 = vmatmul.mubr.bf16.gmra.mrb[28].mxu1 %v1442_v3  ;;  %1334 = vmatprep.mubr.msk.bf16.mxu0 %vm555_vm0, %v1443_v4 }
  0x5d   :  { %1342 = vmatprep.mubr.msk.bf16.mxu1 %vm555_vm0, %v1444_v5 }
  0x63   :  { %1335 = vmatmul.mubr.msk.bf16.vlgmr.msra.gmra.mrb[32].mxu0 %vm555_vm0, %v1445_v6 }
  0x64   :  { %1343 = vmatmul.mubr.msk.bf16.vlgmr.msra.gmra.mrb[32].mxu1 %vm555_vm0, %v1446_v7  ;;  %1338 = vmatprep.mubr.msk.bf16.mxu0 %vm555_vm0, %v1447_v8 }
  0x65   :  { %1346 = vmatprep.mubr.msk.bf16.mxu1 %vm555_vm0, %v1448_v9 }
  0x6b   :  { %1339 = vmatmul.mubr.msk.bf16.gmra.mrb[36].mxu0 %vm555_vm0, %v1449_v10 }
  0x6c   :  { %1347 = vmatmul.mubr.msk.bf16.gmra.mrb[36].mxu1 %vm555_vm0, %v1450_v11 }
  0xf6   :  { %v1202_v13 = vpop.f32.mrb[0].mxu0 }
  0xf7   :  { %v1266_v14 = vpop.f32.mrb[0].mxu1  ;;  %v1203_v15 = vpop.f32.mrb[1].mxu0 }
  0xf8   :  { %v1204_v16 = vadd.f32 %v1203_v15, %v1202_v13  ;;  %v1267_v17 = vpop.f32.mrb[1].mxu1  ;;  %v1205_v18 = vpop.f32.mrb[2].mxu0 }
  0xf9   :  { %v1268_v19 = vadd.f32 %v1267_v17, %v1266_v14  ;;  %v1269_v20 = vpop.f32.mrb[2].mxu1  ;;  %v1206_v21 = vpop.f32.mrb[3].mxu0 }
  0xfa   :  { %v1207_v22 = vadd.f32 %v1206_v21, %v1205_v18  ;;  %v1270_v23 = vpop.f32.mrb[3].mxu1 }
  0xfb   :  { %v1271_v24 = vadd.f32 %v1270_v23, %v1269_v20  ;;  %v1711_v25 = vadd.f32 %v1268_v19, %v1204_v16 }
  0xfd   :  { %v1713_v26 = vadd.f32 %v1271_v24, %v1207_v22 }
  0xfe   :  { %v1208_v27 = vpop.f32.mrb[4].mxu0 }
  0xff   :  { %v1272_v28 = vpop.f32.mrb[4].mxu1  ;;  %v1209_v29 = vpop.f32.mrb[5].mxu0 }
 0x100   :  { %v1210_v30 = vadd.f32 %v1209_v29, %v1208_v27  ;;  %v1273_v31 = vpop.f32.mrb[5].mxu1  ;;  %v1211_v32 = vpop.f32.mrb[6].mxu0 }
 0x101   :  { %v1274_v33 = vadd.f32 %v1273_v31, %v1272_v28  ;;  %v1275_v34 = vpop.f32.mrb[6].mxu1  ;;  %v1212_v35 = vpop.f32.mrb[7].mxu0 }
 0x102   :  { %v1213_v36 = vadd.f32 %v1212_v35, %v1211_v32  ;;  %v1276_v37 = vpop.f32.mrb[7].mxu1 }
 0x103   :  { %v1277_v38 = vadd.f32 %v1276_v37, %v1275_v34  ;;  %v1715_v39 = vadd.f32 %v1274_v33, %v1210_v30 }
 0x105   :  { %v1717_v40 = vadd.f32 %v1277_v38, %v1213_v36 }
 0x106   :  { %v1214_v41 = vpop.f32.mrb[8].mxu0 }
 0x107   :  { %v1278_v42 = vpop.f32.mrb[8].mxu1  ;;  %v1215_v43 = vpop.f32.mrb[9].mxu0 }
 0x108   :  { %v1216_v44 = vadd.f32 %v1215_v43, %v1214_v41  ;;  %v1279_v45 = vpop.f32.mrb[9].mxu1  ;;  %v1217_v46 = vpop.f32.mrb[10].mxu0 }
 0x109   :  { %v1280_v47 = vadd.f32 %v1279_v45, %v1278_v42  ;;  %v1281_v48 = vpop.f32.mrb[10].mxu1  ;;  %v1218_v49 = vpop.f32.mrb[11].mxu0 }
 0x10a   :  { %v1219_v50 = vadd.f32 %v1218_v49, %v1217_v46  ;;  %v1282_v51 = vpop.f32.mrb[11].mxu1 }
 0x10b   :  { %v1283_v52 = vadd.f32 %v1282_v51, %v1281_v48  ;;  %v1719_v53 = vadd.f32 %v1280_v47, %v1216_v44 }
 0x10d   :  { %v1721_v54 = vadd.f32 %v1283_v52, %v1219_v50 }
 0x10e   :  { %v1220_v55 = vpop.f32.mrb[12].mxu0 }
 0x10f   :  { %v1284_v56 = vpop.f32.mrb[12].mxu1  ;;  %v1221_v57 = vpop.f32.mrb[13].mxu0 }
 0x110   :  { %v1222_v58 = vadd.f32 %v1221_v57, %v1220_v55  ;;  %v1285_v59 = vpop.f32.mrb[13].mxu1  ;;  %v1223_v60 = vpop.f32.mrb[14].mxu0 }
 0x111   :  { %v1286_v61 = vadd.f32 %v1285_v59, %v1284_v56  ;;  %v1287_v62 = vpop.f32.mrb[14].mxu1  ;;  %v1224_v63 = vpop.f32.mrb[15].mxu0 }
 0x112   :  { %v1225_v0 = vadd.f32 %v1224_v63, %v1223_v60  ;;  %v1288_v1 = vpop.f32.mrb[15].mxu1 }
 0x113   :  { %v1289_v2 = vadd.f32 %v1288_v1, %v1287_v62  ;;  %v1723_v3 = vadd.f32 %v1286_v61, %v1222_v58 }
 0x115   :  { %v1725_v4 = vadd.f32 %v1289_v2, %v1225_v0 }
 0x116   :  { %v1226_v5 = vpop.f32.mrb[16].mxu0 }
 0x117   :  { %v1290_v6 = vpop.f32.mrb[16].mxu1  ;;  %v1227_v7 = vpop.f32.mrb[17].mxu0 }
 0x118   :  { %v1228_v8 = vadd.f32 %v1227_v7, %v1226_v5  ;;  %v1291_v9 = vpop.f32.mrb[17].mxu1  ;;  %v1229_v10 = vpop.f32.mrb[18].mxu0 }
 0x119   :  { %v1292_v11 = vadd.f32 %v1291_v9, %v1290_v6  ;;  %v1293_v12 = vpop.f32.mrb[18].mxu1  ;;  %v1230_v13 = vpop.f32.mrb[19].mxu0 }
 0x11a   :  { %v1231_v14 = vadd.f32 %v1230_v13, %v1229_v10  ;;  %v1294_v15 = vpop.f32.mrb[19].mxu1 }
 0x11b   :  { %v1295_v16 = vadd.f32 %v1294_v15, %v1293_v12  ;;  %v744_v17 = vadd.f32 %v1292_v11, %v1228_v8 }
 0x11d   :  { %v747_v18 = vadd.f32 %v1295_v16, %v1231_v14 }
 0x11e   :  { %v1232_v19 = vpop.f32.mrb[20].mxu0 }
 0x11f   :  { %v1296_v20 = vpop.f32.mrb[20].mxu1  ;;  %v1233_v21 = vpop.f32.mrb[21].mxu0 }
 0x120   :  { %v1234_v22 = vadd.f32 %v1233_v21, %v1232_v19  ;;  %v1297_v23 = vpop.f32.mrb[21].mxu1  ;;  %v1235_v24 = vpop.f32.mrb[22].mxu0 }
 0x121   :  { %v1298_v27 = vadd.f32 %v1297_v23, %v1296_v20  ;;  %v1299_v28 = vpop.f32.mrb[22].mxu1  ;;  %v1236_v29 = vpop.f32.mrb[23].mxu0 }
 0x122   :  { %v1237_v30 = vadd.f32 %v1236_v29, %v1235_v24  ;;  %v1300_v31 = vpop.f32.mrb[23].mxu1 }
 0x123   :  { %v1301_v32 = vadd.f32 %v1300_v31, %v1299_v28  ;;  %v752_v33 = vadd.f32 %v1298_v27, %v1234_v22 }
 0x125   :  { %v755_v34 = vadd.f32 %v1301_v32, %v1237_v30 }
 0x126   :  { %v1238_v35 = vpop.f32.mrb[24].mxu0 }
 0x127   :  { %v1302_v36 = vpop.f32.mrb[24].mxu1  ;;  %v1239_v37 = vpop.f32.mrb[25].mxu0 }
 0x128   :  { %v1240_v38 = vadd.f32 %v1239_v37, %v1238_v35  ;;  %v1303_v41 = vpop.f32.mrb[25].mxu1  ;;  %v1241_v42 = vpop.f32.mrb[26].mxu0 }
 0x129   :  { %v1304_v43 = vadd.f32 %v1303_v41, %v1302_v36  ;;  %v1305_v44 = vpop.f32.mrb[26].mxu1  ;;  %v1242_v45 = vpop.f32.mrb[27].mxu0 }
 0x12a   :  { %v1243_v46 = vadd.f32 %v1242_v45, %v1241_v42  ;;  %v1306_v47 = vpop.f32.mrb[27].mxu1 }
 0x12b   :  { %v1307_v48 = vadd.f32 %v1306_v47, %v1305_v44  ;;  %v760_v49 = vadd.f32 %v1304_v43, %v1240_v38 }
 0x12d   :  { %v1727_v50 = vadd.f32 %v1307_v48, %v1243_v46 }
 0x12e   :  { %v1244_v51 = vpop.f32.mrb[28].mxu0 }
 0x12f   :  { %v1308_v52 = vpop.f32.mrb[28].mxu1  ;;  %v1245_v55 = vpop.f32.mrb[29].mxu0 }
 0x130   :  { %v1246_v56 = vadd.f32 %v1245_v55, %v1244_v51  ;;  %v1309_v57 = vpop.f32.mrb[29].mxu1  ;;  %v1247_v58 = vpop.f32.mrb[30].mxu0 }
 0x131   :  { %v1310_v59 = vadd.f32 %v1309_v57, %v1308_v52  ;;  %v1311_v60 = vpop.f32.mrb[30].mxu1  ;;  %v1248_v61 = vpop.f32.mrb[31].mxu0 }
 0x132   :  { %v1249_v62 = vadd.f32 %v1248_v61, %v1247_v58  ;;  %v1312_v63 = vpop.f32.mrb[31].mxu1 }
 0x133   :  { %v1313_v0 = vadd.f32 %v1312_v63, %v1311_v60  ;;  %v768_v1 = vadd.f32 %v1310_v59, %v1246_v56 }
 0x135   :  { %v771_v2 = vadd.f32 %v1313_v0, %v1249_v62 }
 0x136   :  { %v1336_v5 = vpop.f32.mrb[32].mxu0 }
 0x137   :  { %v817_v6 = vadd.f32 %v1336_v5, %v1715_v39  ;;  %v1344_v7 = vpop.f32.mrb[32].mxu1  ;;  %v808_v8 = vpop.f32.mrb[33].mxu0 }
 0x138   :  { %v1730_v9 = vadd.f32 %v1344_v7, %v752_v33  ;;  %v809_v10 = vadd.f32 %v808_v8, %v1711_v25  ;;  %v840_v11 = vpop.f32.mrb[33].mxu1  ;;  %v1337_v12 = vpop.f32.mrb[34].mxu0 }
 0x139   :  { %v1733_v13 = vadd.f32 %v840_v11, %v744_v17  ;;  %v820_v14 = vadd.f32 %v1337_v12, %v1717_v40  ;;  %v1345_v15 = vpop.f32.mrb[34].mxu1  ;;  %v811_v16 = vpop.f32.mrb[35].mxu0  ;;  %v898_v28 = vmul.f32 %v817_v6, %v817_v6 }
 0x13a   :  { %v1736_v19 = vadd.f32 %v1345_v15, %v755_v34  ;;  %v812_v20 = vadd.f32 %v811_v16, %v1713_v26  ;;  %v843_v21 = vpop.f32.mrb[35].mxu1  ;;  %v896_v23 = vmul.f32 %v809_v10, %v809_v10  ;;  %v906_v8 = vmul.f32 %v1730_v9, %v1730_v9 }
 0x13b   :  { %v1147_v39 = vpack.c.bf16 %v820_v14, %v817_v6  ;;  %v844_v22 = vadd.f32 %v843_v21, %v747_v18  ;;  %v899_v30 = vmul.f32 %v820_v14, %v820_v14  ;;  %v904_v0 = vmul.f32 %v1733_v13, %v1733_v13 }
 0x13c   :  { %v1167_v24 = vpack.c.bf16 %v1736_v19, %v1730_v9  ;;  %v872_v25 = vadd.f32 %v812_v20, %v809_v10  ;;  %v897_v27 = vmul.f32 %v812_v20, %v812_v20  ;;  %v1142_v40 = vpack.c.bf16 %v812_v20, %v809_v10 }
 0x13d   :  { %1179 = vst [vmem:[%s1795_s2 + $0x8] sm:$0xff] %v1147_v39   ;;  %v1162_v17 = vpack.c.bf16 %v844_v22, %v1733_v13  ;;  %v905_v5 = vmul.f32 %v844_v22, %v844_v22  ;;  %v907_v12 = vmul.f32 %v1736_v19, %v1736_v19 }
 0x13e   :  { %1183 = vst [vmem:[%s1795_s2 + $0x28] sm:$0xff] %v1167_v24   ;;  %v873_v26 = vadd.f32 %v872_v25, %v817_v6  ;;  %v912_v18 = vadd.f32 %v897_v27, %v896_v23  ;;  %v1340_v29 = vpop.f32.mrb[36].mxu0  ;;  %1143 = vst [vmem:[%s1795_s2] sm:$0xff] %v1142_v40  }
 0x13f   :  { %1182 = vst [vmem:[%s1795_s2 + $0x20] sm:$0xff] %v1162_v17   ;;  %v833_v31 = vadd.f32 %v1340_v29, %v1723_v3  ;;  %v1348_v32 = vpop.f32.mrb[36].mxu1  ;;  %v824_v33 = vpop.f32.mrb[37].mxu0 }
 0x140   :  { %v913_v34 = vadd.f32 %v912_v18, %v898_v28  ;;  %v865_v35 = vadd.f32 %v1348_v32, %v768_v1  ;;  %v825_v36 = vadd.f32 %v824_v33, %v1719_v53  ;;  %v874_v37 = vadd.f32 %v873_v26, %v820_v14  ;;  %v856_v38 = vpop.f32.mrb[37].mxu1  ;;  %v1341_v41 = vpop.f32.mrb[38].mxu0 }
 0x141   :  { %v857_v42 = vadd.f32 %v856_v38, %v760_v49  ;;  %v836_v43 = vadd.f32 %v1341_v41, %v1725_v4  ;;  %v1349_v44 = vpop.f32.mrb[38].mxu1  ;;  %v827_v45 = vpop.f32.mrb[39].mxu0  ;;  %v902_v60 = vmul.f32 %v833_v31, %v833_v31 }
 0x142   :  { %v875_v46 = vadd.f32 %v874_v37, %v825_v36  ;;  %v900_v47 = vmul.f32 %v825_v36, %v825_v36  ;;  %v914_v48 = vadd.f32 %v913_v34, %v899_v30  ;;  %v859_v51 = vpop.f32.mrb[39].mxu1  ;;  %v868_v3 = vadd.f32 %v1349_v44, %v771_v2  ;;  %v871_v34 = vld [vmem:[%s1794_s3] sm:$0x1]  ;;  %v895_v37 = vld [vmem:[%s1794_s3 + $0x1] sm:$0x1] }
 0x143   :  { %v1157_v52 = vpack.c.bf16 %v836_v43, %v833_v31  ;;  %v828_v56 = vadd.f32 %v827_v45, %v1721_v54  ;;  %v860_v57 = vadd.f32 %v859_v51, %v1727_v50  ;;  %v903_v54 = vmul.f32 %v836_v43, %v836_v43 }
 0x144   :  { %v915_v55 = vadd.f32 %v914_v48, %v900_v47  ;;  %v1177_v53 = vpack.c.bf16 %v868_v3, %v865_v35  ;;  %v908_v16 = vmul.f32 %v857_v42, %v857_v42  ;;  %v910_v24 = vmul.f32 %v865_v35, %v865_v35 }
 0x145   :  { %1181 = vst [vmem:[%s1795_s2 + $0x18] sm:$0xff] %v1157_v52   ;;  %v876_v49 = vadd.f32 %v875_v46, %v828_v56  ;;  %v901_v4 = vmul.f32 %v828_v56, %v828_v56  ;;  %v1152_v58 = vpack.c.bf16 %v828_v56, %v825_v36  ;;  %v1172_v59 = vpack.c.bf16 %v860_v57, %v857_v42 }
 0x146   :  { %1185 = vst [vmem:[%s1795_s2 + $0x38] sm:$0xff] %v1177_v53   ;;  %v909_v39 = vmul.f32 %v860_v57, %v860_v57  ;;  %v911_v27 = vmul.f32 %v868_v3, %v868_v3 }
 0x147   :  { %v877_v61 = vadd.f32 %v876_v49, %v833_v31  ;;  %v916_v62 = vadd.f32 %v915_v55, %v901_v4  ;;  %1180 = vst [vmem:[%s1795_s2 + $0x10] sm:$0xff] %v1152_v58   ;;  %1184 = vst [vmem:[%s1795_s2 + $0x30] sm:$0xff] %v1172_v59  }
 0x149   :  { %v878_v50 = vadd.f32 %v877_v61, %v836_v43  ;;  %v917_v63 = vadd.f32 %v916_v62, %v902_v60 }
 0x14b   :  { %v879_v1 = vadd.f32 %v878_v50, %v1733_v13  ;;  %v918_v2 = vadd.f32 %v917_v63, %v903_v54 }
 0x14d   :  { %v919_v6 = vadd.f32 %v918_v2, %v904_v0  ;;  %v880_v7 = vadd.f32 %v879_v1, %v844_v22 }
 0x14f   :  { %v881_v10 = vadd.f32 %v880_v7, %v1730_v9  ;;  %v920_v11 = vadd.f32 %v919_v6, %v905_v5 }
 0x151   :  { %v882_v14 = vadd.f32 %v881_v10, %v1736_v19  ;;  %v921_v15 = vadd.f32 %v920_v11, %v906_v8 }
 0x153   :  { %v883_v20 = vadd.f32 %v882_v14, %v857_v42  ;;  %v922_v21 = vadd.f32 %v921_v15, %v907_v12 }
 0x155   :  { %v884_v13 = vadd.f32 %v883_v20, %v860_v57  ;;  %v923_v23 = vadd.f32 %v922_v21, %v908_v16 }
 0x157   :  { %v885_v22 = vadd.f32 %v884_v13, %v865_v35  ;;  %v924_v25 = vadd.f32 %v923_v23, %v909_v39 }
 0x159   :  { %v886_v40 = vadd.f32 %v885_v22, %v868_v3  ;;  %v925_v17 = vadd.f32 %v924_v25, %v910_v24 }
 0x15b   :  { %v887_v9 = vrot.slane %v886_v40, 4  ;;  %v926_v28 = vadd.f32 %v925_v17, %v911_v27 }
 0x15d   :  { %v888_v26 = vadd.f32 %v887_v9, %v886_v40  ;;  %v927_v18 = vrot.slane %v926_v28, 4 }
 0x15f   :  { %v889_v29 = vrot.slane %v888_v26, 2  ;;  %v928_v30 = vadd.f32 %v927_v18, %v926_v28 }
 0x161   :  { %v890_v19 = vadd.f32 %v889_v29, %v888_v26  ;;  %v929_v31 = vrot.slane %v928_v30, 2 }
 0x163   :  { %v891_v32 = vrot.slane %v890_v19, 1  ;;  %v930_v33 = vadd.f32 %v929_v31, %v928_v30 }
 0x165   :  { %v892_v36 = vadd.f32 %v891_v32, %v890_v19  ;;  %v931_v35 = vrot.slane %v930_v33, 1 }
 0x167   :  { %v893_v38 = vadd.f32 %v892_v36, %v871_v34  ;;  %v932_v41 = vadd.f32 %v931_v35, %v930_v33 }
 0x169   :  { %894 = vst [vmem:[%s1794_s3] sm:$0x1] %v893_v38  ;;  %v933_v42 = vadd.f32 %v932_v41, %v895_v37 }
 0x16b   :  { %934 = vst [vmem:[%s1794_s3 + $0x1] sm:$0x1] %v933_v42 }

// kernel: generator_forward.13
= control target key start
LH: loop header
LB: loop body
LE: loop exit
PB: predicated region body
PF: predicated region fallthrough
CT: control target
= control target key end

     0   :  { %v2127_v0 = vmov 0   ;;  %vm764_vm0 = vcmask 261120   ;;  %vm1503_vm1 = vcmask 31744   ;;  %s2922_s1 = inlined_call_operand.vmem [shape: bf16[288,4], index: 1, kind: input, shape index: {}]   ;;  %s2923_s0 = inlined_call_operand.vmem [shape: bf16[512,288], index: 0, kind: input, shape index: {}]   ;;  %s2924_s2 = inlined_call_operand.vmem [shape: f32[512,4], index: 2, kind: output, shape index: {}]  }
   0x1   :  { %861 = vmatprep.subr.bf16.mxu0 %v2127_v0  ;;  %1820 = vmatprep.subr.bf16.mxu1 %v2127_v0  ;;  %v1853_v1 = vld [vmem:[%s2922_s1] sm:$0xff]   ;;  %v1854_v2 = vld [vmem:[%s2922_s1 + $0x8] sm:$0xff]   ;;  %v1855_v3 = vld [vmem:[%s2922_s1 + $0x10] sm:$0xff]  }
   0x2   :  { %862 = vmatpush1.bf16.msra.mxu0 %v1853_v1  ;;  %1836 = vmatpush1.bf16.msra.mxu1 %v1853_v1  ;;  %v1856_v4 = vld [vmem:[%s2922_s1 + $0x18] sm:$0xff]   ;;  %v1857_v5 = vld [vmem:[%s2922_s1 + $0x20] sm:$0xff]   ;;  %v1858_v7 = vld [vmem:[%s2922_s1 + $0x28] sm:$0xff]  }
   0x3   :  { %863 = vmatprep.subr.bf16.mxu0 %v2127_v0  ;;  %1821 = vmatprep.subr.bf16.mxu1 %v2127_v0  ;;  %v1871_v6 = vld [vmem:[%s2923_s0 + $0x4] ss:$12 sps:$4 sm:$0xff]   ;;  %v1860_v10 = vld [vmem:[%s2922_s1 + $0x38] sm:$0xff]   ;;  %v1862_v12 = vld [vmem:[%s2922_s1 + $0x48] sm:$0xff]  }
   0x4   :  { %v1874_v8 = vld [vmem:[%s2923_s0 + $0x244] ss:$12 sps:$4 sm:$0xff]   ;;  %893 = vmatprep.mubr.bf16.mxu0 %v1871_v6  ;;  %v1864_v14 = vld [vmem:[%s2922_s1 + $0x58] sm:$0xff]   ;;  %v1866_v16 = vld [vmem:[%s2922_s1 + $0x68] sm:$0xff]  }
   0x5   :  { %1085 = vmatprep.mubr.bf16.mxu1 %v1874_v8  ;;  %v1859_v9 = vld [vmem:[%s2922_s1 + $0x30] sm:$0xff]   ;;  %v1861_v11 = vld [vmem:[%s2922_s1 + $0x40] sm:$0xff]   ;;  %v1868_v18 = vld [vmem:[%s2922_s1 + $0x78] sm:$0xff]  }
   0x6   :  { %864 = vmatpush1.bf16.msra.mxu0 %v1854_v2  ;;  %1837 = vmatpush1.bf16.msra.mxu1 %v1854_v2  ;;  %v1863_v13 = vld [vmem:[%s2922_s1 + $0x50] sm:$0xff]   ;;  %v1865_v15 = vld [vmem:[%s2922_s1 + $0x60] sm:$0xff]   ;;  %v1876_v22 = vld [vmem:[%s2923_s0 + $0x1c] ss:$12 sps:$4 sm:$0xff]  }
   0x7   :  { %865 = vmatprep.subr.bf16.mxu0 %v2127_v0  ;;  %1822 = vmatprep.subr.bf16.mxu1 %v2127_v0  ;;  %v1867_v17 = vld [vmem:[%s2922_s1 + $0x70] sm:$0xff]   ;;  %v1875_v19 = vld [vmem:[%s2922_s1 + $0x80] sm:$0xff]   ;;  %v1878_v23 = vld [vmem:[%s2923_s0 + $0x25c] ss:$12 sps:$4 sm:$0xff]  }
   0x8   :  { %v1869_v20 = vld [vmem:[%s2923_s0] ss:$12 sps:$4 sm:$0xff]   ;;  %v1880_v25 = vld [vmem:[%s2923_s0 + $0x18] ss:$12 sps:$4 sm:$0xff]   ;;  %v1886_v29 = vld [vmem:[%s2923_s0 + $0x30] ss:$12 sps:$4 sm:$0xff]  }
   0x9   :  { %v1872_v21 = vld [vmem:[%s2923_s0 + $0x240] ss:$12 sps:$4 sm:$0xff]   ;;  %v1881_v26 = vld [vmem:[%s2923_s0 + $0x258] ss:$12 sps:$4 sm:$0xff]   ;;  %v1887_v30 = vld [vmem:[%s2923_s0 + $0x270] ss:$12 sps:$4 sm:$0xff]  }
   0xa   :  { %866 = vmatpush1.bf16.msra.mxu0 %v1855_v3  ;;  %1838 = vmatpush1.bf16.msra.mxu1 %v1855_v3  ;;  %v1900_v24 = vld [vmem:[%s2922_s1 + $0x88] sm:$0xff]   ;;  %v1882_v27 = vld [vmem:[%s2923_s0 + $0x34] ss:$12 sps:$4 sm:$0xff]   ;;  %v1894_v35 = vld [vmem:[%s2923_s0 + $0x64] ss:$12 sps:$4 sm:$0xff]  }
   0xb   :  { %867 = vmatprep.subr.bf16.mxu0 %v2127_v0  ;;  %1823 = vmatprep.subr.bf16.mxu1 %v2127_v0  ;;  %v1884_v28 = vld [vmem:[%s2923_s0 + $0x274] ss:$12 sps:$4 sm:$0xff]   ;;  %v1888_v31 = vld [vmem:[%s2923_s0 + $0x4c] ss:$12 sps:$4 sm:$0xff]   ;;  %v1896_v36 = vld [vmem:[%s2923_s0 + $0x2a4] ss:$12 sps:$4 sm:$0xff]  }
   0xc   :  { %v1890_v32 = vld [vmem:[%s2923_s0 + $0x28c] ss:$12 sps:$4 sm:$0xff]   ;;  %v1892_v33 = vld [vmem:[%s2923_s0 + $0x48] ss:$12 sps:$4 sm:$0xff]   ;;  %v1911_v45 = vld [vmem:[%s2923_s0 + $0x90] ss:$12 sps:$4 sm:$0xff]  }
   0xd   :  { %v1893_v34 = vld [vmem:[%s2923_s0 + $0x288] ss:$12 sps:$4 sm:$0xff]   ;;  %v1898_v37 = vld [vmem:[%s2923_s0 + $0x60] ss:$12 sps:$4 sm:$0xff]   ;;  %v1905_v41 = vld [vmem:[%s2923_s0 + $0x78] ss:$12 sps:$4 sm:$0xff]  }
   0xe   :  { %868 = vmatpush1.bf16.msra.mxu0 %v1856_v4  ;;  %1839 = vmatpush1.bf16.msra.mxu1 %v1856_v4  ;;  %v1899_v38 = vld [vmem:[%s2923_s0 + $0x2a0] ss:$12 sps:$4 sm:$0xff]   ;;  %v1901_v39 = vld [vmem:[%s2923_s0 + $0x7c] ss:$12 sps:$4 sm:$0xff]   ;;  %v1906_v42 = vld [vmem:[%s2923_s0 + $0x2b8] ss:$12 sps:$4 sm:$0xff]  }
   0xf   :  { %869 = vmatprep.subr.bf16.mxu0 %v2127_v0  ;;  %1824 = vmatprep.subr.bf16.mxu1 %v2127_v0  ;;  %v1903_v40 = vld [vmem:[%s2923_s0 + $0x2bc] ss:$12 sps:$4 sm:$0xff]   ;;  %v1907_v43 = vld [vmem:[%s2923_s0 + $0x94] ss:$12 sps:$4 sm:$0xff]   ;;  %v1913_v47 = vld [vmem:[%s2923_s0 + $0xac] ss:$12 sps:$4 sm:$0xff]  }
  0x10   :  { %v1909_v44 = vld [vmem:[%s2923_s0 + $0x2d4] ss:$12 sps:$4 sm:$0xff]   ;;  %v1912_v46 = vld [vmem:[%s2923_s0 + $0x2d0] ss:$12 sps:$4 sm:$0xff]   ;;  %v1915_v48 = vld [vmem:[%s2923_s0 + $0x2ec] ss:$12 sps:$4 sm:$0xff]  }
  0x11   :  { %v1917_v49 = vld [vmem:[%s2923_s0 + $0xa8] ss:$12 sps:$4 sm:$0xff]   ;;  %v1919_v51 = vld [vmem:[%s2923_s0 + $0xc4] ss:$12 sps:$4 sm:$0xff]   ;;  %v1922_v53 = vld [vmem:[%s2923_s0 + $0xc0] ss:$12 sps:$4 sm:$0xff]  }
  0x12   :  { %870 = vmatpush1.bf16.msra.mxu0 %v1857_v5  ;;  %1840 = vmatpush1.bf16.msra.mxu1 %v1857_v5  ;;  %v1918_v50 = vld [vmem:[%s2923_s0 + $0x2e8] ss:$12 sps:$4 sm:$0xff]   ;;  %v1923_v54 = vld [vmem:[%s2923_s0 + $0x20] ss:$12 sps:$4 sm:$0xff]   ;;  %v1926_v56 = vld [vmem:[%s2923_s0 + $0x38] ss:$12 sps:$4 sm:$0xff]  }
  0x13   :  { %871 = vmatprep.subr.bf16.mxu0 %v2127_v0  ;;  %1825 = vmatprep.subr.bf16.mxu1 %v2127_v0  ;;  %v1921_v52 = vld [vmem:[%s2923_s0 + $0x8] ss:$12 sps:$4 sm:$0xff]   ;;  %v1927_v57 = vld [vmem:[%s2923_s0 + $0xd8] ss:$12 sps:$4 sm:$0xff]   ;;  %v1928_v58 = vld [vmem:[%s2923_s0 + $0x50] ss:$12 sps:$4 sm:$0xff]  }
  0x14   :  { %v1924_v55 = vld [vmem:[%s2923_s0 + $0xdc] ss:$12 sps:$4 sm:$0xff]   ;;  %v1929_v59 = vld [vmem:[%s2923_s0 + $0xf4] ss:$12 sps:$4 sm:$0xff]   ;;  %v1934_v63 = vld [vmem:[%s2923_s0 + $0x10c] ss:$12 sps:$4 sm:$0xff]  }
  0x15   :  { %v1931_v60 = vld [vmem:[%s2923_s0 + $0x68] ss:$12 sps:$4 sm:$0xff]   ;;  %v1932_v61 = vld [vmem:[%s2923_s0 + $0xf0] ss:$12 sps:$4 sm:$0xff]   ;;  %v1933_v62 = vld [vmem:[%s2923_s0 + $0x80] ss:$12 sps:$4 sm:$0xff]  }
  0x16   :  { %872 = vmatpush1.bf16.msra.mxu0 %v1858_v7  ;;  %1841 = vmatpush1.bf16.msra.mxu1 %v1858_v7  ;;  %v1937_v1 = vld [vmem:[%s2923_s0 + $0x108] ss:$12 sps:$4 sm:$0xff]   ;;  %v1938_v2 = vld [vmem:[%s2923_s0 + $0xb0] ss:$12 sps:$4 sm:$0xff]   ;;  %v1942_v5 = vld [vmem:[%s2923_s0 + $0x120] ss:$12 sps:$4 sm:$0xff]  }
  0x17   :  { %873 = vmatprep.subr.bf16.mxu0 %v2127_v0  ;;  %1826 = vmatprep.subr.bf16.mxu1 %v2127_v0  ;;  %v1939_v3 = vld [vmem:[%s2923_s0 + $0x124] ss:$12 sps:$4 sm:$0xff]   ;;  %v1941_v4 = vld [vmem:[%s2923_s0 + $0xc8] ss:$12 sps:$4 sm:$0xff]   ;;  %v1943_v6 = vld [vmem:[%s2923_s0 + $0xe0] ss:$12 sps:$4 sm:$0xff]  }
  0x18   :  { %v1944_v7 = vld [vmem:[%s2923_s0 + $0x13c] ss:$12 sps:$4 sm:$0xff]   ;;  %v1946_v8 = vld [vmem:[%s2923_s0 + $0xf8] ss:$12 sps:$4 sm:$0xff]  }
  0x1a   :  { %874 = vmatpush1.bf16.msra.mxu0 %v1859_v9  ;;  %1842 = vmatpush1.bf16.msra.mxu1 %v1859_v9  ;;  %v1947_v9 = vld [vmem:[%s2923_s0 + $0x138] ss:$12 sps:$4 sm:$0xff]  }
  0x1b   :  { %875 = vmatprep.subr.bf16.mxu0 %v2127_v0  ;;  %1827 = vmatprep.subr.bf16.mxu1 %v2127_v0 }
  0x1e   :  { %876 = vmatpush1.bf16.msra.mxu0 %v1860_v10  ;;  %1843 = vmatpush1.bf16.msra.mxu1 %v1860_v10  ;;  %v1948_v10 = vld [vmem:[%s2923_s0 + $0x110] ss:$12 sps:$4 sm:$0xff]  }
  0x1f   :  { %877 = vmatprep.subr.bf16.mxu0 %v2127_v0  ;;  %1828 = vmatprep.subr.bf16.mxu1 %v2127_v0 }
  0x22   :  { %878 = vmatpush1.bf16.msra.mxu0 %v1861_v11  ;;  %1844 = vmatpush1.bf16.msra.mxu1 %v1861_v11  ;;  %v1949_v11 = vld [vmem:[%s2923_s0 + $0x154] ss:$12 sps:$4 sm:$0xff]  }
  0x23   :  { %879 = vmatprep.subr.bf16.mxu0 %v2127_v0  ;;  %1829 = vmatprep.subr.bf16.mxu1 %v2127_v0 }
  0x26   :  { %880 = vmatpush1.bf16.msra.mxu0 %v1862_v12  ;;  %1845 = vmatpush1.bf16.msra.mxu1 %v1862_v12  ;;  %v1951_v12 = vld [vmem:[%s2923_s0 + $0x128] ss:$12 sps:$4 sm:$0xff]  }
  0x27   :  { %881 = vmatprep.subr.bf16.mxu0 %v2127_v0  ;;  %1830 = vmatprep.subr.bf16.mxu1 %v2127_v0 }
  0x2a   :  { %882 = vmatpush1.bf16.msra.mxu0 %v1863_v13  ;;  %1846 = vmatpush1.bf16.msra.mxu1 %v1863_v13  ;;  %v1952_v13 = vld [vmem:[%s2923_s0 + $0x150] ss:$12 sps:$4 sm:$0xff]  }
  0x2b   :  { %883 = vmatprep.subr.bf16.mxu0 %v2127_v0  ;;  %1831 = vmatprep.subr.bf16.mxu1 %v2127_v0 }
  0x2e   :  { %884 = vmatpush1.bf16.msra.mxu0 %v1864_v14  ;;  %1847 = vmatpush1.bf16.msra.mxu1 %v1864_v14  ;;  %v1953_v14 = vld [vmem:[%s2923_s0 + $0x140] ss:$12 sps:$4 sm:$0xff]  }
  0x2f   :  { %885 = vmatprep.subr.bf16.mxu0 %v2127_v0  ;;  %1832 = vmatprep.subr.bf16.mxu1 %v2127_v0 }
  0x32   :  { %886 = vmatpush1.bf16.msra.mxu0 %v1865_v15  ;;  %1848 = vmatpush1.bf16.msra.mxu1 %v1865_v15  ;;  %v1954_v15 = vld [vmem:[%s2923_s0 + $0x16c] ss:$12 sps:$4 sm:$0xff]  }
  0x33   :  { %887 = vmatprep.subr.bf16.mxu0 %v2127_v0  ;;  %1833 = vmatprep.subr.bf16.mxu1 %v2127_v0 }
  0x36   :  { %888 = vmatpush1.bf16.msra.mxu0 %v1866_v16  ;;  %1849 = vmatpush1.bf16.msra.mxu1 %v1866_v16  ;;  %v1956_v16 = vld [vmem:[%s2923_s0 + $0x158] ss:$12 sps:$4 sm:$0xff]  }
  0x37   :  { %889 = vmatprep.subr.bf16.mxu0 %v2127_v0  ;;  %1834 = vmatprep.subr.bf16.mxu1 %v2127_v0 }
  0x3a   :  { %890 = vmatpush1.bf16.msra.mxu0 %v1867_v17  ;;  %1850 = vmatpush1.bf16.msra.mxu1 %v1867_v17  ;;  %v1957_v17 = vld [vmem:[%s2923_s0 + $0x168] ss:$12 sps:$4 sm:$0xff]  }
  0x3b   :  { %891 = vmatprep.subr.bf16.mxu0 %v2127_v0  ;;  %1835 = vmatprep.subr.bf16.mxu1 %v2127_v0  ;;  %v1936_v0 = vld [vmem:[%s2923_s0 + $0x98] ss:$12 sps:$4 sm:$0xff]  }
  0x3e   :  { %892 = vmatpush1.bf16.msra.mxu0 %v1868_v18  ;;  %1851 = vmatpush1.bf16.msra.mxu1 %v1868_v18  ;;  %v1958_v18 = vld [vmem:[%s2923_s0 + $0x170] ss:$12 sps:$4 sm:$0xff]  }
  0x3f   :  { %1752 = vmatprep.subr.bf16.mxu1 %v1875_v19 }
  0x41   :  { %894 = vmatmul.mubr.bf16.vlgmr.msra.gmra.mrb[0].mxu0 %v1869_v20  ;;  %1086 = vmatmul.mubr.bf16.vlgmr.msra.gmra.mrb[0].mxu1 %v1872_v21  ;;  %v1961_v20 = vld [vmem:[%s2923_s0 + $0x188] ss:$12 sps:$4 sm:$0xff]   ;;  %v1962_v21 = vld [vmem:[%s2923_s0 + $0x180] ss:$12 sps:$4 sm:$0xff]  }
  0x42   :  { %1753 = vmatpush3.bf16.msra.mxu1 %v1875_v19  ;;  %901 = vmatprep.mubr.bf16.mxu0 %v1876_v22  ;;  %v1959_v19 = vld [vmem:[%s2923_s0 + $0x184] ss:$12 sps:$4 sm:$0xff]   ;;  %v1963_v22 = vld [vmem:[%s2923_s0 + $0x1a0] ss:$12 sps:$4 sm:$0xff]  }
  0x43   :  { %1093 = vmatprep.mubr.bf16.mxu1 %v1878_v23  ;;  %1754 = vmatprep.subr.bf16.mxu1 %v1900_v24  ;;  %v1964_v23 = vld [vmem:[%s2923_s0 + $0x19c] ss:$12 sps:$4 sm:$0xff]  }
  0x46   :  { %1755 = vmatpush3.bf16.msra.mxu1 %v1900_v24  ;;  %v1966_v24 = vld [vmem:[%s2923_s0 + $0x1b8] ss:$12 sps:$4 sm:$0xff]  }
  0x49   :  { %902 = vmatmul.mubr.bf16.gmra.mrb[4].mxu0 %v1880_v25  ;;  %1094 = vmatmul.mubr.bf16.gmra.mrb[4].mxu1 %v1881_v26  ;;  %v1967_v25 = vld [vmem:[%s2923_s0 + $0x198] ss:$12 sps:$4 sm:$0xff]   ;;  %v1968_v26 = vld [vmem:[%s2923_s0 + $0x1d0] ss:$12 sps:$4 sm:$0xff]  }
  0x4a   :  { %909 = vmatprep.mubr.bf16.mxu0 %v1882_v27  ;;  %1101 = vmatprep.mubr.bf16.mxu1 %v1884_v28  ;;  %v1969_v27 = vld [vmem:[%s2923_s0 + $0x1b4] ss:$12 sps:$4 sm:$0xff]  }
  0x4b   :  { %v1971_v28 = vld [vmem:[%s2923_s0 + $0x1e8] ss:$12 sps:$4 sm:$0xff]  }
  0x51   :  { %910 = vmatmul.mubr.bf16.gmra.mrb[8].mxu0 %v1886_v29  ;;  %1102 = vmatmul.mubr.bf16.gmra.mrb[8].mxu1 %v1887_v30  ;;  %v1972_v29 = vld [vmem:[%s2923_s0 + $0x1b0] ss:$12 sps:$4 sm:$0xff]   ;;  %v1973_v30 = vld [vmem:[%s2923_s0 + $0x200] ss:$12 sps:$4 sm:$0xff]  }
  0x52   :  { %917 = vmatprep.mubr.bf16.mxu0 %v1888_v31  ;;  %1109 = vmatprep.mubr.bf16.mxu1 %v1890_v32  ;;  %v1974_v31 = vld [vmem:[%s2923_s0 + $0x1cc] ss:$12 sps:$4 sm:$0xff]  }
  0x53   :  { %v1976_v32 = vld [vmem:[%s2923_s0 + $0x218] ss:$12 sps:$4 sm:$0xff]  }
  0x59   :  { %918 = vmatmul.mubr.bf16.gmra.mrb[12].mxu0 %v1892_v33  ;;  %1110 = vmatmul.mubr.bf16.gmra.mrb[12].mxu1 %v1893_v34  ;;  %v1977_v33 = vld [vmem:[%s2923_s0 + $0x1c8] ss:$12 sps:$4 sm:$0xff]   ;;  %v1978_v34 = vld [vmem:[%s2923_s0 + $0x230] ss:$12 sps:$4 sm:$0xff]  }
  0x5a   :  { %925 = vmatprep.mubr.bf16.mxu0 %v1894_v35  ;;  %1117 = vmatprep.mubr.bf16.mxu1 %v1896_v36  ;;  %v1979_v35 = vld [vmem:[%s2923_s0 + $0x1e4] ss:$12 sps:$4 sm:$0xff]   ;;  %v1981_v36 = vld [vmem:[%s2923_s0 + $0x248] ss:$12 sps:$4 sm:$0xff]  }
  0x61   :  { %926 = vmatmul.mubr.bf16.gmra.mrb[16].mxu0 %v1898_v37  ;;  %1118 = vmatmul.mubr.bf16.gmra.mrb[16].mxu1 %v1899_v38  ;;  %v1982_v37 = vld [vmem:[%s2923_s0 + $0x1e0] ss:$12 sps:$4 sm:$0xff]  }
  0x62   :  { %933 = vmatprep.mubr.bf16.mxu0 %v1901_v39  ;;  %1125 = vmatprep.mubr.bf16.mxu1 %v1903_v40  ;;  %v1983_v38 = vld [vmem:[%s2923_s0 + $0x260] ss:$12 sps:$4 sm:$0xff]   ;;  %v1984_v39 = vld [vmem:[%s2923_s0 + $0x1fc] ss:$12 sps:$4 sm:$0xff]   ;;  %v1986_v40 = vld [vmem:[%s2923_s0 + $0x278] ss:$12 sps:$4 sm:$0xff]  }
  0x69   :  { %934 = vmatmul.mubr.bf16.gmra.mrb[20].mxu0 %v1905_v41  ;;  %1126 = vmatmul.mubr.bf16.gmra.mrb[20].mxu1 %v1906_v42  ;;  %v1987_v41 = vld [vmem:[%s2923_s0 + $0x1f8] ss:$12 sps:$4 sm:$0xff]   ;;  %v1988_v42 = vld [vmem:[%s2923_s0 + $0x290] ss:$12 sps:$4 sm:$0xff]  }
  0x6a   :  { %941 = vmatprep.mubr.bf16.mxu0 %v1907_v43  ;;  %1133 = vmatprep.mubr.bf16.mxu1 %v1909_v44  ;;  %v1989_v43 = vld [vmem:[%s2923_s0 + $0x214] ss:$12 sps:$4 sm:$0xff]  }
  0x6b   :  { %v1991_v44 = vld [vmem:[%s2923_s0 + $0x2a8] ss:$12 sps:$4 sm:$0xff]  }
  0x71   :  { %942 = vmatmul.mubr.bf16.gmra.mrb[24].mxu0 %v1911_v45  ;;  %1134 = vmatmul.mubr.bf16.gmra.mrb[24].mxu1 %v1912_v46  ;;  %v1992_v45 = vld [vmem:[%s2923_s0 + $0x210] ss:$12 sps:$4 sm:$0xff]   ;;  %v1993_v46 = vld [vmem:[%s2923_s0 + $0x2c0] ss:$12 sps:$4 sm:$0xff]  }
  0x72   :  { %949 = vmatprep.mubr.bf16.mxu0 %v1913_v47  ;;  %1141 = vmatprep.mubr.bf16.mxu1 %v1915_v48  ;;  %v1994_v47 = vld [vmem:[%s2923_s0 + $0x22c] ss:$12 sps:$4 sm:$0xff]  }
  0x73   :  { %v1996_v48 = vld [vmem:[%s2923_s0 + $0x2d8] ss:$12 sps:$4 sm:$0xff]  }
  0x79   :  { %950 = vmatmul.mubr.bf16.gmra.mrb[28].mxu0 %v1917_v49  ;;  %1142 = vmatmul.mubr.bf16.gmra.mrb[28].mxu1 %v1918_v50  ;;  %v1997_v49 = vld [vmem:[%s2923_s0 + $0x228] ss:$12 sps:$4 sm:$0xff]   ;;  %v1998_v50 = vld [vmem:[%s2923_s0 + $0x2f0] ss:$12 sps:$4 sm:$0xff]  }
  0x7a   :  { %957 = vmatprep.mubr.bf16.mxu0 %v1919_v51  ;;  %1756 = vmatprep.mubr.msk.bf16.mxu1 %vm764_vm0, %v1921_v52 }
  0x81   :  { %958 = vmatmul.mubr.bf16.gmra.mrb[32].mxu0 %v1922_v53  ;;  %1757 = vmatmul.mubr.msk.bf16.vlgmr.msra.gmra.mrb[32].mxu1 %vm764_vm0, %v1923_v54 }
  0x82   :  { %965 = vmatprep.mubr.bf16.mxu0 %v1924_v55  ;;  %1760 = vmatprep.mubr.msk.bf16.mxu1 %vm764_vm0, %v1926_v56 }
  0x89   :  { %966 = vmatmul.mubr.bf16.gmra.mrb[36].mxu0 %v1927_v57  ;;  %1761 = vmatmul.mubr.msk.bf16.gmra.mrb[36].mxu1 %vm764_vm0, %v1928_v58 }
  0x8a   :  { %973 = vmatprep.mubr.bf16.mxu0 %v1929_v59  ;;  %1764 = vmatprep.mubr.msk.bf16.mxu1 %vm764_vm0, %v1931_v60 }
  0x91   :  { %974 = vmatmul.mubr.bf16.gmra.mrb[40].mxu0 %v1932_v61  ;;  %1765 = vmatmul.mubr.msk.bf16.gmra.mrb[40].mxu1 %vm764_vm0, %v1933_v62 }
  0x92   :  { %981 = vmatprep.mubr.bf16.mxu0 %v1934_v63  ;;  %1768 = vmatprep.mubr.msk.bf16.mxu1 %vm764_vm0, %v1936_v0 }
  0x99   :  { %982 = vmatmul.mubr.bf16.gmra.mrb[44].mxu0 %v1937_v1  ;;  %1769 = vmatmul.mubr.msk.bf16.gmra.mrb[44].mxu1 %vm764_vm0, %v1938_v2 }
  0x9a   :  { %989 = vmatprep.mubr.bf16.mxu0 %v1939_v3  ;;  %1772 = vmatprep.mubr.msk.bf16.mxu1 %vm764_vm0, %v1941_v4 }
  0xa1   :  { %990 = vmatmul.mubr.bf16.gmra.mrb[48].mxu0 %v1942_v5  ;;  %1773 = vmatmul.mubr.msk.bf16.gmra.mrb[48].mxu1 %vm764_vm0, %v1943_v6 }
  0xa2   :  { %997 = vmatprep.mubr.bf16.mxu0 %v1944_v7  ;;  %1776 = vmatprep.mubr.msk.bf16.mxu1 %vm764_vm0, %v1946_v8 }
  0xa9   :  { %998 = vmatmul.mubr.bf16.gmra.mrb[52].mxu0 %v1947_v9  ;;  %1777 = vmatmul.mubr.msk.bf16.gmra.mrb[52].mxu1 %vm764_vm0, %v1948_v10 }
  0xaa   :  { %1005 = vmatprep.mubr.bf16.mxu0 %v1949_v11  ;;  %1780 = vmatprep.mubr.msk.bf16.mxu1 %vm764_vm0, %v1951_v12 }
  0xb1   :  { %1006 = vmatmul.mubr.bf16.gmra.mrb[56].mxu0 %v1952_v13  ;;  %1781 = vmatmul.mubr.msk.bf16.gmra.mrb[56].mxu1 %vm764_vm0, %v1953_v14 }
  0xb2   :  { %1013 = vmatprep.mubr.bf16.mxu0 %v1954_v15  ;;  %1784 = vmatprep.mubr.msk.bf16.mxu1 %vm764_vm0, %v1956_v16 }
  0xb9   :  { %1014 = vmatmul.mubr.bf16.gmra.mrb[60].mxu0 %v1957_v17  ;;  %1785 = vmatmul.mubr.msk.bf16.gmra.mrb[60].mxu1 %vm764_vm0, %v1958_v18 }
  0xba   :  { %1021 = vmatprep.mubr.bf16.mxu0 %v1959_v19  ;;  %1788 = vmatprep.mubr.msk.bf16.mxu1 %vm764_vm0, %v1961_v20 }
  0xc1   :  { %1022 = vmatmul.mubr.bf16.gmra.mrb[64].mxu0 %v1962_v21  ;;  %1789 = vmatmul.mubr.msk.bf16.gmra.mrb[64].mxu1 %vm764_vm0, %v1963_v22 }
  0xc2   :  { %1029 = vmatprep.mubr.bf16.mxu0 %v1964_v23  ;;  %1792 = vmatprep.mubr.msk.bf16.mxu1 %vm764_vm0, %v1966_v24 }
  0xc9   :  { %1030 = vmatmul.mubr.bf16.gmra.mrb[68].mxu0 %v1967_v25  ;;  %1793 = vmatmul.mubr.msk.bf16.gmra.mrb[68].mxu1 %vm764_vm0, %v1968_v26 }
  0xca   :  { %1037 = vmatprep.mubr.bf16.mxu0 %v1969_v27  ;;  %1796 = vmatprep.mubr.msk.bf16.mxu1 %vm764_vm0, %v1971_v28 }
  0xd1   :  { %1038 = vmatmul.mubr.bf16.gmra.mrb[72].mxu0 %v1972_v29  ;;  %1797 = vmatmul.mubr.msk.bf16.gmra.mrb[72].mxu1 %vm764_vm0, %v1973_v30 }
  0xd2   :  { %1045 = vmatprep.mubr.bf16.mxu0 %v1974_v31  ;;  %1800 = vmatprep.mubr.msk.bf16.mxu1 %vm764_vm0, %v1976_v32 }
  0xd9   :  { %1046 = vmatmul.mubr.bf16.gmra.mrb[76].mxu0 %v1977_v33  ;;  %1801 = vmatmul.mubr.msk.bf16.gmra.mrb[76].mxu1 %vm764_vm0, %v1978_v34 }
  0xda   :  { %1053 = vmatprep.mubr.bf16.mxu0 %v1979_v35  ;;  %1804 = vmatprep.mubr.msk.bf16.mxu1 %vm764_vm0, %v1981_v36 }
  0xe1   :  { %1054 = vmatmul.mubr.bf16.gmra.mrb[80].mxu0 %v1982_v37  ;;  %1805 = vmatmul.mubr.msk.bf16.gmra.mrb[80].mxu1 %vm764_vm0, %v1983_v38 }
  0xe2   :  { %1061 = vmatprep.mubr.bf16.mxu0 %v1984_v39  ;;  %1808 = vmatprep.mubr.msk.bf16.mxu1 %vm764_vm0, %v1986_v40 }
  0xe9   :  { %1062 = vmatmul.mubr.bf16.gmra.mrb[84].mxu0 %v1987_v41  ;;  %1809 = vmatmul.mubr.msk.bf16.gmra.mrb[84].mxu1 %vm764_vm0, %v1988_v42 }
  0xea   :  { %1069 = vmatprep.mubr.bf16.mxu0 %v1989_v43  ;;  %1812 = vmatprep.mubr.msk.bf16.mxu1 %vm764_vm0, %v1991_v44 }
  0xf1   :  { %1070 = vmatmul.mubr.bf16.gmra.mrb[88].mxu0 %v1992_v45  ;;  %1813 = vmatmul.mubr.msk.bf16.gmra.mrb[88].mxu1 %vm764_vm0, %v1993_v46 }
  0xf2   :  { %1077 = vmatprep.mubr.bf16.mxu0 %v1994_v47  ;;  %1816 = vmatprep.mubr.msk.bf16.mxu1 %vm764_vm0, %v1996_v48 }
  0xf9   :  { %1078 = vmatmul.mubr.bf16.gmra.mrb[92].mxu0 %v1997_v49  ;;  %1817 = vmatmul.mubr.msk.bf16.gmra.mrb[92].mxu1 %vm764_vm0, %v1998_v50 }
 0x114   :  { %v2549_v51 = vpop.f32.mrb[0].mxu0  ;;  %v2551_v52 = vpop.f32.mrb[0].mxu1 }
 0x115   :  { %v897_v53 = vpop.f32.mrb[1].mxu0  ;;  %v1089_v54 = vpop.f32.mrb[1].mxu1 }
 0x116   :  { %v2553_v55 = vpop.f32.mrb[2].mxu0  ;;  %v2555_v56 = vpop.f32.mrb[2].mxu1 }
 0x117   :  { %v900_v57 = vpop.f32.mrb[3].mxu0  ;;  %v1092_v58 = vpop.f32.mrb[3].mxu1 }
 0x11c   :  { %v903_v59 = vpop.f32.mrb[4].mxu0  ;;  %v2557_v60 = vpop.f32.mrb[4].mxu1 }
 0x11d   :  { %v905_v61 = vpop.f32.mrb[5].mxu0  ;;  %v1097_v62 = vpop.f32.mrb[5].mxu1 }
 0x11e   :  { %v906_v63 = vpop.f32.mrb[6].mxu0  ;;  %v2559_v0 = vpop.f32.mrb[6].mxu1 }
 0x11f   :  { %v908_v1 = vpop.f32.mrb[7].mxu0  ;;  %v1100_v2 = vpop.f32.mrb[7].mxu1 }
 0x124   :  { %v2561_v3 = vpop.f32.mrb[8].mxu0  ;;  %v2563_v4 = vpop.f32.mrb[8].mxu1 }
 0x125   :  { %v913_v5 = vpop.f32.mrb[9].mxu0  ;;  %v1105_v6 = vpop.f32.mrb[9].mxu1 }
 0x126   :  { %v2565_v7 = vpop.f32.mrb[10].mxu0  ;;  %v2567_v8 = vpop.f32.mrb[10].mxu1 }
 0x127   :  { %v916_v9 = vpop.f32.mrb[11].mxu0  ;;  %v1108_v10 = vpop.f32.mrb[11].mxu1 }
 0x12c   :  { %v919_v11 = vpop.f32.mrb[12].mxu0  ;;  %v2569_v12 = vpop.f32.mrb[12].mxu1 }
 0x12d   :  { %v921_v13 = vpop.f32.mrb[13].mxu0  ;;  %v1113_v14 = vpop.f32.mrb[13].mxu1 }
 0x12e   :  { %v2571_v15 = vpop.f32.mrb[14].mxu0  ;;  %v2573_v16 = vpop.f32.mrb[14].mxu1 }
 0x12f   :  { %v924_v17 = vpop.f32.mrb[15].mxu0  ;;  %v1116_v18 = vpop.f32.mrb[15].mxu1 }
 0x134   :  { %v2575_v19 = vpop.f32.mrb[16].mxu0  ;;  %v2577_v20 = vpop.f32.mrb[16].mxu1 }
 0x135   :  { %v929_v21 = vpop.f32.mrb[17].mxu0  ;;  %v1121_v22 = vpop.f32.mrb[17].mxu1 }
 0x136   :  { %v2579_v23 = vpop.f32.mrb[18].mxu0  ;;  %v2581_v24 = vpop.f32.mrb[18].mxu1 }
 0x137   :  { %v932_v25 = vpop.f32.mrb[19].mxu0  ;;  %v1124_v26 = vpop.f32.mrb[19].mxu1 }
 0x13c   :  { %v2583_v27 = vpop.f32.mrb[20].mxu0  ;;  %v2585_v28 = vpop.f32.mrb[20].mxu1 }
 0x13d   :  { %v937_v29 = vpop.f32.mrb[21].mxu0  ;;  %v1129_v30 = vpop.f32.mrb[21].mxu1 }
 0x13e   :  { %v2587_v31 = vpop.f32.mrb[22].mxu0  ;;  %v2589_v32 = vpop.f32.mrb[22].mxu1 }
 0x13f   :  { %v940_v33 = vpop.f32.mrb[23].mxu0  ;;  %v1132_v34 = vpop.f32.mrb[23].mxu1 }
 0x144   :  { %v2591_v35 = vpop.f32.mrb[24].mxu0  ;;  %v2593_v36 = vpop.f32.mrb[24].mxu1 }
 0x145   :  { %v945_v37 = vpop.f32.mrb[25].mxu0  ;;  %v1137_v38 = vpop.f32.mrb[25].mxu1 }
 0x146   :  { %v2595_v39 = vpop.f32.mrb[26].mxu0  ;;  %v2597_v40 = vpop.f32.mrb[26].mxu1 }
 0x147   :  { %v948_v41 = vpop.f32.mrb[27].mxu0  ;;  %v1140_v42 = vpop.f32.mrb[27].mxu1 }
 0x14c   :  { %v2599_v43 = vpop.f32.mrb[28].mxu0  ;;  %v2601_v44 = vpop.f32.mrb[28].mxu1 }
 0x14d   :  { %v953_v45 = vpop.f32.mrb[29].mxu0  ;;  %v1145_v46 = vpop.f32.mrb[29].mxu1 }
 0x14e   :  { %v2603_v47 = vpop.f32.mrb[30].mxu0  ;;  %v2605_v48 = vpop.f32.mrb[30].mxu1 }
 0x14f   :  { %v956_v49 = vpop.f32.mrb[31].mxu0  ;;  %v1148_v50 = vpop.f32.mrb[31].mxu1 }
 0x154   :  { %v2607_v53 = vpop.f32.mrb[32].mxu0  ;;  %v1758_v54 = vpop.f32.mrb[32].mxu1 }
 0x155   :  { %v1193_v57 = vadd.f32 %v1758_v54, %v903_v59  ;;  %v961_v58 = vpop.f32.mrb[33].mxu0  ;;  %v1184_v61 = vpop.f32.mrb[33].mxu1 }
 0x156   :  { %v1185_v62 = vadd.f32 %v1184_v61, %v2549_v51  ;;  %v2610_v1 = vpop.f32.mrb[34].mxu0  ;;  %v1759_v2 = vpop.f32.mrb[34].mxu1 }
 0x157   :  { %1999 = vtanh.f32 %v1193_v57  ;;  %v1196_v5 = vadd.f32 %v1759_v2, %v906_v63  ;;  %v964_v6 = vpop.f32.mrb[35].mxu0  ;;  %v1187_v9 = vpop.f32.mrb[35].mxu1 }
 0x158   :  { %2001 = vtanh.f32 %v1185_v62  ;;  %v1188_v10 = vadd.f32 %v1187_v9, %v2553_v55 }
 0x159   :  { %2003 = vtanh.f32 %v1196_v5 }
 0x15a   :  { %2005 = vtanh.f32 %v1188_v10 }
 0x15c   :  { %v2613_v13 = vpop.f32.mrb[36].mxu0  ;;  %v1762_v14 = vpop.f32.mrb[36].mxu1 }
 0x15d   :  { %v1209_v59 = vadd.f32 %v1762_v14, %v919_v11  ;;  %v969_v17 = vpop.f32.mrb[37].mxu0  ;;  %v1200_v18 = vpop.f32.mrb[37].mxu1 }
 0x15e   :  { %v1201_v51 = vadd.f32 %v1200_v18, %v2561_v3  ;;  %v2616_v21 = vpop.f32.mrb[38].mxu0  ;;  %v1763_v22 = vpop.f32.mrb[38].mxu1 }
 0x15f   :  { %2007 = vtanh.f32 %v1209_v59  ;;  %v1212_v63 = vadd.f32 %v1763_v22, %v2571_v15  ;;  %v972_v25 = vpop.f32.mrb[39].mxu0  ;;  %v1203_v26 = vpop.f32.mrb[39].mxu1 }
 0x160   :  { %2009 = vtanh.f32 %v1201_v51  ;;  %v1204_v55 = vadd.f32 %v1203_v26, %v2565_v7 }
 0x161   :  { %v2000_v29 = vpop.eup %1999  ;;  %2011 = vtanh.f32 %v1212_v63 }
 0x162   :  { %v2002_v30 = vpop.eup %2001  ;;  %1506 = vst.msk [vmem:[%s2924_s2 + $0x10] sm:$0xff] %vm1503_vm1, %v2000_v29  ;;  %2013 = vtanh.f32 %v1204_v55 }
 0x163   :  { %v2004_v3 = vpop.eup %2003  ;;  %1504 = vst.msk [vmem:[%s2924_s2] sm:$0xff] %vm1503_vm1, %v2002_v30 }
 0x164   :  { %v2006_v11 = vpop.eup %2005  ;;  %1507 = vst.msk [vmem:[%s2924_s2 + $0x18] sm:$0xff] %vm1503_vm1, %v2004_v3  ;;  %v2632_v7 = vpop.f32.mrb[40].mxu0 }
 0x165   :  { %v1766_v15 = vpop.f32.mrb[40].mxu1  ;;  %1505 = vst.msk [vmem:[%s2924_s2 + $0x8] sm:$0xff] %vm1503_vm1, %v2006_v11  ;;  %v977_v34 = vpop.f32.mrb[41].mxu0 }
 0x166   :  { %v1225_v33 = vadd.f32 %v1766_v15, %v2583_v27  ;;  %v1216_v37 = vpop.f32.mrb[41].mxu1  ;;  %v2640_v41 = vpop.f32.mrb[42].mxu0 }
 0x167   :  { %v1217_v38 = vadd.f32 %v1216_v37, %v2575_v19  ;;  %v1767_v42 = vpop.f32.mrb[42].mxu1  ;;  %v980_v46 = vpop.f32.mrb[43].mxu0 }
 0x168   :  { %2015 = vtanh.f32 %v1225_v33  ;;  %v1228_v45 = vadd.f32 %v1767_v42, %v2587_v31  ;;  %v1219_v49 = vpop.f32.mrb[43].mxu1 }
 0x169   :  { %2017 = vtanh.f32 %v1217_v38  ;;  %v1220_v50 = vadd.f32 %v1219_v49, %v2579_v23  ;;  %v2008_v54 = vpop.eup %2007 }
 0x16a   :  { %2019 = vtanh.f32 %v1228_v45  ;;  %v2010_v57 = vpop.eup %2009  ;;  %1510 = vst.msk [vmem:[%s2924_s2 + $0x30] sm:$0xff] %vm1503_vm1, %v2008_v54 }
 0x16b   :  { %2021 = vtanh.f32 %v1220_v50  ;;  %v2012_v19 = vpop.eup %2011  ;;  %1508 = vst.msk [vmem:[%s2924_s2 + $0x20] sm:$0xff] %vm1503_vm1, %v2010_v57 }
 0x16c   :  { %v2014_v27 = vpop.eup %2013  ;;  %1511 = vst.msk [vmem:[%s2924_s2 + $0x38] sm:$0xff] %vm1503_vm1, %v2012_v19  ;;  %v983_v23 = vpop.f32.mrb[44].mxu0 }
 0x16d   :  { %v1770_v31 = vpop.f32.mrb[44].mxu1  ;;  %1509 = vst.msk [vmem:[%s2924_s2 + $0x28] sm:$0xff] %vm1503_vm1, %v2014_v27  ;;  %v985_v61 = vpop.f32.mrb[45].mxu0 }
 0x16e   :  { %v1241_v58 = vadd.f32 %v1770_v31, %v2599_v43  ;;  %v1232_v62 = vpop.f32.mrb[45].mxu1  ;;  %v986_v5 = vpop.f32.mrb[46].mxu0 }
 0x16f   :  { %v1233_v2 = vadd.f32 %v1232_v62, %v2591_v35  ;;  %v1771_v6 = vpop.f32.mrb[46].mxu1  ;;  %v988_v10 = vpop.f32.mrb[47].mxu0 }
 0x170   :  { %2023 = vtanh.f32 %v1241_v58  ;;  %v1244_v9 = vadd.f32 %v1771_v6, %v2603_v47  ;;  %v1235_v14 = vpop.f32.mrb[47].mxu1 }
 0x171   :  { %2025 = vtanh.f32 %v1233_v2  ;;  %v1236_v59 = vadd.f32 %v1235_v14, %v2595_v39 }
 0x172   :  { %v2016_v17 = vpop.eup %2015  ;;  %2027 = vtanh.f32 %v1244_v9 }
 0x173   :  { %v2018_v18 = vpop.eup %2017  ;;  %1514 = vst.msk [vmem:[%s2924_s2 + $0x50] sm:$0xff] %vm1503_vm1, %v2016_v17  ;;  %2029 = vtanh.f32 %v1236_v59 }
 0x174   :  { %v2020_v35 = vpop.eup %2019  ;;  %1512 = vst.msk [vmem:[%s2924_s2 + $0x40] sm:$0xff] %vm1503_vm1, %v2018_v18  ;;  %v991_v39 = vpop.f32.mrb[48].mxu0 }
 0x175   :  { %v2022_v43 = vpop.eup %2021  ;;  %1515 = vst.msk [vmem:[%s2924_s2 + $0x58] sm:$0xff] %vm1503_vm1, %v2020_v35  ;;  %v1774_v47 = vpop.f32.mrb[48].mxu1 }
 0x176   :  { %1513 = vst.msk [vmem:[%s2924_s2 + $0x48] sm:$0xff] %vm1503_vm1, %v2022_v43  ;;  %v1257_v51 = vadd.f32 %v1774_v47, %v2613_v13  ;;  %v993_v22 = vpop.f32.mrb[49].mxu0  ;;  %v1248_v63 = vpop.f32.mrb[49].mxu1 }
 0x177   :  { %v1249_v25 = vadd.f32 %v1248_v63, %v2607_v53  ;;  %v994_v26 = vpop.f32.mrb[50].mxu0  ;;  %v1775_v55 = vpop.f32.mrb[50].mxu1 }
 0x178   :  { %2031 = vtanh.f32 %v1257_v51  ;;  %v1260_v29 = vadd.f32 %v1775_v55, %v2616_v21  ;;  %v996_v30 = vpop.f32.mrb[51].mxu0  ;;  %v1251_v3 = vpop.f32.mrb[51].mxu1 }
 0x179   :  { %2033 = vtanh.f32 %v1249_v25  ;;  %v1252_v11 = vadd.f32 %v1251_v3, %v2610_v1 }
 0x17a   :  { %v2024_v15 = vpop.eup %2023  ;;  %2035 = vtanh.f32 %v1260_v29 }
 0x17b   :  { %v2026_v33 = vpop.eup %2025  ;;  %1518 = vst.msk [vmem:[%s2924_s2 + $0x70] sm:$0xff] %vm1503_vm1, %v2024_v15  ;;  %2037 = vtanh.f32 %v1252_v11 }
 0x17c   :  { %v2028_v53 = vpop.eup %2027  ;;  %1516 = vst.msk [vmem:[%s2924_s2 + $0x60] sm:$0xff] %vm1503_vm1, %v2026_v33  ;;  %v999_v1 = vpop.f32.mrb[52].mxu0 }
 0x17d   :  { %v2030_v13 = vpop.eup %2029  ;;  %1519 = vst.msk [vmem:[%s2924_s2 + $0x78] sm:$0xff] %vm1503_vm1, %v2028_v53  ;;  %v1778_v21 = vpop.f32.mrb[52].mxu1 }
 0x17e   :  { %1517 = vst.msk [vmem:[%s2924_s2 + $0x68] sm:$0xff] %vm1503_vm1, %v2030_v13  ;;  %v1273_v34 = vadd.f32 %v1778_v21, %v983_v23  ;;  %v1001_v37 = vpop.f32.mrb[53].mxu0  ;;  %v1264_v38 = vpop.f32.mrb[53].mxu1 }
 0x17f   :  { %v1265_v42 = vadd.f32 %v1264_v38, %v2632_v7  ;;  %v1002_v45 = vpop.f32.mrb[54].mxu0  ;;  %v1779_v46 = vpop.f32.mrb[54].mxu1 }
 0x180   :  { %2039 = vtanh.f32 %v1273_v34  ;;  %v1276_v49 = vadd.f32 %v1779_v46, %v986_v5  ;;  %v1004_v50 = vpop.f32.mrb[55].mxu0  ;;  %v1267_v54 = vpop.f32.mrb[55].mxu1 }
 0x181   :  { %2041 = vtanh.f32 %v1265_v42  ;;  %v1268_v57 = vadd.f32 %v1267_v54, %v2640_v41 }
 0x182   :  { %v2032_v19 = vpop.eup %2031  ;;  %2043 = vtanh.f32 %v1276_v49 }
 0x183   :  { %v2034_v27 = vpop.eup %2033  ;;  %1522 = vst.msk [vmem:[%s2924_s2 + $0x90] sm:$0xff] %vm1503_vm1, %v2032_v19  ;;  %2045 = vtanh.f32 %v1268_v57 }
 0x184   :  { %v2036_v23 = vpop.eup %2035  ;;  %1520 = vst.msk [vmem:[%s2924_s2 + $0x80] sm:$0xff] %vm1503_vm1, %v2034_v27  ;;  %v1007_v41 = vpop.f32.mrb[56].mxu0 }
 0x185   :  { %v2038_v7 = vpop.eup %2037  ;;  %1523 = vst.msk [vmem:[%s2924_s2 + $0x98] sm:$0xff] %vm1503_vm1, %v2036_v23  ;;  %v1782_v31 = vpop.f32.mrb[56].mxu1 }
 0x186   :  { %1521 = vst.msk [vmem:[%s2924_s2 + $0x88] sm:$0xff] %vm1503_vm1, %v2038_v7  ;;  %v1289_v58 = vadd.f32 %v1782_v31, %v999_v1  ;;  %v1009_v61 = vpop.f32.mrb[57].mxu0  ;;  %v1280_v62 = vpop.f32.mrb[57].mxu1 }
 0x187   :  { %v1281_v2 = vadd.f32 %v1280_v62, %v991_v39  ;;  %v1010_v5 = vpop.f32.mrb[58].mxu0  ;;  %v1783_v6 = vpop.f32.mrb[58].mxu1 }
 0x188   :  { %2047 = vtanh.f32 %v1289_v58  ;;  %v1292_v9 = vadd.f32 %v1783_v6, %v1002_v45  ;;  %v1012_v10 = vpop.f32.mrb[59].mxu0  ;;  %v1283_v14 = vpop.f32.mrb[59].mxu1 }
 0x189   :  { %2049 = vtanh.f32 %v1281_v2  ;;  %v1284_v59 = vadd.f32 %v1283_v14, %v994_v26 }
 0x18a   :  { %v2040_v17 = vpop.eup %2039  ;;  %2051 = vtanh.f32 %v1292_v9 }
 0x18b   :  { %v2042_v18 = vpop.eup %2041  ;;  %1526 = vst.msk [vmem:[%s2924_s2 + $0xb0] sm:$0xff] %vm1503_vm1, %v2040_v17  ;;  %2053 = vtanh.f32 %v1284_v59 }
 0x18c   :  { %v2044_v35 = vpop.eup %2043  ;;  %1524 = vst.msk [vmem:[%s2924_s2 + $0xa0] sm:$0xff] %vm1503_vm1, %v2042_v18  ;;  %v1015_v39 = vpop.f32.mrb[60].mxu0 }
 0x18d   :  { %v2046_v43 = vpop.eup %2045  ;;  %1527 = vst.msk [vmem:[%s2924_s2 + $0xb8] sm:$0xff] %vm1503_vm1, %v2044_v35  ;;  %v1786_v47 = vpop.f32.mrb[60].mxu1 }
 0x18e   :  { %1525 = vst.msk [vmem:[%s2924_s2 + $0xa8] sm:$0xff] %vm1503_vm1, %v2046_v43  ;;  %v1305_v51 = vadd.f32 %v1786_v47, %v1015_v39  ;;  %v1017_v22 = vpop.f32.mrb[61].mxu0  ;;  %v1296_v63 = vpop.f32.mrb[61].mxu1 }
 0x18f   :  { %v1297_v25 = vadd.f32 %v1296_v63, %v1007_v41  ;;  %v1018_v26 = vpop.f32.mrb[62].mxu0  ;;  %v1787_v55 = vpop.f32.mrb[62].mxu1 }
 0x190   :  { %2055 = vtanh.f32 %v1305_v51  ;;  %v1308_v29 = vadd.f32 %v1787_v55, %v1018_v26  ;;  %v1020_v30 = vpop.f32.mrb[63].mxu0  ;;  %v1299_v3 = vpop.f32.mrb[63].mxu1 }
 0x191   :  { %2057 = vtanh.f32 %v1297_v25  ;;  %v1300_v11 = vadd.f32 %v1299_v3, %v1010_v5 }
 0x192   :  { %v2048_v15 = vpop.eup %2047  ;;  %2059 = vtanh.f32 %v1308_v29 }
 0x193   :  { %v2050_v33 = vpop.eup %2049  ;;  %1530 = vst.msk [vmem:[%s2924_s2 + $0xd0] sm:$0xff] %vm1503_vm1, %v2048_v15  ;;  %2061 = vtanh.f32 %v1300_v11 }
 0x194   :  { %v2052_v53 = vpop.eup %2051  ;;  %1528 = vst.msk [vmem:[%s2924_s2 + $0xc0] sm:$0xff] %vm1503_vm1, %v2050_v33  ;;  %v1023_v1 = vpop.f32.mrb[64].mxu0 }
 0x195   :  { %v2054_v13 = vpop.eup %2053  ;;  %1531 = vst.msk [vmem:[%s2924_s2 + $0xd8] sm:$0xff] %vm1503_vm1, %v2052_v53  ;;  %v1790_v21 = vpop.f32.mrb[64].mxu1 }
 0x196   :  { %1529 = vst.msk [vmem:[%s2924_s2 + $0xc8] sm:$0xff] %vm1503_vm1, %v2054_v13  ;;  %v1025_v34 = vpop.f32.mrb[65].mxu0  ;;  %v1312_v37 = vpop.f32.mrb[65].mxu1 }
 0x197   :  { %v1313_v38 = vadd.f32 %v1312_v37, %v1023_v1  ;;  %v1026_v42 = vpop.f32.mrb[66].mxu0  ;;  %v1791_v45 = vpop.f32.mrb[66].mxu1 }
 0x198   :  { %v1028_v46 = vpop.f32.mrb[67].mxu0  ;;  %v1315_v49 = vpop.f32.mrb[67].mxu1 }
 0x199   :  { %2063 = vtanh.f32 %v1313_v38  ;;  %v1316_v50 = vadd.f32 %v1315_v49, %v1026_v42 }
 0x19a   :  { %v2056_v54 = vpop.eup %2055 }
 0x19b   :  { %v2058_v57 = vpop.eup %2057  ;;  %1534 = vst.msk [vmem:[%s2924_s2 + $0xf0] sm:$0xff] %vm1503_vm1, %v2056_v54  ;;  %2065 = vtanh.f32 %v1316_v50 }
 0x19c   :  { %v2060_v19 = vpop.eup %2059  ;;  %1532 = vst.msk [vmem:[%s2924_s2 + $0xe0] sm:$0xff] %vm1503_vm1, %v2058_v57  ;;  %v1031_v23 = vpop.f32.mrb[68].mxu0 }
 0x19d   :  { %v2062_v27 = vpop.eup %2061  ;;  %1535 = vst.msk [vmem:[%s2924_s2 + $0xf8] sm:$0xff] %vm1503_vm1, %v2060_v19  ;;  %v1794_v7 = vpop.f32.mrb[68].mxu1  ;;  %v1321_v41 = vadd.f32 %v1790_v21, %v1031_v23 }
 0x19e   :  { %1533 = vst.msk [vmem:[%s2924_s2 + $0xe8] sm:$0xff] %vm1503_vm1, %v2062_v27  ;;  %v1033_v31 = vpop.f32.mrb[69].mxu0  ;;  %v1328_v58 = vpop.f32.mrb[69].mxu1 }
 0x19f   :  { %v1034_v61 = vpop.f32.mrb[70].mxu0  ;;  %v1795_v62 = vpop.f32.mrb[70].mxu1  ;;  %2067 = vtanh.f32 %v1321_v41 }
 0x1a0   :  { %v1324_v2 = vadd.f32 %v1791_v45, %v1034_v61  ;;  %v1036_v5 = vpop.f32.mrb[71].mxu0  ;;  %v1331_v6 = vpop.f32.mrb[71].mxu1 }
 0x1a2   :  { %2069 = vtanh.f32 %v1324_v2 }
 0x1a3   :  { %v2064_v9 = vpop.eup %2063 }
 0x1a4   :  { %1536 = vst.msk [vmem:[%s2924_s2 + $0x100] sm:$0xff] %vm1503_vm1, %v2064_v9  ;;  %v1039_v14 = vpop.f32.mrb[72].mxu0  ;;  %v1798_v59 = vpop.f32.mrb[72].mxu1 }
 0x1a5   :  { %v2066_v10 = vpop.eup %2065  ;;  %v1329_v17 = vadd.f32 %v1328_v58, %v1039_v14  ;;  %v1041_v18 = vpop.f32.mrb[73].mxu0 }
 0x1a6   :  { %1537 = vst.msk [vmem:[%s2924_s2 + $0x108] sm:$0xff] %vm1503_vm1, %v2066_v10  ;;  %v1344_v35 = vpop.f32.mrb[73].mxu1  ;;  %v1042_v43 = vpop.f32.mrb[74].mxu0 }
 0x1a7   :  { %v1799_v39 = vpop.f32.mrb[74].mxu1  ;;  %2071 = vtanh.f32 %v1329_v17  ;;  %v1332_v47 = vadd.f32 %v1331_v6, %v1042_v43  ;;  %v1044_v51 = vpop.f32.mrb[75].mxu0 }
 0x1a8   :  { %v1347_v22 = vpop.f32.mrb[75].mxu1 }
 0x1a9   :  { %v2068_v63 = vpop.eup %2067  ;;  %2073 = vtanh.f32 %v1332_v47 }
 0x1aa   :  { %1538 = vst.msk [vmem:[%s2924_s2 + $0x110] sm:$0xff] %vm1503_vm1, %v2068_v63 }
 0x1ac   :  { %v2070_v25 = vpop.eup %2069  ;;  %v1047_v26 = vpop.f32.mrb[76].mxu0 }
 0x1ad   :  { %1539 = vst.msk [vmem:[%s2924_s2 + $0x118] sm:$0xff] %vm1503_vm1, %v2070_v25  ;;  %v2782_v55 = vpop.f32.mrb[76].mxu1  ;;  %v1337_v29 = vadd.f32 %v1794_v7, %v1047_v26  ;;  %v1049_v30 = vpop.f32.mrb[77].mxu0 }
 0x1ae   :  { %v2784_v3 = vpop.f32.mrb[77].mxu1  ;;  %v1050_v11 = vpop.f32.mrb[78].mxu0 }
 0x1af   :  { %v2786_v15 = vpop.f32.mrb[78].mxu1  ;;  %2075 = vtanh.f32 %v1337_v29  ;;  %v1340_v33 = vadd.f32 %v1795_v62, %v1050_v11  ;;  %v1052_v53 = vpop.f32.mrb[79].mxu0 }
 0x1b0   :  { %v2788_v13 = vpop.f32.mrb[79].mxu1 }
 0x1b1   :  { %v2072_v1 = vpop.eup %2071  ;;  %2077 = vtanh.f32 %v1340_v33 }
 0x1b2   :  { %1540 = vst.msk [vmem:[%s2924_s2 + $0x120] sm:$0xff] %vm1503_vm1, %v2072_v1 }
 0x1b3   :  { %v2074_v21 = vpop.eup %2073 }
 0x1b4   :  { %1541 = vst.msk [vmem:[%s2924_s2 + $0x128] sm:$0xff] %vm1503_vm1, %v2074_v21  ;;  %v1055_v34 = vpop.f32.mrb[80].mxu0  ;;  %v1806_v37 = vpop.f32.mrb[80].mxu1 }
 0x1b5   :  { %v1345_v38 = vadd.f32 %v1344_v35, %v1055_v34  ;;  %v1385_v42 = vadd.f32 %v1806_v37, %v2557_v60  ;;  %v1057_v45 = vpop.f32.mrb[81].mxu0  ;;  %v1376_v46 = vpop.f32.mrb[81].mxu1 }
 0x1b6   :  { %v1377_v49 = vadd.f32 %v1376_v46, %v2551_v52  ;;  %v1058_v50 = vpop.f32.mrb[82].mxu0  ;;  %v1807_v54 = vpop.f32.mrb[82].mxu1 }
 0x1b7   :  { %2079 = vtanh.f32 %v1345_v38  ;;  %v1348_v57 = vadd.f32 %v1347_v22, %v1058_v50  ;;  %v1388_v19 = vadd.f32 %v1807_v54, %v2559_v0  ;;  %v1060_v27 = vpop.f32.mrb[83].mxu0  ;;  %v1379_v23 = vpop.f32.mrb[83].mxu1 }
 0x1b8   :  { %2081 = vtanh.f32 %v1385_v42  ;;  %v1380_v7 = vadd.f32 %v1379_v23, %v2555_v56 }
 0x1b9   :  { %v2076_v41 = vpop.eup %2075  ;;  %2083 = vtanh.f32 %v1377_v49 }
 0x1ba   :  { %1542 = vst.msk [vmem:[%s2924_s2 + $0x130] sm:$0xff] %vm1503_vm1, %v2076_v41  ;;  %2085 = vtanh.f32 %v1348_v57 }
 0x1bb   :  { %v2078_v52 = vpop.eup %2077  ;;  %2087 = vtanh.f32 %v1388_v19 }
 0x1bc   :  { %1543 = vst.msk [vmem:[%s2924_s2 + $0x138] sm:$0xff] %vm1503_vm1, %v2078_v52  ;;  %2089 = vtanh.f32 %v1380_v7  ;;  %v1063_v60 = vpop.f32.mrb[84].mxu0  ;;  %v1810_v0 = vpop.f32.mrb[84].mxu1 }
 0x1bd   :  { %v1353_v31 = vadd.f32 %v1798_v59, %v1063_v60  ;;  %v1401_v56 = vadd.f32 %v1810_v0, %v2569_v12  ;;  %v1065_v58 = vpop.f32.mrb[85].mxu0  ;;  %v1392_v61 = vpop.f32.mrb[85].mxu1 }
 0x1be   :  { %v1393_v62 = vadd.f32 %v1392_v61, %v2563_v4  ;;  %v1066_v2 = vpop.f32.mrb[86].mxu0  ;;  %v1811_v5 = vpop.f32.mrb[86].mxu1 }
 0x1bf   :  { %2091 = vtanh.f32 %v1353_v31  ;;  %v1356_v6 = vadd.f32 %v1799_v39, %v1066_v2  ;;  %v1404_v9 = vadd.f32 %v1811_v5, %v2573_v16  ;;  %v1068_v10 = vpop.f32.mrb[87].mxu0  ;;  %v1395_v14 = vpop.f32.mrb[87].mxu1 }
 0x1c0   :  { %2093 = vtanh.f32 %v1401_v56  ;;  %v1396_v17 = vadd.f32 %v1395_v14, %v2567_v8 }
 0x1c1   :  { %v2080_v18 = vpop.eup %2079  ;;  %2095 = vtanh.f32 %v1393_v62 }
 0x1c2   :  { %v2082_v59 = vpop.eup %2081  ;;  %1544 = vst.msk [vmem:[%s2924_s2 + $0x140] sm:$0xff] %vm1503_vm1, %v2080_v18  ;;  %2097 = vtanh.f32 %v1356_v6 }
 0x1c3   :  { %v2084_v4 = vpop.eup %2083  ;;  %1554 = vst.msk [vmem:[%s2924_s2 + $0x190] sm:$0xff] %vm1503_vm1, %v2082_v59  ;;  %2099 = vtanh.f32 %v1404_v9 }
 0x1c4   :  { %v2086_v12 = vpop.eup %2085  ;;  %1552 = vst.msk [vmem:[%s2924_s2 + $0x180] sm:$0xff] %vm1503_vm1, %v2084_v4  ;;  %2101 = vtanh.f32 %v1396_v17  ;;  %v1071_v8 = vpop.f32.mrb[88].mxu0 }
 0x1c5   :  { %v1814_v16 = vpop.f32.mrb[88].mxu1  ;;  %v2088_v35 = vpop.eup %2087  ;;  %1545 = vst.msk [vmem:[%s2924_s2 + $0x148] sm:$0xff] %vm1503_vm1, %v2086_v12  ;;  %v1361_v43 = vadd.f32 %v2784_v3, %v1071_v8 }
 0x1c6   :  { %v1417_v39 = vadd.f32 %v1814_v16, %v2585_v28  ;;  %v1073_v47 = vpop.f32.mrb[89].mxu0  ;;  %v1408_v51 = vpop.f32.mrb[89].mxu1  ;;  %1555 = vst.msk [vmem:[%s2924_s2 + $0x198] sm:$0xff] %vm1503_vm1, %v2088_v35 }
 0x1c7   :  { %v2090_v22 = vpop.eup %2089  ;;  %v1409_v63 = vadd.f32 %v1408_v51, %v2577_v20  ;;  %v1074_v25 = vpop.f32.mrb[90].mxu0  ;;  %2103 = vtanh.f32 %v1361_v43 }
 0x1c8   :  { %v1815_v26 = vpop.f32.mrb[90].mxu1  ;;  %1553 = vst.msk [vmem:[%s2924_s2 + $0x188] sm:$0xff] %vm1503_vm1, %v2090_v22  ;;  %v1364_v28 = vadd.f32 %v2788_v13, %v1074_v25  ;;  %v1076_v30 = vpop.f32.mrb[91].mxu0  ;;  %2105 = vtanh.f32 %v1417_v39 }
 0x1c9   :  { %v1420_v29 = vadd.f32 %v1815_v26, %v2589_v32  ;;  %v1411_v3 = vpop.f32.mrb[91].mxu1  ;;  %v2092_v33 = vpop.eup %2091  ;;  %2107 = vtanh.f32 %v1409_v63 }
 0x1ca   :  { %v1412_v11 = vadd.f32 %v1411_v3, %v2581_v24  ;;  %v2094_v20 = vpop.eup %2093  ;;  %1546 = vst.msk [vmem:[%s2924_s2 + $0x150] sm:$0xff] %vm1503_vm1, %v2092_v33  ;;  %2109 = vtanh.f32 %v1364_v28 }
 0x1cb   :  { %v2096_v53 = vpop.eup %2095  ;;  %1558 = vst.msk [vmem:[%s2924_s2 + $0x1b0] sm:$0xff] %vm1503_vm1, %v2094_v20  ;;  %2111 = vtanh.f32 %v1420_v29 }
 0x1cc   :  { %v2098_v32 = vpop.eup %2097  ;;  %1556 = vst.msk [vmem:[%s2924_s2 + $0x1a0] sm:$0xff] %vm1503_vm1, %v2096_v53  ;;  %2113 = vtanh.f32 %v1412_v11  ;;  %v1079_v24 = vpop.f32.mrb[92].mxu0 }
 0x1cd   :  { %v1818_v13 = vpop.f32.mrb[92].mxu1  ;;  %v2100_v1 = vpop.eup %2099  ;;  %1547 = vst.msk [vmem:[%s2924_s2 + $0x158] sm:$0xff] %vm1503_vm1, %v2098_v32  ;;  %v1369_v21 = vadd.f32 %v2782_v55, %v1079_v24 }
 0x1ce   :  { %v1433_v34 = vadd.f32 %v1818_v13, %v2601_v44  ;;  %v1081_v37 = vpop.f32.mrb[93].mxu0  ;;  %v1424_v38 = vpop.f32.mrb[93].mxu1  ;;  %1559 = vst.msk [vmem:[%s2924_s2 + $0x1b8] sm:$0xff] %vm1503_vm1, %v2100_v1 }
 0x1cf   :  { %v2102_v42 = vpop.eup %2101  ;;  %v1425_v45 = vadd.f32 %v1424_v38, %v2593_v36  ;;  %v1082_v46 = vpop.f32.mrb[94].mxu0  ;;  %2115 = vtanh.f32 %v1369_v21 }
 0x1d0   :  { %v1819_v49 = vpop.f32.mrb[94].mxu1  ;;  %1557 = vst.msk [vmem:[%s2924_s2 + $0x1a8] sm:$0xff] %vm1503_vm1, %v2102_v42  ;;  %v1372_v44 = vadd.f32 %v2786_v15, %v1082_v46  ;;  %v1084_v50 = vpop.f32.mrb[95].mxu0  ;;  %2117 = vtanh.f32 %v1433_v34 }
 0x1d1   :  { %v1436_v55 = vadd.f32 %v1819_v49, %v2605_v48  ;;  %v1427_v54 = vpop.f32.mrb[95].mxu1  ;;  %v2104_v19 = vpop.eup %2103  ;;  %2119 = vtanh.f32 %v1425_v45 }
 0x1d2   :  { %v1428_v57 = vadd.f32 %v1427_v54, %v2597_v40  ;;  %v2106_v36 = vpop.eup %2105  ;;  %1548 = vst.msk [vmem:[%s2924_s2 + $0x160] sm:$0xff] %vm1503_vm1, %v2104_v19  ;;  %2121 = vtanh.f32 %v1372_v44 }
 0x1d3   :  { %v2108_v27 = vpop.eup %2107  ;;  %1562 = vst.msk [vmem:[%s2924_s2 + $0x1d0] sm:$0xff] %vm1503_vm1, %v2106_v36  ;;  %2123 = vtanh.f32 %v1436_v55 }
 0x1d4   :  { %v2110_v48 = vpop.eup %2109  ;;  %1560 = vst.msk [vmem:[%s2924_s2 + $0x1c0] sm:$0xff] %vm1503_vm1, %v2108_v27  ;;  %2125 = vtanh.f32 %v1428_v57 }
 0x1d5   :  { %v2112_v40 = vpop.eup %2111  ;;  %1549 = vst.msk [vmem:[%s2924_s2 + $0x168] sm:$0xff] %vm1503_vm1, %v2110_v48 }
 0x1d6   :  { %v2114_v15 = vpop.eup %2113  ;;  %1563 = vst.msk [vmem:[%s2924_s2 + $0x1d8] sm:$0xff] %vm1503_vm1, %v2112_v40 }
 0x1d7   :  { %1561 = vst.msk [vmem:[%s2924_s2 + $0x1c8] sm:$0xff] %vm1503_vm1, %v2114_v15 }
 0x1d9   :  { %v2116_v23 = vpop.eup %2115 }
 0x1da   :  { %v2118_v7 = vpop.eup %2117  ;;  %1550 = vst.msk [vmem:[%s2924_s2 + $0x170] sm:$0xff] %vm1503_vm1, %v2116_v23 }
 0x1db   :  { %v2120_v41 = vpop.eup %2119  ;;  %1566 = vst.msk [vmem:[%s2924_s2 + $0x1f0] sm:$0xff] %vm1503_vm1, %v2118_v7 }
 0x1dc   :  { %v2122_v52 = vpop.eup %2121  ;;  %1564 = vst.msk [vmem:[%s2924_s2 + $0x1e0] sm:$0xff] %vm1503_vm1, %v2120_v41 }
 0x1dd   :  { %v2124_v60 = vpop.eup %2123  ;;  %1551 = vst.msk [vmem:[%s2924_s2 + $0x178] sm:$0xff] %vm1503_vm1, %v2122_v52 }
 0x1de   :  { %v2126_v0 = vpop.eup %2125  ;;  %1567 = vst.msk [vmem:[%s2924_s2 + $0x1f8] sm:$0xff] %vm1503_vm1, %v2124_v60 }
 0x1df   :  { %1565 = vst.msk [vmem:[%s2924_s2 + $0x1e8] sm:$0xff] %vm1503_vm1, %v2126_v0 }

</bundles_post_ra>
